<compile_context>
chip_gen: v5e
topology: v5e:2x2
jax: 0.10.0
libtpu: 0.0.40
codegen_flags: <defaults>
</compile_context>

<pallas_src>
import functools

import jax
import jax.numpy as jnp
from jax.experimental import pallas as pl
from jax.experimental.pallas import tpu as pltpu

_VMEM = pl.BlockSpec(memory_space=pltpu.MemorySpace.VMEM)
_LANES = 128  # padded FC output width (full-lane final store)


# ---------------------------------------------------------------------------
# Fused forward kernel.  Activation layout everywhere:
#   rows  = n * H + y          (image-major; pool2 emits y-major for the FC)
#   lanes = x * C + c          (x-major, channels innermost)
# ---------------------------------------------------------------------------
def _cnn_kernel(x_ref, w1_ref, b1_ref, g1_ref, be1_ref, s1_ref, st1_ref,
                pe1_ref, po1_ref, re1_ref, ro1_ref,
                w2_ref, b2_ref, g2_ref, be2_ref, s2_ref, st2_ref,
                pe2_ref, po2_ref, re2_ref, ro2_ref,
                fcw_ref, fcb_ref, out_ref,
                *, n_imgs, h1, ci1, h2, ci2, h3, eps):
    f32 = jnp.float32

    def conv_relu(act, h_img, ci, wbig_ref, bias_ref):
        # act: (n_imgs*h_img, W*ci).  W-pad on the lane axis, lane-concat the
        # three row-shifted slabs (y-1, y, y+1), then one shared-weight matmul
        # against the banded conv matrix.
        rows = act.shape[0]
        zcol = jnp.zeros((rows, ci), f32)
        xw = jnp.concatenate([zcol, act, zcol], axis=-1)       # (rows, (W+2)*ci)
        zrow = jnp.zeros((1, xw.shape[-1]), f32)
        blocks = []
        for dy in (-1, 0, 1):
            if dy == 0:
                blocks.append(xw)
                continue
            pieces = []
            for img in range(n_imgs):
                base = img * h_img
                if dy < 0:        # output row y reads input row y-1 (zero at top)
                    pieces.append(zrow)
                    pieces.append(xw[base:base + h_img - 1, :])
                else:             # output row y reads input row y+1 (zero at bottom)
                    pieces.append(xw[base + 1:base + h_img, :])
                    pieces.append(zrow)
            blocks.append(jnp.concatenate(pieces, axis=0))
        lhs = jnp.concatenate(blocks, axis=-1)                 # (rows, 3*(W+2)*ci)
        y = jnp.dot(lhs, wbig_ref[...], preferred_element_type=f32)  # (rows, W*co)
        return jnp.maximum(y + bias_ref[...], 0.0)

    def batchnorm(hact, s_ref, st_ref, g_ref, be_ref):
        # Training-mode (biased-variance) batch norm, two-pass for robustness.
        # S sums the W same-channel lanes; St broadcasts channel scalars back.
        lanes, chans = s_ref.shape
        count = float(hact.shape[0] * (lanes // chans))        # N * H * W
        col_sum = jnp.sum(hact, axis=0, keepdims=True)                        # (1,L)
        mean_c = jnp.dot(col_sum, s_ref[...], preferred_element_type=f32) / count
        mean_l = jnp.dot(mean_c, st_ref[...], preferred_element_type=f32)     # (1,L)
        xc = hact - mean_l
        var_c = jnp.dot(jnp.sum(xc * xc, axis=0, keepdims=True), s_ref[...],
                        preferred_element_type=f32) / count                   # (1,C)
        inv_l = jnp.dot(jax.lax.rsqrt(var_c + eps), st_ref[...],
                        preferred_element_type=f32)                           # (1,L)
        return xc * (inv_l * g_ref[...]) + be_ref[...]

    def maxpool(hact, pe_ref, po_ref, re_ref, ro_ref):
        # 2x2 stride-2 max pool: x-pairs via even/odd lane-block selectors,
        # y-pairs via even/odd row selectors -- exact 0/1 matmuls (MXU only).
        mw = jnp.maximum(jnp.dot(hact, pe_ref[...], preferred_element_type=f32),
                         jnp.dot(hact, po_ref[...], preferred_element_type=f32))
        return jnp.maximum(jnp.dot(re_ref[...], mw, preferred_element_type=f32),
                           jnp.dot(ro_ref[...], mw, preferred_element_type=f32))

    # ---- layer 1: conv1 + relu + bn1 + pool ----
    a1 = conv_relu(x_ref[...], h1, ci1, w1_ref, b1_ref)        # (N*28, 28*8)
    a1 = batchnorm(a1, s1_ref, st1_ref, g1_ref, be1_ref)
    p1 = maxpool(a1, pe1_ref, po1_ref, re1_ref, ro1_ref)       # (N*14, 14*8)

    # ---- layer 2: conv2 + relu + bn2 + pool ----
    a2 = conv_relu(p1, h2, ci2, w2_ref, b2_ref)                # (N*14, 14*16)
    a2 = batchnorm(a2, s2_ref, st2_ref, g2_ref, be2_ref)
    p2 = maxpool(a2, pe2_ref, po2_ref, re2_ref, ro2_ref)       # (7*N, 7*16), rows (y, n)

    # ---- fc: lane-concat the per-y row groups -> (N, 7*7*16), one matmul ----
    flat = jnp.concatenate(
        [p2[y * n_imgs:(y + 1) * n_imgs, :] for y in range(h3)], axis=-1)
    out_ref[...] = (jnp.dot(flat, fcw_ref[...], preferred_element_type=f32)
                    + fcb_ref[...])                            # (N, 128) full-lane


# ---------------------------------------------------------------------------
# Wrapper-side constant builders (all plain XLA, folded under jit).
# ---------------------------------------------------------------------------
def _conv_band_matrix(w_hwio, width):
    """Fold a (3,3,Ci,Co) conv kernel into a banded (3*(W+2)*Ci, W*Co) matrix
    mapping W-padded rows with lanes (x_pad, ci) to outputs with lanes (x, co)."""
    kh, kw, ci, co = w_hwio.shape
    wp = width + 2
    eyes = jnp.stack(
        [jnp.eye(wp, width, k=-kx, dtype=w_hwio.dtype) for kx in range(kw)])
    big = jnp.einsum("kpx,dkio->dpixo", eyes, w_hwio)       # (3, Wp, Ci, W, Co)
    return big.reshape(kh * wp * ci, width * co)


def _lane_tile(vec, reps):
    """(C,) per-channel vector -> (1, reps*C) lane vector (layout x*C + c)."""
    return jnp.tile(vec.reshape(1, -1), (1, reps))


def _channel_selectors(width, chans):
    """S: (W*C, C) sums same-channel lanes; St = S.T broadcasts them back."""
    s = jnp.tile(jnp.eye(chans, dtype=jnp.float32), (width, 1))
    return s, s.T


def _pool_selectors(width, chans, in_rows, even_src_rows):
    """0/1 selector matrices for a 2x2/2 max pool in (rows, x*C+c) layout."""
    eye_w = jnp.eye(width, dtype=jnp.float32)
    eye_c = jnp.eye(chans, dtype=jnp.float32)
    pe = jnp.kron(eye_w[:, 0::2], eye_c)                     # picks even x blocks
    po = jnp.kron(eye_w[:, 1::2], eye_c)                     # picks odd  x blocks
    cols = jnp.arange(in_rows)
    re = (even_src_rows[:, None] == cols[None, :]).astype(jnp.float32)
    ro = ((even_src_rows + 1)[:, None] == cols[None, :]).astype(jnp.float32)
    return pe, po, re, ro


def cnn_pallas_call(x_nhwc, params, eps=1e-5):
    n, h, w, ci = x_nhwc.shape
    co1 = params["w1"].shape[-1]
    co2 = params["w2"].shape[-1]
    ncls = params["fcw"].shape[-1]
    h2, w2 = h // 2, w // 2
    h3, w3 = h // 4, w // 4
    f32 = jnp.float32

    # Input rows (n, y), lanes (x, ci): a free HBM-side reshape.
    x2d = x_nhwc.reshape(n * h, w * ci)

    w1big = _conv_band_matrix(params["w1"], w)               # (90, 224)
    w2big = _conv_band_matrix(params["w2"], w2)              # (384, 224)
    b1l = _lane_tile(params["b1"], w)
    g1l = _lane_tile(params["g1"], w)
    be1l = _lane_tile(params["be1"], w)
    b2l = _lane_tile(params["b2"], w2)
    g2l = _lane_tile(params["g2"], w2)
    be2l = _lane_tile(params["be2"], w2)
    s1, st1 = _channel_selectors(w, co1)
    s2, st2 = _channel_selectors(w2, co2)

    # Pool 1 keeps image-major rows: out row r' = n*(h/2)+y'  <-  in row 2*r'.
    pe1, po1, re1, ro1 = _pool_selectors(w, co1, n * h, 2 * jnp.arange(n * h2))
    # Pool 2 emits y-major rows (y', n) so the FC flatten is a pure lane concat.
    q = jnp.arange(n * h3)
    src2 = 2 * ((q % n) * h3 + q // n)
    pe2, po2, re2, ro2 = _pool_selectors(w2, co2, n * h2, src2)

    # FC weight: torch flatten order (c, y, x) -> kernel order (y, x, c);
    # outputs padded to a full 128-lane slab (sliced back below).
    fcw = jnp.transpose(params["fcw"].reshape(co2, h3, w3, ncls), (1, 2, 0, 3))
    fcw = fcw.reshape(h3 * w3 * co2, ncls)
    fcw = jnp.pad(fcw, ((0, 0), (0, _LANES - ncls)))
    fcb = jnp.pad(params["fcb"].reshape(1, ncls), ((0, 0), (0, _LANES - ncls)))

    kernel = functools.partial(
        _cnn_kernel, n_imgs=n, h1=h, ci1=ci, h2=h2, ci2=co1, h3=h3, eps=eps)

    out = pl.pallas_call(
        kernel,
        out_shape=jax.ShapeDtypeStruct((n, _LANES), f32),
        in_specs=[_VMEM] * 23,
        out_specs=_VMEM,
        compiler_params=pltpu.CompilerParams(vmem_limit_bytes=32 * 1024 * 1024),
    )(x2d, w1big, b1l, g1l, be1l, s1, st1, pe1, po1, re1, ro1,
      w2big, b2l, g2l, be2l, s2, st2, pe2, po2, re2, ro2, fcw, fcb)
    return out[:, :ncls]


@jax.jit
def cnn_forward(x_nchw, params):
    # NCHW (PyTorch) -> NHWC, then one fused VMEM-resident Pallas kernel.
    # TODO(synk): BatchNorm running-stat updates (training-mode side effect)
    # are not modeled; they do not change the forward output.
    # TODO(synk): at realistic batch sizes, add a "parallel" batch grid axis
    # (v7x second TensorCore) with a cross-core BN-stat reduction; at N=2 the
    # whole forward fits one core's VMEM, so it is omitted here.
    x = jnp.transpose(x_nchw.astype(jnp.float32), (0, 2, 3, 1))
    return cnn_pallas_call(x, params)


# ---------------------------------------------------------------------------
# Parameters + pure-JAX reference
# ---------------------------------------------------------------------------
def init_params(key, in_channels=1, num_classes=10):
    k1, k2, k3, k4, k5, k6 = jax.random.split(key, 6)
    p = {}
    p["w1"] = 0.1 * jax.random.normal(k1, (3, 3, in_channels, 8), jnp.float32)
    p["b1"] = 0.1 * jax.random.normal(k2, (8,), jnp.float32)
    p["g1"] = jnp.ones((8,), jnp.float32)     # BatchNorm2d default weight
    p["be1"] = jnp.zeros((8,), jnp.float32)   # BatchNorm2d default bias
    p["w2"] = 0.1 * jax.random.normal(k3, (3, 3, 8, 16), jnp.float32)
    p["b2"] = 0.1 * jax.random.normal(k4, (16,), jnp.float32)
    p["g2"] = jnp.ones((16,), jnp.float32)
    p["be2"] = jnp.zeros((16,), jnp.float32)
    p["fcw"] = 0.05 * jax.random.normal(k5, (16 * 7 * 7, num_classes), jnp.float32)
    p["fcb"] = 0.05 * jax.random.normal(k6, (num_classes,), jnp.float32)
    return p


def reference_forward(x_nchw, params, eps=1e-5):
    x = jnp.transpose(x_nchw.astype(jnp.float32), (0, 2, 3, 1))

    def conv(x, w, b):
        y = jax.lax.conv_general_dilated(
            x, w, window_strides=(1, 1), padding=((1, 1), (1, 1)),
            dimension_numbers=("NHWC", "HWIO", "NHWC"),
            precision=jax.lax.Precision.HIGHEST)
        return jnp.maximum(y + b, 0.0)

    def bn_pool(x, g, bta):
        mean = jnp.mean(x, axis=(0, 1, 2), keepdims=True)
        var = jnp.mean((x - mean) ** 2, axis=(0, 1, 2), keepdims=True)
        y = (x - mean) * jax.lax.rsqrt(var + eps) * g + bta
        n, hh, ww, c = y.shape
        return y.reshape(n, hh // 2, 2, ww // 2, 2, c).max(axis=(2, 4))

    h1 = conv(x, params["w1"], params["b1"])
    p1 = bn_pool(h1, params["g1"], params["be1"])
    h2 = conv(p1, params["w2"], params["b2"])
    p2 = bn_pool(h2, params["g2"], params["be2"])
    flat = jnp.transpose(p2, (0, 3, 1, 2)).reshape(p2.shape[0], -1)
    return (jnp.dot(flat, params["fcw"], precision=jax.lax.Precision.HIGHEST)
            + params["fcb"])


if __name__ == "__main__":
    key = jax.random.PRNGKey(0)
    kx, kp = jax.random.split(key)
    # PyTorch-style NCHW input; fc1 = Linear(16*7*7, 10) implies 1x28x28 images.
    x = jax.random.normal(kx, (2, 1, 28, 28), jnp.float32)
    params = init_params(kp, in_channels=1, num_classes=10)

    out = jax.block_until_ready(cnn_forward(x, params))
    ref = reference_forward(x, params)

    assert out.shape == (2, 10), out.shape
    err = float(jnp.max(jnp.abs(out - ref)))
    assert jnp.allclose(out, ref, atol=2e-2, rtol=2e-2), (
        f"Pallas result mismatch vs reference (max abs err {err})")
    print("KERNEL_OK")
</pallas_src>

<mosaic_0001>
module attributes {stable_mosaic.version = 11 : i64} {
  func.func @_cnn_kernel(%arg0: memref<56x28xf32, #tpu.memory_space<vmem>>, %arg1: memref<90x224xf32, #tpu.memory_space<vmem>>, %arg2: memref<1x224xf32, #tpu.memory_space<vmem>>, %arg3: memref<1x224xf32, #tpu.memory_space<vmem>>, %arg4: memref<1x224xf32, #tpu.memory_space<vmem>>, %arg5: memref<224x8xf32, #tpu.memory_space<vmem>>, %arg6: memref<8x224xf32, #tpu.memory_space<vmem>>, %arg7: memref<224x112xf32, #tpu.memory_space<vmem>>, %arg8: memref<224x112xf32, #tpu.memory_space<vmem>>, %arg9: memref<28x56xf32, #tpu.memory_space<vmem>>, %arg10: memref<28x56xf32, #tpu.memory_space<vmem>>, %arg11: memref<384x224xf32, #tpu.memory_space<vmem>>, %arg12: memref<1x224xf32, #tpu.memory_space<vmem>>, %arg13: memref<1x224xf32, #tpu.memory_space<vmem>>, %arg14: memref<1x224xf32, #tpu.memory_space<vmem>>, %arg15: memref<224x16xf32, #tpu.memory_space<vmem>>, %arg16: memref<16x224xf32, #tpu.memory_space<vmem>>, %arg17: memref<224x112xf32, #tpu.memory_space<vmem>>, %arg18: memref<224x112xf32, #tpu.memory_space<vmem>>, %arg19: memref<14x28xf32, #tpu.memory_space<vmem>>, %arg20: memref<14x28xf32, #tpu.memory_space<vmem>>, %arg21: memref<784x128xf32, #tpu.memory_space<vmem>>, %arg22: memref<1x128xf32, #tpu.memory_space<vmem>>, %arg23: memref<2x128xf32, #tpu.memory_space<vmem>>) attributes {dimension_semantics = [], scalar_prefetch = 0 : i64, scratch_operands = 0 : i64, tpu.core_type = #tpu.core_type<tc>} {
    %c0 = arith.constant 0 : index
    %c0_0 = arith.constant 0 : index
    %0 = vector.load %arg0[%c0, %c0_0] : memref<56x28xf32, #tpu.memory_space<vmem>>, vector<56x28xf32>
    %cst = arith.constant 0.000000e+00 : f32
    %1 = vector.broadcast %cst : f32 to vector<56x1xf32>
    %2 = tpu.concatenate %1, %0, %1 in 1 : vector<56x1xf32>, vector<56x28xf32>, vector<56x1xf32> -> vector<56x30xf32>
    %cst_1 = arith.constant 0.000000e+00 : f32
    %3 = vector.broadcast %cst_1 : f32 to vector<1x30xf32>
    %4 = vector.extract_strided_slice %2 {offsets = [0, 0], sizes = [27, 30], strides = [1, 1]} : vector<56x30xf32> to vector<27x30xf32>
    %5 = vector.extract_strided_slice %2 {offsets = [28, 0], sizes = [27, 30], strides = [1, 1]} : vector<56x30xf32> to vector<27x30xf32>
    %6 = tpu.concatenate %3, %4, %3, %5 in 0 : vector<1x30xf32>, vector<27x30xf32>, vector<1x30xf32>, vector<27x30xf32> -> vector<56x30xf32>
    %7 = vector.extract_strided_slice %2 {offsets = [1, 0], sizes = [27, 30], strides = [1, 1]} : vector<56x30xf32> to vector<27x30xf32>
    %8 = vector.extract_strided_slice %2 {offsets = [29, 0], sizes = [27, 30], strides = [1, 1]} : vector<56x30xf32> to vector<27x30xf32>
    %9 = tpu.concatenate %7, %3, %8, %3 in 0 : vector<27x30xf32>, vector<1x30xf32>, vector<27x30xf32>, vector<1x30xf32> -> vector<56x30xf32>
    %10 = tpu.concatenate %6, %2, %9 in 1 : vector<56x30xf32>, vector<56x30xf32>, vector<56x30xf32> -> vector<56x90xf32>
    %c0_2 = arith.constant 0 : index
    %c0_3 = arith.constant 0 : index
    %11 = vector.load %arg1[%c0_2, %c0_3] : memref<90x224xf32, #tpu.memory_space<vmem>>, vector<90x224xf32>
    %cst_4 = arith.constant dense<0.000000e+00> : vector<56x224xf32>
    %12 = tpu.matmul %10, %11, %cst_4 {dimension_numbers = #tpu.dot_dimension_numbers<[1], [0], [0], [1], [0, 0, 1, 1], [], []>} : vector<56x90xf32>, vector<90x224xf32>, vector<56x224xf32> -> vector<56x224xf32>
    %c0_5 = arith.constant 0 : index
    %c0_6 = arith.constant 0 : index
    %13 = vector.load %arg2[%c0_5, %c0_6] : memref<1x224xf32, #tpu.memory_space<vmem>>, vector<1x224xf32>
    %14 = vector.broadcast %13 : vector<1x224xf32> to vector<56x224xf32>
    %15 = arith.addf %12, %14 : vector<56x224xf32>
    %cst_7 = arith.constant 0.000000e+00 : f32
    %16 = vector.broadcast %cst_7 : f32 to vector<56x224xf32>
    %17 = arith.maximumf %15, %16 : vector<56x224xf32>
    %cst_8 = arith.constant dense<0.000000e+00> : vector<224xf32>
    %18 = vector.multi_reduction <add>, %17, %cst_8 [0] : vector<56x224xf32> to vector<224xf32>
    %19 = vector.shape_cast %18 : vector<224xf32> to vector<1x224xf32>
    %c0_9 = arith.constant 0 : index
    %c0_10 = arith.constant 0 : index
    %20 = vector.load %arg5[%c0_9, %c0_10] : memref<224x8xf32, #tpu.memory_space<vmem>>, vector<224x8xf32>
    %cst_11 = arith.constant dense<0.000000e+00> : vector<1x8xf32>
    %21 = tpu.matmul %19, %20, %cst_11 {dimension_numbers = #tpu.dot_dimension_numbers<[1], [0], [0], [1], [0, 0, 1, 1], [], []>} : vector<1x224xf32>, vector<224x8xf32>, vector<1x8xf32> -> vector<1x8xf32>
    %cst_12 = arith.constant 1.568000e+03 : f32
    %22 = vector.broadcast %cst_12 : f32 to vector<1x8xf32>
    %23 = arith.divf %21, %22 : vector<1x8xf32>
    %c0_13 = arith.constant 0 : index
    %c0_14 = arith.constant 0 : index
    %24 = vector.load %arg6[%c0_13, %c0_14] : memref<8x224xf32, #tpu.memory_space<vmem>>, vector<8x224xf32>
    %cst_15 = arith.constant dense<0.000000e+00> : vector<1x224xf32>
    %25 = tpu.matmul %23, %24, %cst_15 {dimension_numbers = #tpu.dot_dimension_numbers<[1], [0], [0], [1], [0, 0, 1, 1], [], []>} : vector<1x8xf32>, vector<8x224xf32>, vector<1x224xf32> -> vector<1x224xf32>
    %26 = vector.broadcast %25 : vector<1x224xf32> to vector<56x224xf32>
    %27 = arith.subf %17, %26 : vector<56x224xf32>
    %28 = arith.mulf %27, %27 : vector<56x224xf32>
    %cst_16 = arith.constant dense<0.000000e+00> : vector<224xf32>
    %29 = vector.multi_reduction <add>, %28, %cst_16 [0] : vector<56x224xf32> to vector<224xf32>
    %30 = vector.shape_cast %29 : vector<224xf32> to vector<1x224xf32>
    %c0_17 = arith.constant 0 : index
    %c0_18 = arith.constant 0 : index
    %31 = vector.load %arg5[%c0_17, %c0_18] : memref<224x8xf32, #tpu.memory_space<vmem>>, vector<224x8xf32>
    %cst_19 = arith.constant dense<0.000000e+00> : vector<1x8xf32>
    %32 = tpu.matmul %30, %31, %cst_19 {dimension_numbers = #tpu.dot_dimension_numbers<[1], [0], [0], [1], [0, 0, 1, 1], [], []>} : vector<1x224xf32>, vector<224x8xf32>, vector<1x8xf32> -> vector<1x8xf32>
    %cst_20 = arith.constant 1.568000e+03 : f32
    %33 = vector.broadcast %cst_20 : f32 to vector<1x8xf32>
    %34 = arith.divf %32, %33 : vector<1x8xf32>
    %cst_21 = arith.constant 9.99999974E-6 : f32
    %35 = vector.broadcast %cst_21 : f32 to vector<1x8xf32>
    %36 = arith.addf %34, %35 : vector<1x8xf32>
    %37 = math.rsqrt %36 : vector<1x8xf32>
    %c0_22 = arith.constant 0 : index
    %c0_23 = arith.constant 0 : index
    %38 = vector.load %arg6[%c0_22, %c0_23] : memref<8x224xf32, #tpu.memory_space<vmem>>, vector<8x224xf32>
    %cst_24 = arith.constant dense<0.000000e+00> : vector<1x224xf32>
    %39 = tpu.matmul %37, %38, %cst_24 {dimension_numbers = #tpu.dot_dimension_numbers<[1], [0], [0], [1], [0, 0, 1, 1], [], []>} : vector<1x8xf32>, vector<8x224xf32>, vector<1x224xf32> -> vector<1x224xf32>
    %c0_25 = arith.constant 0 : index
    %c0_26 = arith.constant 0 : index
    %40 = vector.load %arg3[%c0_25, %c0_26] : memref<1x224xf32, #tpu.memory_space<vmem>>, vector<1x224xf32>
    %41 = arith.mulf %39, %40 : vector<1x224xf32>
    %42 = vector.broadcast %41 : vector<1x224xf32> to vector<56x224xf32>
    %43 = arith.mulf %27, %42 : vector<56x224xf32>
    %c0_27 = arith.constant 0 : index
    %c0_28 = arith.constant 0 : index
    %44 = vector.load %arg4[%c0_27, %c0_28] : memref<1x224xf32, #tpu.memory_space<vmem>>, vector<1x224xf32>
    %45 = vector.broadcast %44 : vector<1x224xf32> to vector<56x224xf32>
    %46 = arith.addf %43, %45 : vector<56x224xf32>
    %c0_29 = arith.constant 0 : index
    %c0_30 = arith.constant 0 : index
    %47 = vector.load %arg7[%c0_29, %c0_30] : memref<224x112xf32, #tpu.memory_space<vmem>>, vector<224x112xf32>
    %cst_31 = arith.constant dense<0.000000e+00> : vector<56x112xf32>
    %48 = tpu.matmul %46, %47, %cst_31 {dimension_numbers = #tpu.dot_dimension_numbers<[1], [0], [0], [1], [0, 0, 1, 1], [], []>} : vector<56x224xf32>, vector<224x112xf32>, vector<56x112xf32> -> vector<56x112xf32>
    %c0_32 = arith.constant 0 : index
    %c0_33 = arith.constant 0 : index
    %49 = vector.load %arg8[%c0_32, %c0_33] : memref<224x112xf32, #tpu.memory_space<vmem>>, vector<224x112xf32>
    %cst_34 = arith.constant dense<0.000000e+00> : vector<56x112xf32>
    %50 = tpu.matmul %46, %49, %cst_34 {dimension_numbers = #tpu.dot_dimension_numbers<[1], [0], [0], [1], [0, 0, 1, 1], [], []>} : vector<56x224xf32>, vector<224x112xf32>, vector<56x112xf32> -> vector<56x112xf32>
    %51 = arith.maximumf %48, %50 : vector<56x112xf32>
    %c0_35 = arith.constant 0 : index
    %c0_36 = arith.constant 0 : index
    %52 = vector.load %arg9[%c0_35, %c0_36] : memref<28x56xf32, #tpu.memory_space<vmem>>, vector<28x56xf32>
    %cst_37 = arith.constant dense<0.000000e+00> : vector<28x112xf32>
    %53 = tpu.matmul %52, %51, %cst_37 {dimension_numbers = #tpu.dot_dimension_numbers<[1], [0], [0], [1], [0, 0, 1, 1], [], []>} : vector<28x56xf32>, vector<56x112xf32>, vector<28x112xf32> -> vector<28x112xf32>
    %c0_38 = arith.constant 0 : index
    %c0_39 = arith.constant 0 : index
    %54 = vector.load %arg10[%c0_38, %c0_39] : memref<28x56xf32, #tpu.memory_space<vmem>>, vector<28x56xf32>
    %cst_40 = arith.constant dense<0.000000e+00> : vector<28x112xf32>
    %55 = tpu.matmul %54, %51, %cst_40 {dimension_numbers = #tpu.dot_dimension_numbers<[1], [0], [0], [1], [0, 0, 1, 1], [], []>} : vector<28x56xf32>, vector<56x112xf32>, vector<28x112xf32> -> vector<28x112xf32>
    %56 = arith.maximumf %53, %55 : vector<28x112xf32>
    %cst_41 = arith.constant 0.000000e+00 : f32
    %57 = vector.broadcast %cst_41 : f32 to vector<28x8xf32>
    %58 = tpu.concatenate %57, %56, %57 in 1 : vector<28x8xf32>, vector<28x112xf32>, vector<28x8xf32> -> vector<28x128xf32>
    %cst_42 = arith.constant 0.000000e+00 : f32
    %59 = vector.broadcast %cst_42 : f32 to vector<1x128xf32>
    %60 = vector.extract_strided_slice %58 {offsets = [0, 0], sizes = [13, 128], strides = [1, 1]} : vector<28x128xf32> to vector<13x128xf32>
    %61 = vector.extract_strided_slice %58 {offsets = [14, 0], sizes = [13, 128], strides = [1, 1]} : vector<28x128xf32> to vector<13x128xf32>
    %62 = tpu.concatenate %59, %60, %59, %61 in 0 : vector<1x128xf32>, vector<13x128xf32>, vector<1x128xf32>, vector<13x128xf32> -> vector<28x128xf32>
    %63 = vector.extract_strided_slice %58 {offsets = [1, 0], sizes = [13, 128], strides = [1, 1]} : vector<28x128xf32> to vector<13x128xf32>
    %64 = vector.extract_strided_slice %58 {offsets = [15, 0], sizes = [13, 128], strides = [1, 1]} : vector<28x128xf32> to vector<13x128xf32>
    %65 = tpu.concatenate %63, %59, %64, %59 in 0 : vector<13x128xf32>, vector<1x128xf32>, vector<13x128xf32>, vector<1x128xf32> -> vector<28x128xf32>
    %66 = tpu.concatenate %62, %58, %65 in 1 : vector<28x128xf32>, vector<28x128xf32>, vector<28x128xf32> -> vector<28x384xf32>
    %c0_43 = arith.constant 0 : index
    %c0_44 = arith.constant 0 : index
    %67 = vector.load %arg11[%c0_43, %c0_44] : memref<384x224xf32, #tpu.memory_space<vmem>>, vector<384x224xf32>
    %cst_45 = arith.constant dense<0.000000e+00> : vector<28x224xf32>
    %68 = tpu.matmul %66, %67, %cst_45 {dimension_numbers = #tpu.dot_dimension_numbers<[1], [0], [0], [1], [0, 0, 1, 1], [], []>} : vector<28x384xf32>, vector<384x224xf32>, vector<28x224xf32> -> vector<28x224xf32>
    %c0_46 = arith.constant 0 : index
    %c0_47 = arith.constant 0 : index
    %69 = vector.load %arg12[%c0_46, %c0_47] : memref<1x224xf32, #tpu.memory_space<vmem>>, vector<1x224xf32>
    %70 = vector.broadcast %69 : vector<1x224xf32> to vector<28x224xf32>
    %71 = arith.addf %68, %70 : vector<28x224xf32>
    %cst_48 = arith.constant 0.000000e+00 : f32
    %72 = vector.broadcast %cst_48 : f32 to vector<28x224xf32>
    %73 = arith.maximumf %71, %72 : vector<28x224xf32>
    %cst_49 = arith.constant dense<0.000000e+00> : vector<224xf32>
    %74 = vector.multi_reduction <add>, %73, %cst_49 [0] : vector<28x224xf32> to vector<224xf32>
    %75 = vector.shape_cast %74 : vector<224xf32> to vector<1x224xf32>
    %c0_50 = arith.constant 0 : index
    %c0_51 = arith.constant 0 : index
    %76 = vector.load %arg15[%c0_50, %c0_51] : memref<224x16xf32, #tpu.memory_space<vmem>>, vector<224x16xf32>
    %cst_52 = arith.constant dense<0.000000e+00> : vector<1x16xf32>
    %77 = tpu.matmul %75, %76, %cst_52 {dimension_numbers = #tpu.dot_dimension_numbers<[1], [0], [0], [1], [0, 0, 1, 1], [], []>} : vector<1x224xf32>, vector<224x16xf32>, vector<1x16xf32> -> vector<1x16xf32>
    %cst_53 = arith.constant 3.920000e+02 : f32
    %78 = vector.broadcast %cst_53 : f32 to vector<1x16xf32>
    %79 = arith.divf %77, %78 : vector<1x16xf32>
    %c0_54 = arith.constant 0 : index
    %c0_55 = arith.constant 0 : index
    %80 = vector.load %arg16[%c0_54, %c0_55] : memref<16x224xf32, #tpu.memory_space<vmem>>, vector<16x224xf32>
    %cst_56 = arith.constant dense<0.000000e+00> : vector<1x224xf32>
    %81 = tpu.matmul %79, %80, %cst_56 {dimension_numbers = #tpu.dot_dimension_numbers<[1], [0], [0], [1], [0, 0, 1, 1], [], []>} : vector<1x16xf32>, vector<16x224xf32>, vector<1x224xf32> -> vector<1x224xf32>
    %82 = vector.broadcast %81 : vector<1x224xf32> to vector<28x224xf32>
    %83 = arith.subf %73, %82 : vector<28x224xf32>
    %84 = arith.mulf %83, %83 : vector<28x224xf32>
    %cst_57 = arith.constant dense<0.000000e+00> : vector<224xf32>
    %85 = vector.multi_reduction <add>, %84, %cst_57 [0] : vector<28x224xf32> to vector<224xf32>
    %86 = vector.shape_cast %85 : vector<224xf32> to vector<1x224xf32>
    %c0_58 = arith.constant 0 : index
    %c0_59 = arith.constant 0 : index
    %87 = vector.load %arg15[%c0_58, %c0_59] : memref<224x16xf32, #tpu.memory_space<vmem>>, vector<224x16xf32>
    %cst_60 = arith.constant dense<0.000000e+00> : vector<1x16xf32>
    %88 = tpu.matmul %86, %87, %cst_60 {dimension_numbers = #tpu.dot_dimension_numbers<[1], [0], [0], [1], [0, 0, 1, 1], [], []>} : vector<1x224xf32>, vector<224x16xf32>, vector<1x16xf32> -> vector<1x16xf32>
    %cst_61 = arith.constant 3.920000e+02 : f32
    %89 = vector.broadcast %cst_61 : f32 to vector<1x16xf32>
    %90 = arith.divf %88, %89 : vector<1x16xf32>
    %cst_62 = arith.constant 9.99999974E-6 : f32
    %91 = vector.broadcast %cst_62 : f32 to vector<1x16xf32>
    %92 = arith.addf %90, %91 : vector<1x16xf32>
    %93 = math.rsqrt %92 : vector<1x16xf32>
    %c0_63 = arith.constant 0 : index
    %c0_64 = arith.constant 0 : index
    %94 = vector.load %arg16[%c0_63, %c0_64] : memref<16x224xf32, #tpu.memory_space<vmem>>, vector<16x224xf32>
    %cst_65 = arith.constant dense<0.000000e+00> : vector<1x224xf32>
    %95 = tpu.matmul %93, %94, %cst_65 {dimension_numbers = #tpu.dot_dimension_numbers<[1], [0], [0], [1], [0, 0, 1, 1], [], []>} : vector<1x16xf32>, vector<16x224xf32>, vector<1x224xf32> -> vector<1x224xf32>
    %c0_66 = arith.constant 0 : index
    %c0_67 = arith.constant 0 : index
    %96 = vector.load %arg13[%c0_66, %c0_67] : memref<1x224xf32, #tpu.memory_space<vmem>>, vector<1x224xf32>
    %97 = arith.mulf %95, %96 : vector<1x224xf32>
    %98 = vector.broadcast %97 : vector<1x224xf32> to vector<28x224xf32>
    %99 = arith.mulf %83, %98 : vector<28x224xf32>
    %c0_68 = arith.constant 0 : index
    %c0_69 = arith.constant 0 : index
    %100 = vector.load %arg14[%c0_68, %c0_69] : memref<1x224xf32, #tpu.memory_space<vmem>>, vector<1x224xf32>
    %101 = vector.broadcast %100 : vector<1x224xf32> to vector<28x224xf32>
    %102 = arith.addf %99, %101 : vector<28x224xf32>
    %c0_70 = arith.constant 0 : index
    %c0_71 = arith.constant 0 : index
    %103 = vector.load %arg17[%c0_70, %c0_71] : memref<224x112xf32, #tpu.memory_space<vmem>>, vector<224x112xf32>
    %cst_72 = arith.constant dense<0.000000e+00> : vector<28x112xf32>
    %104 = tpu.matmul %102, %103, %cst_72 {dimension_numbers = #tpu.dot_dimension_numbers<[1], [0], [0], [1], [0, 0, 1, 1], [], []>} : vector<28x224xf32>, vector<224x112xf32>, vector<28x112xf32> -> vector<28x112xf32>
    %c0_73 = arith.constant 0 : index
    %c0_74 = arith.constant 0 : index
    %105 = vector.load %arg18[%c0_73, %c0_74] : memref<224x112xf32, #tpu.memory_space<vmem>>, vector<224x112xf32>
    %cst_75 = arith.constant dense<0.000000e+00> : vector<28x112xf32>
    %106 = tpu.matmul %102, %105, %cst_75 {dimension_numbers = #tpu.dot_dimension_numbers<[1], [0], [0], [1], [0, 0, 1, 1], [], []>} : vector<28x224xf32>, vector<224x112xf32>, vector<28x112xf32> -> vector<28x112xf32>
    %107 = arith.maximumf %104, %106 : vector<28x112xf32>
    %c0_76 = arith.constant 0 : index
    %c0_77 = arith.constant 0 : index
    %108 = vector.load %arg19[%c0_76, %c0_77] : memref<14x28xf32, #tpu.memory_space<vmem>>, vector<14x28xf32>
    %cst_78 = arith.constant dense<0.000000e+00> : vector<14x112xf32>
    %109 = tpu.matmul %108, %107, %cst_78 {dimension_numbers = #tpu.dot_dimension_numbers<[1], [0], [0], [1], [0, 0, 1, 1], [], []>} : vector<14x28xf32>, vector<28x112xf32>, vector<14x112xf32> -> vector<14x112xf32>
    %c0_79 = arith.constant 0 : index
    %c0_80 = arith.constant 0 : index
    %110 = vector.load %arg20[%c0_79, %c0_80] : memref<14x28xf32, #tpu.memory_space<vmem>>, vector<14x28xf32>
    %cst_81 = arith.constant dense<0.000000e+00> : vector<14x112xf32>
    %111 = tpu.matmul %110, %107, %cst_81 {dimension_numbers = #tpu.dot_dimension_numbers<[1], [0], [0], [1], [0, 0, 1, 1], [], []>} : vector<14x28xf32>, vector<28x112xf32>, vector<14x112xf32> -> vector<14x112xf32>
    %112 = arith.maximumf %109, %111 : vector<14x112xf32>
    %113 = vector.extract_strided_slice %112 {offsets = [0, 0], sizes = [2, 112], strides = [1, 1]} : vector<14x112xf32> to vector<2x112xf32>
    %114 = vector.extract_strided_slice %112 {offsets = [2, 0], sizes = [2, 112], strides = [1, 1]} : vector<14x112xf32> to vector<2x112xf32>
    %115 = vector.extract_strided_slice %112 {offsets = [4, 0], sizes = [2, 112], strides = [1, 1]} : vector<14x112xf32> to vector<2x112xf32>
    %116 = vector.extract_strided_slice %112 {offsets = [6, 0], sizes = [2, 112], strides = [1, 1]} : vector<14x112xf32> to vector<2x112xf32>
    %117 = vector.extract_strided_slice %112 {offsets = [8, 0], sizes = [2, 112], strides = [1, 1]} : vector<14x112xf32> to vector<2x112xf32>
    %118 = vector.extract_strided_slice %112 {offsets = [10, 0], sizes = [2, 112], strides = [1, 1]} : vector<14x112xf32> to vector<2x112xf32>
    %119 = vector.extract_strided_slice %112 {offsets = [12, 0], sizes = [2, 112], strides = [1, 1]} : vector<14x112xf32> to vector<2x112xf32>
    %120 = tpu.concatenate %113, %114, %115, %116, %117, %118, %119 in 1 : vector<2x112xf32>, vector<2x112xf32>, vector<2x112xf32>, vector<2x112xf32>, vector<2x112xf32>, vector<2x112xf32>, vector<2x112xf32> -> vector<2x784xf32>
    %c0_82 = arith.constant 0 : index
    %c0_83 = arith.constant 0 : index
    %121 = vector.load %arg21[%c0_82, %c0_83] : memref<784x128xf32, #tpu.memory_space<vmem>>, vector<784x128xf32>
    %cst_84 = arith.constant dense<0.000000e+00> : vector<2x128xf32>
    %122 = tpu.matmul %120, %121, %cst_84 {dimension_numbers = #tpu.dot_dimension_numbers<[1], [0], [0], [1], [0, 0, 1, 1], [], []>} : vector<2x784xf32>, vector<784x128xf32>, vector<2x128xf32> -> vector<2x128xf32>
    %c0_85 = arith.constant 0 : index
    %c0_86 = arith.constant 0 : index
    %123 = vector.load %arg22[%c0_85, %c0_86] : memref<1x128xf32, #tpu.memory_space<vmem>>, vector<1x128xf32>
    %124 = vector.broadcast %123 : vector<1x128xf32> to vector<2x128xf32>
    %125 = arith.addf %122, %124 : vector<2x128xf32>
    %c0_87 = arith.constant 0 : index
    %c0_88 = arith.constant 0 : index
    %126 = vector.load %arg23[%c0_87, %c0_88] : memref<2x128xf32, #tpu.memory_space<vmem>>, vector<2x128xf32>
    tpu.vector_store %arg23[%c0_87, %c0_88], %125 {strides = array<i32>} : memref<2x128xf32, #tpu.memory_space<vmem>>, vector<2x128xf32>,
    return
  }
}

</mosaic_0001>

<bundles_post_ra>
// kernel: tile.62
= control target key start
LH: loop header
LB: loop body
LE: loop exit
PB: predicated region body
PF: predicated region fallthrough
CT: control target
= control target key end

     0   :  { %vm55_vm0 = vcmask 1041409   ;;  %vm59_vm1 = vcmask 1042434   ;;  %vm63_vm2 = vcmask 1043459   ;;  %vm67_vm3 = vcmask 1044484   ;;  %s1191_s25 = smov 104   ;;  %s1192_s7 = smov 120   ;;  %s2162_s0 = inlined_call_operand.vmem [shape: f32[28,8,8], index: 0, kind: input, shape index: {}]   ;;  %s2163_s1 = inlined_call_operand.vmem [shape: f32[224,8], index: 1, kind: output, shape index: {}]  }
   0x1   :  { %vm71_vm4 = vcmask 1045509   ;;  %v973_v0 = vld [vmem:[%s2162_s0 + $0xd] sm:$0x1]   ;;  %vm75_vm5 = vcmask 1046534   ;;  %vm79_vm6 = vcmask 1047559   ;;  %s1193_s11 = smov 96  }
   0x2   :  { %v974_v1 = vld [vmem:[%s2162_s0 + $0x2c] sm:$0x2]   ;;  %v957_v9 = vld [vmem:[%s2162_s0 + $0xf] sm:$0x1]   ;;  %v981_v23 = vld [vmem:[%s2162_s0 + $0xc] sm:$0x1]  }
   0x3   :  { %v975_v2 = vld [vmem:[%s2162_s0 + $0x4b] sm:$0x4]   ;;  %v124_v4 = vsel %vm55_vm0, %v974_v1, %v973_v0  ;;  %v958_v10 = vld [vmem:[%s2162_s0 + $0x2e] sm:$0x2]   ;;  %v982_v24 = vld [vmem:[%s2162_s0 + $0x2b] sm:$0x2]  }
   0x4   :  { %v976_v3 = vld [vmem:[%s2162_s0 + $0x6a] sm:$0x8]   ;;  %v128_v7 = vsel %vm59_vm1, %v975_v2, %v124_v4  ;;  %v56_v12 = vsel %vm55_vm0, %v958_v10, %v957_v9  ;;  %v959_v13 = vld [vmem:[%s2162_s0 + $0x4d] sm:$0x4]   ;;  %v983_v25 = vld [vmem:[%s2162_s0 + $0x4a] sm:$0x4]   ;;  %v158_v29 = vsel %vm55_vm0, %v982_v24, %v981_v23 }
   0x5   :  { %v977_v5 = vld [vmem:[%s2162_s0 + $0x89] sm:$0x10]   ;;  %v132_v11 = vsel %vm63_vm2, %v976_v3, %v128_v7  ;;  %v960_v14 = vld [vmem:[%s2162_s0 + $0x6c] sm:$0x8]   ;;  %v60_v18 = vsel %vm59_vm1, %v959_v13, %v56_v12  ;;  %v984_v30 = vld [vmem:[%s2162_s0 + $0x69] sm:$0x8]   ;;  %v162_v34 = vsel %vm59_vm1, %v983_v25, %v158_v29 }
   0x6   :  { %v978_v6 = vld [vmem:[%s2162_s0 + $0xa8] sm:$0x20]   ;;  %v961_v15 = vld [vmem:[%s2162_s0 + $0x8b] sm:$0x10]   ;;  %v136_v16 = vsel %vm67_vm3, %v977_v5, %v132_v11  ;;  %v64_v22 = vsel %vm63_vm2, %v960_v14, %v60_v18  ;;  %v985_v31 = vld [vmem:[%s2162_s0 + $0x88] sm:$0x10]   ;;  %v166_v39 = vsel %vm63_vm2, %v984_v30, %v162_v34 }
   0x7   :  { %v979_v8 = vld [vmem:[%s2162_s0 + $0xc7] sm:$0x40]   ;;  %v962_v19 = vld [vmem:[%s2162_s0 + $0xaa] sm:$0x20]   ;;  %v140_v21 = vsel %vm71_vm4, %v978_v6, %v136_v16  ;;  %v68_v27 = vsel %vm67_vm3, %v961_v15, %v64_v22  ;;  %v986_v35 = vld [vmem:[%s2162_s0 + $0xa7] sm:$0x20]   ;;  %v170_v44 = vsel %vm67_vm3, %v985_v31, %v166_v39 }
   0x8   :  { %v980_v17 = vld [vmem:[%s2162_s0 + $0xe6] sm:$0x80]   ;;  %v963_v20 = vld [vmem:[%s2162_s0 + $0xc9] sm:$0x40]   ;;  %v144_v26 = vsel %vm75_vm5, %v979_v8, %v140_v21  ;;  %v72_v33 = vsel %vm71_vm4, %v962_v19, %v68_v27  ;;  %v987_v36 = vld [vmem:[%s2162_s0 + $0xc6] sm:$0x40]   ;;  %v174_v48 = vsel %vm71_vm4, %v986_v35, %v170_v44 }
   0x9   :  { %v964_v28 = vld [vmem:[%s2162_s0 + $0xe8] sm:$0x80]   ;;  %v148_v32 = vsel %vm79_vm6, %v980_v17, %v144_v26  ;;  %v965_v37 = vld [vmem:[%s2162_s0 + $0xe] sm:$0x1]   ;;  %v76_v38 = vsel %vm75_vm5, %v963_v20, %v72_v33  ;;  %v988_v45 = vld [vmem:[%s2162_s0 + $0xe5] sm:$0x80]   ;;  %v178_v53 = vsel %vm75_vm5, %v987_v36, %v174_v48 }
   0xa   :  { %149 = vrot.lane.b32.xlu1 %v148_v32, %s1191_s25  ;;  %v966_v40 = vld [vmem:[%s2162_s0 + $0x2d] sm:$0x2]   ;;  %v80_v43 = vsel %vm79_vm6, %v964_v28, %v76_v38  ;;  %v1014_v52 = vld [vmem:[%s2162_s0 + $0x1a] sm:$0x1]   ;;  %v182_v62 = vsel %vm79_vm6, %v988_v45, %v178_v53  ;;  %v1006_v2 = vld [vmem:[%s2162_s0 + $0xa] sm:$0x1]  }
   0xb   :  { %v967_v41 = vld [vmem:[%s2162_s0 + $0x4c] sm:$0x4]   ;;  %v90_v46 = vsel %vm55_vm0, %v966_v40, %v965_v37  ;;  %81 = vrot.lane.b32.xlu0 %v80_v43, %s1192_s7  ;;  %v1015_v55 = vld [vmem:[%s2162_s0 + $0x39] sm:$0x2]   ;;  %v1007_v3 = vld [vmem:[%s2162_s0 + $0x29] sm:$0x2]  }
   0xc   :  { %v968_v42 = vld [vmem:[%s2162_s0 + $0x6b] sm:$0x8]   ;;  %v94_v49 = vsel %vm59_vm1, %v967_v41, %v90_v46  ;;  %v1016_v56 = vld [vmem:[%s2162_s0 + $0x58] sm:$0x4]   ;;  %v295_v60 = vsel %vm55_vm0, %v1015_v55, %v1014_v52  ;;  %v261_v6 = vsel %vm55_vm0, %v1007_v3, %v1006_v2  ;;  %v1008_v7 = vld [vmem:[%s2162_s0 + $0x48] sm:$0x4]  }
   0xd   :  { %v969_v47 = vld [vmem:[%s2162_s0 + $0x8a] sm:$0x10]   ;;  %v98_v54 = vsel %vm63_vm2, %v968_v42, %v94_v49  ;;  %v1017_v57 = vld [vmem:[%s2162_s0 + $0x77] sm:$0x8]   ;;  %v299_v0 = vsel %vm59_vm1, %v1016_v56, %v295_v60  ;;  %v1009_v8 = vld [vmem:[%s2162_s0 + $0x67] sm:$0x8]   ;;  %v265_v13 = vsel %vm59_vm1, %v1008_v7, %v261_v6 }
   0xe   :  { %v970_v50 = vld [vmem:[%s2162_s0 + $0xa9] sm:$0x20]   ;;  %v102_v58 = vsel %vm67_vm3, %v969_v47, %v98_v54  ;;  %v1018_v61 = vld [vmem:[%s2162_s0 + $0x96] sm:$0x10]   ;;  %v303_v5 = vsel %vm63_vm2, %v1017_v57, %v299_v0  ;;  %v1010_v9 = vld [vmem:[%s2162_s0 + $0x86] sm:$0x10]   ;;  %v269_v16 = vsel %vm63_vm2, %v1009_v8, %v265_v13 }
   0xf   :  { %v971_v51 = vld [vmem:[%s2162_s0 + $0xc8] sm:$0x40]   ;;  %v106_v63 = vsel %vm71_vm4, %v970_v50, %v102_v58  ;;  %v1019_v1 = vld [vmem:[%s2162_s0 + $0xb5] sm:$0x20]   ;;  %v307_v11 = vsel %vm67_vm3, %v1018_v61, %v303_v5  ;;  %v1011_v14 = vld [vmem:[%s2162_s0 + $0xa5] sm:$0x20]   ;;  %v273_v20 = vsel %vm67_vm3, %v1010_v9, %v269_v16 }
  0x10   :  { %v972_v59 = vld [vmem:[%s2162_s0 + $0xe7] sm:$0x80]   ;;  %v110_v4 = vsel %vm75_vm5, %v971_v51, %v106_v63  ;;  %v1020_v12 = vld [vmem:[%s2162_s0 + $0xd4] sm:$0x40]   ;;  %v311_v15 = vsel %vm71_vm4, %v1019_v1, %v307_v11  ;;  %v1040_v17 = vld [vmem:[%s2162_s0 + $0x8] sm:$0x1]   ;;  %v277_v27 = vsel %vm71_vm4, %v1011_v14, %v273_v20 }
  0x11   :  { %v114_v10 = vsel %vm79_vm6, %v972_v59, %v110_v4  ;;  %v1041_v18 = vld [vmem:[%s2162_s0 + $0x27] sm:$0x2]   ;;  %v1012_v21 = vld [vmem:[%s2162_s0 + $0xc4] sm:$0x40]   ;;  %s1194_s24 = smov 112   ;;  %v315_v25 = vsel %vm75_vm5, %v1020_v12, %v311_v15  ;;  %s1195_s28 = smov 80  }
  0x12   :  { %183 = vrot.lane.b32.xlu1 %v182_v62, %s1193_s11  ;;  %v1042_v19 = vld [vmem:[%s2162_s0 + $0x46] sm:$0x4]   ;;  %v399_v22 = vsel %vm55_vm0, %v1041_v18, %v1040_v17  ;;  %v1021_v26 = vld [vmem:[%s2162_s0 + $0xf3] sm:$0x80]   ;;  %v1013_v28 = vld [vmem:[%s2162_s0 + $0xe3] sm:$0x80]   ;;  %v281_v34 = vsel %vm75_vm5, %v1012_v21, %v277_v27 }
  0x13   :  { %v1043_v23 = vld [vmem:[%s2162_s0 + $0x65] sm:$0x8]   ;;  %115 = vrot.lane.b32.xlu0 %v114_v10, %s1194_s24  ;;  %v403_v29 = vsel %vm59_vm1, %v1042_v19, %v399_v22  ;;  %v1031_v31 = vld [vmem:[%s2162_s0 + $0x19] sm:$0x1]   ;;  %v319_v40 = vsel %vm79_vm6, %v1021_v26, %v315_v25  ;;  %v989_v43 = vld [vmem:[%s2162_s0 + $0xb] sm:$0x1]   ;;  %v285_v48 = vsel %vm79_vm6, %v1013_v28, %v281_v34 }
  0x14   :  { %v1044_v24 = vld [vmem:[%s2162_s0 + $0x84] sm:$0x10]   ;;  %v407_v30 = vsel %vm63_vm2, %v1043_v23, %v403_v29  ;;  %v1032_v32 = vld [vmem:[%s2162_s0 + $0x38] sm:$0x2]   ;;  %v990_v45 = vld [vmem:[%s2162_s0 + $0x2a] sm:$0x2]  }
  0x15   :  { %v1033_v33 = vld [vmem:[%s2162_s0 + $0x57] sm:$0x4]   ;;  %v411_v35 = vsel %vm67_vm3, %v1044_v24, %v407_v30  ;;  %v1045_v36 = vld [vmem:[%s2162_s0 + $0xa3] sm:$0x20]   ;;  %v364_v37 = vsel %vm55_vm0, %v1032_v32, %v1031_v31  ;;  %v991_v46 = vld [vmem:[%s2162_s0 + $0x49] sm:$0x4]   ;;  %v192_v53 = vsel %vm55_vm0, %v990_v45, %v989_v43 }
  0x16   :  { %v1034_v38 = vld [vmem:[%s2162_s0 + $0x76] sm:$0x8]   ;;  %v368_v41 = vsel %vm59_vm1, %v1033_v33, %v364_v37  ;;  %v992_v47 = vld [vmem:[%s2162_s0 + $0x68] sm:$0x8]   ;;  %v415_v49 = vsel %vm71_vm4, %v1045_v36, %v411_v35  ;;  %v1046_v50 = vld [vmem:[%s2162_s0 + $0xc2] sm:$0x40]   ;;  %v196_v56 = vsel %vm59_vm1, %v991_v46, %v192_v53 }
  0x17   :  { %v1035_v39 = vld [vmem:[%s2162_s0 + $0x95] sm:$0x10]   ;;  %v372_v44 = vsel %vm63_vm2, %v1034_v38, %v368_v41  ;;  %v993_v54 = vld [vmem:[%s2162_s0 + $0x87] sm:$0x10]   ;;  %v1047_v55 = vld [vmem:[%s2162_s0 + $0xe1] sm:$0x80]   ;;  %v200_v61 = vsel %vm63_vm2, %v992_v47, %v196_v56  ;;  %v419_v1 = vsel %vm75_vm5, %v1046_v50, %v415_v49 }
  0x18   :  { %v1036_v42 = vld [vmem:[%s2162_s0 + $0xb4] sm:$0x20]   ;;  %v376_v51 = vsel %vm67_vm3, %v1035_v39, %v372_v44  ;;  %v994_v57 = vld [vmem:[%s2162_s0 + $0xa6] sm:$0x20]   ;;  %v1065_v59 = vld [vmem:[%s2162_s0 + $0x17] sm:$0x1]   ;;  %v204_v3 = vsel %vm67_vm3, %v993_v54, %v200_v61  ;;  %v423_v19 = vsel %vm79_vm6, %v1047_v55, %v419_v1 }
  0x19   :  { %v1037_v52 = vld [vmem:[%s2162_s0 + $0xd3] sm:$0x40]   ;;  %v995_v58 = vld [vmem:[%s2162_s0 + $0xc5] sm:$0x40]   ;;  %v380_v60 = vsel %vm71_vm4, %v1036_v42, %v376_v51  ;;  %v1066_v62 = vld [vmem:[%s2162_s0 + $0x36] sm:$0x2]   ;;  %v208_v7 = vsel %vm71_vm4, %v994_v57, %v204_v3 }
  0x1a   :  { %320 = vrot.lane.b32.xlu1 %v319_v40, %s1195_s28  ;;  %v1067_v63 = vld [vmem:[%s2162_s0 + $0x55] sm:$0x4]   ;;  %v1038_v2 = vld [vmem:[%s2162_s0 + $0xf2] sm:$0x80]   ;;  %v996_v4 = vld [vmem:[%s2162_s0 + $0xe4] sm:$0x80]   ;;  %v502_v5 = vsel %vm55_vm0, %v1066_v62, %v1065_v59  ;;  %v384_v12 = vsel %vm75_vm5, %v1037_v52, %v380_v60  ;;  %v212_v13 = vsel %vm75_vm5, %v995_v58, %v208_v7 }
  0x1b   :  { %v1068_v0 = vld [vmem:[%s2162_s0 + $0x74] sm:$0x8]   ;;  %286 = vrot.lane.b32.xlu0 %v285_v48, %s1195_s28  ;;  %v506_v8 = vsel %vm59_vm1, %v1067_v63, %v502_v5  ;;  %v1057_v10 = vld [vmem:[%s2162_s0 + $0x7] sm:$0x1]   ;;  %v216_v20 = vsel %vm79_vm6, %v996_v4, %v212_v13  ;;  %s1196_s7 = smov 88   ;;  %v388_v29 = vsel %vm79_vm6, %v1038_v2, %v384_v12  ;;  %s1197_s20 = smov 64  }
  0x1c   :  { %v1069_v6 = vld [vmem:[%s2162_s0 + $0x93] sm:$0x10]   ;;  %v1058_v11 = vld [vmem:[%s2162_s0 + $0x26] sm:$0x2]   ;;  %v510_v14 = vsel %vm63_vm2, %v1068_v0, %v506_v8  ;;  %217 = vrot.lane.b32.xlu2 %v216_v20, %s1196_s7  ;;  %v997_v26 = vld [vmem:[%s2162_s0 + $0x1b] sm:$0x1]  }
  0x1d   :  { %v1070_v9 = vld [vmem:[%s2162_s0 + $0xb2] sm:$0x20]   ;;  %v468_v15 = vsel %vm55_vm0, %v1058_v11, %v1057_v10  ;;  %v1059_v16 = vld [vmem:[%s2162_s0 + $0x45] sm:$0x4]   ;;  %v514_v21 = vsel %vm67_vm3, %v1069_v6, %v510_v14  ;;  %v998_v27 = vld [vmem:[%s2162_s0 + $0x3a] sm:$0x2]  }
  0x1e   :  { %v1060_v17 = vld [vmem:[%s2162_s0 + $0x64] sm:$0x8]   ;;  %v1071_v22 = vld [vmem:[%s2162_s0 + $0xd1] sm:$0x40]   ;;  %v472_v23 = vsel %vm59_vm1, %v1059_v16, %v468_v15  ;;  %v999_v28 = vld [vmem:[%s2162_s0 + $0x59] sm:$0x4]   ;;  %v518_v30 = vsel %vm71_vm4, %v1070_v9, %v514_v21  ;;  %v226_v33 = vsel %vm55_vm0, %v998_v27, %v997_v26 }
  0x1f   :  { %v1061_v18 = vld [vmem:[%s2162_s0 + $0x83] sm:$0x10]   ;;  %v476_v25 = vsel %vm63_vm2, %v1060_v17, %v472_v23  ;;  %v1000_v34 = vld [vmem:[%s2162_s0 + $0x78] sm:$0x8]   ;;  %v230_v36 = vsel %vm59_vm1, %v999_v28, %v226_v33  ;;  %v1091_v39 = vld [vmem:[%s2162_s0 + $0x5] sm:$0x1]   ;;  %v522_v45 = vsel %vm75_vm5, %v1071_v22, %v518_v30 }
  0x20   :  { %v1062_v24 = vld [vmem:[%s2162_s0 + $0xa2] sm:$0x20]   ;;  %v480_v31 = vsel %vm67_vm3, %v1061_v18, %v476_v25  ;;  %v1001_v35 = vld [vmem:[%s2162_s0 + $0x97] sm:$0x10]   ;;  %v234_v41 = vsel %vm63_vm2, %v1000_v34, %v230_v36  ;;  %v1092_v42 = vld [vmem:[%s2162_s0 + $0x24] sm:$0x2]  }
  0x21   :  { %v1063_v32 = vld [vmem:[%s2162_s0 + $0xc1] sm:$0x40]   ;;  %v1002_v37 = vld [vmem:[%s2162_s0 + $0xb6] sm:$0x20]   ;;  %v484_v40 = vsel %vm71_vm4, %v1062_v24, %v480_v31  ;;  %v1093_v43 = vld [vmem:[%s2162_s0 + $0x43] sm:$0x4]   ;;  %v238_v47 = vsel %vm67_vm3, %v1001_v35, %v234_v41  ;;  %v606_v49 = vsel %vm55_vm0, %v1092_v42, %v1091_v39 }
  0x22   :  { %424 = vrot.lane.b32.xlu1 %v423_v19, %s1197_s20  ;;  %v1003_v38 = vld [vmem:[%s2162_s0 + $0xd5] sm:$0x40]   ;;  %v1094_v44 = vld [vmem:[%s2162_s0 + $0x62] sm:$0x8]   ;;  %s1198_s4 = smov 72   ;;  %v242_v52 = vsel %vm71_vm4, %v1002_v37, %v238_v47  ;;  %v610_v53 = vsel %vm59_vm1, %v1093_v43, %v606_v49  ;;  %v488_v56 = vsel %vm75_vm5, %v1063_v32, %v484_v40  ;;  %s1199_s13 = smov 56  }
  0x23   :  { %389 = vrot.lane.b32.xlu0 %v388_v29, %s1198_s4  ;;  %v1072_v46 = vld [vmem:[%s2162_s0 + $0xf0] sm:$0x80]   ;;  %v1004_v48 = vld [vmem:[%s2162_s0 + $0xf4] sm:$0x80]   ;;  %v1095_v50 = vld [vmem:[%s2162_s0 + $0x81] sm:$0x10]   ;;  %v246_v57 = vsel %vm75_vm5, %v1003_v38, %v242_v52  ;;  %v614_v58 = vsel %vm63_vm2, %v1094_v44, %v610_v53 }
  0x24   :  { %v1064_v51 = vld [vmem:[%s2162_s0 + $0xe0] sm:$0x80]   ;;  %v1096_v54 = vld [vmem:[%s2162_s0 + $0xa0] sm:$0x20]   ;;  %v1082_v55 = vld [vmem:[%s2162_s0 + $0x16] sm:$0x1]   ;;  %v526_v62 = vsel %vm79_vm6, %v1072_v46, %v522_v45  ;;  %v250_v63 = vsel %vm79_vm6, %v1004_v48, %v246_v57  ;;  %v618_v0 = vsel %vm67_vm3, %v1095_v50, %v614_v58 }
  0x25   :  { %v1083_v59 = vld [vmem:[%s2162_s0 + $0x35] sm:$0x2]   ;;  %v1097_v1 = vld [vmem:[%s2162_s0 + $0xbf] sm:$0x40]   ;;  %251 = vrot.lane.b32.xlu2 %v250_v63, %s1196_s7  ;;  %v1023_v6 = vld [vmem:[%s2162_s0 + $0x9] sm:$0x1]   ;;  %v492_v8 = vsel %vm79_vm6, %v1064_v51, %v488_v56  ;;  %v622_v9 = vsel %vm71_vm4, %v1096_v54, %v618_v0 }
  0x26   :  { %v1084_v60 = vld [vmem:[%s2162_s0 + $0x54] sm:$0x4]   ;;  %v571_v2 = vsel %vm55_vm0, %v1083_v59, %v1082_v55  ;;  %v1024_v7 = vld [vmem:[%s2162_s0 + $0x28] sm:$0x2]   ;;  %v1098_v15 = vld [vmem:[%s2162_s0 + $0xde] sm:$0x80]   ;;  %v626_v26 = vsel %vm75_vm5, %v1097_v1, %v622_v9 }
  0x27   :  { %v1085_v61 = vld [vmem:[%s2162_s0 + $0x73] sm:$0x8]   ;;  %v575_v4 = vsel %vm59_vm1, %v1084_v60, %v571_v2  ;;  %v330_v11 = vsel %vm55_vm0, %v1024_v7, %v1023_v6  ;;  %v1025_v12 = vld [vmem:[%s2162_s0 + $0x47] sm:$0x4]   ;;  %v1116_v24 = vld [vmem:[%s2162_s0 + $0x14] sm:$0x1]   ;;  %v630_v42 = vsel %vm79_vm6, %v1098_v15, %v626_v26 }
  0x28   :  { %v1086_v3 = vld [vmem:[%s2162_s0 + $0x92] sm:$0x10]   ;;  %v579_v10 = vsel %vm63_vm2, %v1085_v61, %v575_v4  ;;  %v1026_v13 = vld [vmem:[%s2162_s0 + $0x66] sm:$0x8]   ;;  %v334_v18 = vsel %vm59_vm1, %v1025_v12, %v330_v11  ;;  %v1117_v25 = vld [vmem:[%s2162_s0 + $0x33] sm:$0x2]  }
  0x29   :  { %v1087_v5 = vld [vmem:[%s2162_s0 + $0xb1] sm:$0x20]   ;;  %v1027_v14 = vld [vmem:[%s2162_s0 + $0x85] sm:$0x10]   ;;  %v583_v16 = vsel %vm67_vm3, %v1086_v3, %v579_v10  ;;  %v338_v22 = vsel %vm63_vm2, %v1026_v13, %v334_v18  ;;  %v709_v28 = vsel %vm55_vm0, %v1117_v25, %v1116_v24  ;;  %v1118_v29 = vld [vmem:[%s2162_s0 + $0x52] sm:$0x4]  }
  0x2a   :  { %527 = vrot.lane.b32.xlu1 %v526_v62, %s1199_s13  ;;  %v1088_v17 = vld [vmem:[%s2162_s0 + $0xd0] sm:$0x40]   ;;  %v1028_v19 = vld [vmem:[%s2162_s0 + $0xa4] sm:$0x20]   ;;  %v587_v21 = vsel %vm71_vm4, %v1087_v5, %v583_v16  ;;  %v342_v27 = vsel %vm67_vm3, %v1027_v14, %v338_v22  ;;  %v1119_v30 = vld [vmem:[%s2162_s0 + $0x71] sm:$0x8]   ;;  %v713_v34 = vsel %vm59_vm1, %v1118_v29, %v709_v28 }
  0x2b   :  { %v1029_v20 = vld [vmem:[%s2162_s0 + $0xc3] sm:$0x40]   ;;  %493 = vrot.lane.b32.xlu0 %v492_v8, %s1199_s13  ;;  %v1120_v31 = vld [vmem:[%s2162_s0 + $0x90] sm:$0x10]   ;;  %v1089_v32 = vld [vmem:[%s2162_s0 + $0xef] sm:$0x80]   ;;  %v346_v33 = vsel %vm71_vm4, %v1028_v19, %v342_v27  ;;  %v591_v36 = vsel %vm75_vm5, %v1088_v17, %v587_v21  ;;  %v717_v38 = vsel %vm63_vm2, %v1119_v30, %v713_v34 }
  0x2c   :  { %v1030_v23 = vld [vmem:[%s2162_s0 + $0xe2] sm:$0x80]   ;;  %v1121_v35 = vld [vmem:[%s2162_s0 + $0xaf] sm:$0x20]   ;;  %v350_v37 = vsel %vm75_vm5, %v1029_v20, %v346_v33  ;;  %v1108_v39 = vld [vmem:[%s2162_s0 + $0x4] sm:$0x1]   ;;  %v721_v44 = vsel %vm67_vm3, %v1120_v31, %v717_v38  ;;  %v595_v52 = vsel %vm79_vm6, %v1089_v32, %v591_v36 }
  0x2d   :  { %v1109_v40 = vld [vmem:[%s2162_s0 + $0x23] sm:$0x2]   ;;  %v354_v43 = vsel %vm79_vm6, %v1030_v23, %v350_v37  ;;  %v1122_v48 = vld [vmem:[%s2162_s0 + $0xce] sm:$0x40]   ;;  %v1048_v51 = vld [vmem:[%s2162_s0 + $0x18] sm:$0x1]   ;;  %v725_v53 = vsel %vm71_vm4, %v1121_v35, %v721_v44 }
  0x2e   :  { %v1110_v41 = vld [vmem:[%s2162_s0 + $0x42] sm:$0x4]   ;;  %v675_v45 = vsel %vm55_vm0, %v1109_v40, %v1108_v39  ;;  %355 = vrot.lane.b32.xlu2 %v354_v43, %s1198_s4  ;;  %v1049_v55 = vld [vmem:[%s2162_s0 + $0x37] sm:$0x2]   ;;  %s1200_s3 = smov 40   ;;  %s1201_s21 = smov 48   ;;  %v729_v5 = vsel %vm75_vm5, %v1122_v48, %v725_v53 }
  0x2f   :  { %v1111_v46 = vld [vmem:[%s2162_s0 + $0x61] sm:$0x8]   ;;  %v679_v49 = vsel %vm59_vm1, %v1110_v41, %v675_v45  ;;  %v1050_v56 = vld [vmem:[%s2162_s0 + $0x56] sm:$0x4]   ;;  %v1123_v58 = vld [vmem:[%s2162_s0 + $0xed] sm:$0x80]   ;;  %v433_v61 = vsel %vm55_vm0, %v1049_v55, %v1048_v51 }
  0x30   :  { %v1112_v47 = vld [vmem:[%s2162_s0 + $0x80] sm:$0x10]   ;;  %v683_v54 = vsel %vm63_vm2, %v1111_v46, %v679_v49  ;;  %v1051_v57 = vld [vmem:[%s2162_s0 + $0x75] sm:$0x8]   ;;  %v437_v1 = vsel %vm59_vm1, %v1050_v56, %v433_v61  ;;  %v1142_v3 = vld [vmem:[%s2162_s0 + $0x2] sm:$0x1]   ;;  %v733_v21 = vsel %vm79_vm6, %v1123_v58, %v729_v5 }
  0x31   :  { %v1113_v50 = vld [vmem:[%s2162_s0 + $0x9f] sm:$0x20]   ;;  %v687_v59 = vsel %vm67_vm3, %v1112_v47, %v683_v54  ;;  %v1052_v62 = vld [vmem:[%s2162_s0 + $0x94] sm:$0x10]   ;;  %v1143_v4 = vld [vmem:[%s2162_s0 + $0x21] sm:$0x2]   ;;  %v441_v6 = vsel %vm63_vm2, %v1051_v57, %v437_v1 }
  0x32   :  { %631 = vrot.lane.b32.xlu1 %v630_v42, %s1200_s3  ;;  %v1114_v60 = vld [vmem:[%s2162_s0 + $0xbe] sm:$0x40]   ;;  %v1053_v63 = vld [vmem:[%s2162_s0 + $0xb3] sm:$0x20]   ;;  %v691_v0 = vsel %vm71_vm4, %v1113_v50, %v687_v59  ;;  %v813_v7 = vsel %vm55_vm0, %v1143_v4, %v1142_v3  ;;  %v1144_v8 = vld [vmem:[%s2162_s0 + $0x40] sm:$0x4]   ;;  %v445_v12 = vsel %vm67_vm3, %v1052_v62, %v441_v6 }
  0x33   :  { %v1054_v2 = vld [vmem:[%s2162_s0 + $0xd2] sm:$0x40]   ;;  %596 = vrot.lane.b32.xlu0 %v595_v52, %s1201_s21  ;;  %v1145_v9 = vld [vmem:[%s2162_s0 + $0x5f] sm:$0x8]   ;;  %v1115_v11 = vld [vmem:[%s2162_s0 + $0xdd] sm:$0x80]   ;;  %v817_v14 = vsel %vm59_vm1, %v1144_v8, %v813_v7  ;;  %v695_v15 = vsel %vm75_vm5, %v1114_v60, %v691_v0  ;;  %v449_v16 = vsel %vm71_vm4, %v1053_v63, %v445_v12 }
  0x34   :  { %v1146_v10 = vld [vmem:[%s2162_s0 + $0x7e] sm:$0x10]   ;;  %v1055_v13 = vld [vmem:[%s2162_s0 + $0xf1] sm:$0x80]   ;;  %v821_v17 = vsel %vm63_vm2, %v1145_v9, %v817_v14  ;;  %v1133_v19 = vld [vmem:[%s2162_s0 + $0x13] sm:$0x1]   ;;  %v453_v22 = vsel %vm75_vm5, %v1054_v2, %v449_v16  ;;  %v699_v32 = vsel %vm79_vm6, %v1115_v11, %v695_v15 }
  0x35   :  { %v1147_v18 = vld [vmem:[%s2162_s0 + $0x9d] sm:$0x20]   ;;  %v1134_v20 = vld [vmem:[%s2162_s0 + $0x32] sm:$0x2]   ;;  %v825_v23 = vsel %vm67_vm3, %v1146_v10, %v821_v17  ;;  %v457_v28 = vsel %vm79_vm6, %v1055_v13, %v453_v22  ;;  %v1074_v35 = vld [vmem:[%s2162_s0 + $0x6] sm:$0x1]  }
  0x36   :  { %v778_v24 = vsel %vm55_vm0, %v1134_v20, %v1133_v19  ;;  %v1135_v25 = vld [vmem:[%s2162_s0 + $0x51] sm:$0x4]   ;;  %v1148_v29 = vld [vmem:[%s2162_s0 + $0xbc] sm:$0x40]   ;;  %458 = vrot.lane.b32.xlu2 %v457_v28, %s1197_s20  ;;  %v829_v33 = vsel %vm71_vm4, %v1147_v18, %v825_v23  ;;  %v1075_v36 = vld [vmem:[%s2162_s0 + $0x25] sm:$0x2]  }
  0x37   :  { %v1136_v26 = vld [vmem:[%s2162_s0 + $0x70] sm:$0x8]   ;;  %v782_v30 = vsel %vm59_vm1, %v1135_v25, %v778_v24  ;;  %v1076_v37 = vld [vmem:[%s2162_s0 + $0x44] sm:$0x4]   ;;  %s1202_s26 = smov 32   ;;  %v537_v41 = vsel %vm55_vm0, %v1075_v36, %v1074_v35  ;;  %v833_v49 = vsel %vm75_vm5, %v1148_v29, %v829_v33  ;;  %s1203_s20 = smov 16  }
  0x38   :  { %v1137_v27 = vld [vmem:[%s2162_s0 + $0x8f] sm:$0x10]   ;;  %v786_v34 = vsel %vm63_vm2, %v1136_v26, %v782_v30  ;;  %v1149_v38 = vld [vmem:[%s2162_s0 + $0xdb] sm:$0x80]   ;;  %v1077_v42 = vld [vmem:[%s2162_s0 + $0x63] sm:$0x8]   ;;  %v541_v45 = vsel %vm59_vm1, %v1076_v37, %v537_v41 }
  0x39   :  { %v1138_v31 = vld [vmem:[%s2162_s0 + $0xae] sm:$0x20]   ;;  %v790_v39 = vsel %vm67_vm3, %v1137_v27, %v786_v34  ;;  %v1078_v43 = vld [vmem:[%s2162_s0 + $0x82] sm:$0x10]   ;;  %v1167_v48 = vld [vmem:[%s2162_s0 + $0x11] sm:$0x1]   ;;  %v545_v50 = vsel %vm63_vm2, %v1077_v42, %v541_v45  ;;  %v837_v1 = vsel %vm79_vm6, %v1149_v38, %v833_v49 }
  0x3a   :  { %734 = vrot.lane.b32.xlu1 %v733_v21, %s1202_s26  ;;  %v1139_v40 = vld [vmem:[%s2162_s0 + $0xcd] sm:$0x40]   ;;  %v794_v44 = vsel %vm71_vm4, %v1138_v31, %v790_v39  ;;  %v1079_v46 = vld [vmem:[%s2162_s0 + $0xa1] sm:$0x20]   ;;  %v1168_v51 = vld [vmem:[%s2162_s0 + $0x30] sm:$0x2]   ;;  %v549_v55 = vsel %vm67_vm3, %v1078_v43, %v545_v50 }
  0x3b   :  { %v1080_v47 = vld [vmem:[%s2162_s0 + $0xc0] sm:$0x40]   ;;  %700 = vrot.lane.b32.xlu0 %v699_v32, %s1202_s26  ;;  %v1169_v52 = vld [vmem:[%s2162_s0 + $0x4f] sm:$0x4]   ;;  %v1140_v54 = vld [vmem:[%s2162_s0 + $0xec] sm:$0x80]   ;;  %v916_v57 = vsel %vm55_vm0, %v1168_v51, %v1167_v48  ;;  %v798_v59 = vsel %vm75_vm5, %v1139_v40, %v794_v44  ;;  %v553_v60 = vsel %vm71_vm4, %v1079_v46, %v549_v55 }
  0x3c   :  { %v1170_v53 = vld [vmem:[%s2162_s0 + $0x6e] sm:$0x8]   ;;  %v1081_v56 = vld [vmem:[%s2162_s0 + $0xdf] sm:$0x80]   ;;  %v920_v61 = vsel %vm59_vm1, %v1169_v52, %v916_v57  ;;  %v1159_v63 = vld [vmem:[%s2162_s0 + $0x1] sm:$0x1]   ;;  %v557_v2 = vsel %vm75_vm5, %v1080_v47, %v553_v60  ;;  %v802_v13 = vsel %vm79_vm6, %v1140_v54, %v798_v59 }
  0x3d   :  { %v1171_v58 = vld [vmem:[%s2162_s0 + $0x8d] sm:$0x10]   ;;  %v1160_v0 = vld [vmem:[%s2162_s0 + $0x20] sm:$0x2]   ;;  %v924_v3 = vsel %vm63_vm2, %v1170_v53, %v920_v61  ;;  %v561_v8 = vsel %vm79_vm6, %v1081_v56, %v557_v2  ;;  %v1099_v16 = vld [vmem:[%s2162_s0 + $0x15] sm:$0x1]  }
  0x3e   :  { %v1172_v62 = vld [vmem:[%s2162_s0 + $0xac] sm:$0x20]   ;;  %v882_v4 = vsel %vm55_vm0, %v1160_v0, %v1159_v63  ;;  %v1161_v5 = vld [vmem:[%s2162_s0 + $0x3f] sm:$0x4]   ;;  %v928_v9 = vsel %vm67_vm3, %v1171_v58, %v924_v3  ;;  %562 = vrot.lane.b32.xlu2 %v561_v8, %s1201_s21  ;;  %v1100_v17 = vld [vmem:[%s2162_s0 + $0x34] sm:$0x2]  }
  0x3f   :  { %v1162_v6 = vld [vmem:[%s2162_s0 + $0x5e] sm:$0x8]   ;;  %v1173_v10 = vld [vmem:[%s2162_s0 + $0xcb] sm:$0x40]   ;;  %v886_v11 = vsel %vm59_vm1, %v1161_v5, %v882_v4  ;;  %v932_v14 = vsel %vm71_vm4, %v1172_v62, %v928_v9  ;;  %v1101_v18 = vld [vmem:[%s2162_s0 + $0x53] sm:$0x4]   ;;  %v640_v22 = vsel %vm55_vm0, %v1100_v17, %v1099_v16 }
  0x40   :  { %v1163_v7 = vld [vmem:[%s2162_s0 + $0x7d] sm:$0x10]   ;;  %v890_v15 = vsel %vm63_vm2, %v1162_v6, %v886_v11  ;;  %v1174_v19 = vld [vmem:[%s2162_s0 + $0xea] sm:$0x80]   ;;  %v1102_v23 = vld [vmem:[%s2162_s0 + $0x72] sm:$0x8]   ;;  %v644_v26 = vsel %vm59_vm1, %v1101_v18, %v640_v22  ;;  %v936_v30 = vsel %vm75_vm5, %v1173_v10, %v932_v14 }
  0x41   :  { %v1164_v12 = vld [vmem:[%s2162_s0 + $0x9c] sm:$0x20]   ;;  %v894_v20 = vsel %vm67_vm3, %v1163_v7, %v890_v15  ;;  %v1103_v24 = vld [vmem:[%s2162_s0 + $0x91] sm:$0x10]   ;;  %v1125_v29 = vld [vmem:[%s2162_s0 + $0x3] sm:$0x1]   ;;  %v648_v31 = vsel %vm63_vm2, %v1102_v23, %v644_v26  ;;  %v940_v46 = vsel %vm79_vm6, %v1174_v19, %v936_v30 }
  0x42   :  { %838 = vrot.lane.b32.xlu1 %v837_v1, %s1203_s20  ;;  %v1165_v21 = vld [vmem:[%s2162_s0 + $0xbb] sm:$0x40]   ;;  %v898_v25 = vsel %vm71_vm4, %v1164_v12, %v894_v20  ;;  %v1104_v27 = vld [vmem:[%s2162_s0 + $0xb0] sm:$0x20]   ;;  %s1204_s8 = smov 24   ;;  %v652_v36 = vsel %vm67_vm3, %v1103_v24, %v648_v31  ;;  %s2_s15 = smov 3 }
  0x43   :  { %v1105_v28 = vld [vmem:[%s2162_s0 + $0xcf] sm:$0x40]   ;;  %803 = vrot.lane.b32.xlu0 %v802_v13, %s1204_s8  ;;  %v1126_v32 = vld [vmem:[%s2162_s0 + $0x22] sm:$0x2]   ;;  %v1166_v35 = vld [vmem:[%s2162_s0 + $0xda] sm:$0x80]   ;;  %v902_v40 = vsel %vm75_vm5, %v1165_v21, %v898_v25  ;;  %v656_v41 = vsel %vm71_vm4, %v1104_v27, %v652_v36 }
  0x44   :  { %v1127_v33 = vld [vmem:[%s2162_s0 + $0x41] sm:$0x4]   ;;  %v1106_v37 = vld [vmem:[%s2162_s0 + $0xee] sm:$0x80]   ;;  %v744_v38 = vsel %vm55_vm0, %v1126_v32, %v1125_v29  ;;  %v1150_v44 = vld [vmem:[%s2162_s0 + $0x12] sm:$0x1]   ;;  %v660_v47 = vsel %vm75_vm5, %v1105_v28, %v656_v41  ;;  %v906_v56 = vsel %vm79_vm6, %v1166_v35, %v902_v40 }
  0x45   :  { %v1128_v34 = vld [vmem:[%s2162_s0 + $0x60] sm:$0x8]   ;;  %v748_v42 = vsel %vm59_vm1, %v1127_v33, %v744_v38  ;;  %v1151_v45 = vld [vmem:[%s2162_s0 + $0x31] sm:$0x2]   ;;  %v664_v52 = vsel %vm79_vm6, %v1106_v37, %v660_v47  ;;  %s4_s16 = smov 12  ;;  %s8_s17 = smov 48 }
  0x46   :  { %v1129_v39 = vld [vmem:[%s2162_s0 + $0x7f] sm:$0x10]   ;;  %v752_v48 = vsel %vm63_vm2, %v1128_v34, %v748_v42  ;;  %v847_v49 = vsel %vm55_vm0, %v1151_v45, %v1150_v44  ;;  %v1152_v50 = vld [vmem:[%s2162_s0 + $0x50] sm:$0x4]   ;;  %665 = vrot.lane.b32.xlu2 %v664_v52, %s1200_s3  ;;  %s1205_s3 = smov 8   ;;  %s12_s18 = smov 192 }
  0x47   :  { %v1130_v43 = vld [vmem:[%s2162_s0 + $0x9e] sm:$0x20]   ;;  %v1153_v51 = vld [vmem:[%s2162_s0 + $0x6f] sm:$0x8]   ;;  %v756_v53 = vsel %vm67_vm3, %v1129_v39, %v752_v48  ;;  %v851_v55 = vsel %vm59_vm1, %v1152_v50, %v847_v49  ;;  %s25_s19 = smov 3  ;;  %s33_s4 = smov 48 }
  0x48   :  { %v1131_v54 = vld [vmem:[%s2162_s0 + $0xbd] sm:$0x40]   ;;  %v760_v57 = vsel %vm71_vm4, %v1130_v43, %v756_v53  ;;  %v855_v58 = vsel %vm63_vm2, %v1153_v51, %v851_v55  ;;  %v1154_v59 = vld [vmem:[%s2162_s0 + $0x8e] sm:$0x10]   ;;  %vm6_vm7 = vcmask 1043458   ;;  %s38_s22 = smov 192 }
  0x49   :  { %v764_v60 = vsel %vm75_vm5, %v1131_v54, %v760_v57  ;;  %v1132_v61 = vld [vmem:[%s2162_s0 + $0xdc] sm:$0x80]   ;;  %v859_v62 = vsel %vm67_vm3, %v1154_v59, %v855_v58  ;;  %v1155_v63 = vld [vmem:[%s2162_s0 + $0xad] sm:$0x20]   ;;  %v3_v6 = vld [vmem:[%s2162_s0] ss:$16 sm:%s2_s15]  }
  0x4a   :  { %941 = vrot.lane.b32.xlu1 %v940_v46, %s1205_s3  ;;  %v768_v0 = vsel %vm79_vm6, %v1132_v61, %v764_v60  ;;  %v863_v1 = vsel %vm71_vm4, %v1155_v63, %v859_v62  ;;  %v1156_v2 = vld [vmem:[%s2162_s0 + $0xcc] sm:$0x40]   ;;  %v5_v7 = vld [vmem:[%s2162_s0] ss:$16 sm:%s4_s16]   ;;  %vm10_vm8 = vcmask 1045508   ;;  %vm14_vm9 = vcmask 1047558  }
  0x4b   :  { %907 = vrot.lane.b32.xlu0 %v906_v56, %s1205_s3  ;;  %v867_v3 = vsel %vm75_vm5, %v1156_v2, %v863_v1  ;;  %v1157_v4 = vld [vmem:[%s2162_s0 + $0xeb] sm:$0x80]   ;;  %v7_v8 = vsel %vm6_vm7, %v5_v7, %v3_v6  ;;  %v9_v9 = vld [vmem:[%s2162_s0] ss:$16 sm:%s8_s17]   ;;  %vm16_vm10 = vcmask 64512   ;;  %vm83_vm11 = vcmask 1048512  }
  0x4c   :  { %v871_v5 = vsel %vm79_vm6, %v1157_v4, %v867_v3  ;;  %v949_v10 = vld [vmem:[%s2162_s0 + $0x80] ss:$16 sm:%s25_s19]   ;;  %v11_v11 = vsel %vm10_vm8, %v9_v9, %v7_v8  ;;  %vm219_vm12 = vcmask 786112   ;;  %vm117_vm13 = vcmask 982912  }
  0x4d   :  { %v13_v12 = vld [vmem:[%s2162_s0] ss:$16 sm:%s12_s18]   ;;  %vm151_vm14 = vcmask 917312   ;;  %vm185_vm15 = vcmask 851712   ;;  %vm288_vm0 = vcmask 720512   ;;  %vm357_vm1 = vcmask 654912  }
  0x4e   :  { %769 = vrot.lane.b32.xlu2 %v768_v0, %s1204_s8  ;;  %v15_v14 = vsel %vm14_vm9, %v13_v12, %v11_v11  ;;  %v951_v16 = vld [vmem:[%s2162_s0 + $0x80] ss:$16 sm:%s33_s4]   ;;  %vm426_vm2 = vcmask 589312   ;;  %vm495_vm3 = vcmask 523712   ;;  %vm564_vm4 = vcmask 458112  }
  0x4f   :  { %v952_v17 = vld [vmem:[%s2162_s0 + $0x80] ss:$16 sm:%s38_s22]   ;;  %17 = vst.msk [vmem:[%s2163_s1] ss:$8 sm:$0x3] %vm16_vm10, %v15_v14   ;;  %vm633_vm5 = vcmask 392512  }
  0x50   :  { %946 = vst.msk [vmem:[%s2163_s1 - $0xf] ss:$8 sm:$0xc] %vm16_vm10, %v15_v14   ;;  %vm702_vm6 = vcmask 326912  }
  0x51   :  { %947 = vst.msk [vmem:[%s2163_s1 - $0x1e] ss:$8 sm:$0x30] %vm16_vm10, %v15_v14  }
  0x52   :  { %948 = vst.msk [vmem:[%s2163_s1 - $0x2d] ss:$8 sm:$0xc0] %vm16_vm10, %v15_v14  }
  0x56   :  { %872 = vrot.lane.b32.xlu2 %v871_v5, %s1203_s20  ;;  %s28_s20 = smov 12 }
  0x57   :  { %v950_v13 = vld [vmem:[%s2162_s0 + $0x80] ss:$16 sm:%s28_s20]  }
  0x58   :  { %v31_v15 = vsel %vm6_vm7, %v950_v13, %v949_v10  ;;  %vm771_vm7 = vcmask 261312  }
  0x59   :  { %v36_v18 = vsel %vm10_vm8, %v951_v16, %v31_v15  ;;  %vm840_vm8 = vcmask 195712  }
  0x5a   :  { %v41_v19 = vsel %vm14_vm9, %v952_v17, %v36_v18  ;;  %vm909_vm9 = vcmask 130112  }
  0x5b   :  { %953 = vst.msk [vmem:[%s2163_s1 + $0x4] ss:$8 sm:$0x3] %vm16_vm10, %v41_v19  }
  0x5c   :  { %954 = vst.msk [vmem:[%s2163_s1 - $0xb] ss:$8 sm:$0xc] %vm16_vm10, %v41_v19  }
  0x5d   :  { %955 = vst.msk [vmem:[%s2163_s1 - $0x1a] ss:$8 sm:$0x30] %vm16_vm10, %v41_v19  }
  0x5e   :  { %956 = vst.msk [vmem:[%s2163_s1 - $0x29] ss:$8 sm:$0xc0] %vm16_vm10, %v41_v19  }
  0x76   :  { %v218_v20 = vpop.permute.xlu2 %217  }
  0x7c   :  { %v150_v21 = vpop.permute.xlu1 %149  }
  0x7d   :  { %v82_v22 = vpop.permute.xlu0 %81  }
  0x7e   :  { %84 = vst.msk [vmem:[%s2163_s1] sm:$0xff] %vm83_vm11, %v82_v22  }
  0x7f   :  { %v252_v23 = vpop.permute.xlu2 %251  }
  0x80   :  { %1005 = vst.msk [vmem:[%s2163_s1 + $0x8] sm:$0xff] %vm219_vm12, %v252_v23  }
  0x84   :  { %v184_v24 = vpop.permute.xlu1 %183  }
  0x85   :  { %v116_v25 = vpop.permute.xlu0 %115  }
  0x86   :  { %118 = vst.msk [vmem:[%s2163_s1] sm:$0xff] %vm117_vm13, %v116_v25  }
  0x87   :  { %152 = vst.msk [vmem:[%s2163_s1] sm:$0xff] %vm151_vm14, %v150_v21  }
  0x88   :  { %186 = vst.msk [vmem:[%s2163_s1] sm:$0xff] %vm185_vm15, %v184_v24   ;;  %v356_v26 = vpop.permute.xlu2 %355  }
  0x89   :  { %220 = vst.msk [vmem:[%s2163_s1] sm:$0xff] %vm219_vm12, %v218_v20  }
  0x8c   :  { %v321_v27 = vpop.permute.xlu1 %320  }
  0x8d   :  { %1022 = vst.msk [vmem:[%s2163_s1 + $0x8] sm:$0xff] %vm288_vm0, %v321_v27   ;;  %v287_v28 = vpop.permute.xlu0 %286  }
  0x8e   :  { %289 = vst.msk [vmem:[%s2163_s1] sm:$0xff] %vm288_vm0, %v287_v28  }
  0x8f   :  { %358 = vst.msk [vmem:[%s2163_s1] sm:$0xff] %vm357_vm1, %v356_v26  }
  0x90   :  { %v459_v29 = vpop.permute.xlu2 %458  }
  0x94   :  { %v425_v30 = vpop.permute.xlu1 %424  }
  0x95   :  { %427 = vst.msk [vmem:[%s2163_s1] sm:$0xff] %vm426_vm2, %v425_v30   ;;  %v390_v31 = vpop.permute.xlu0 %389  }
  0x96   :  { %1039 = vst.msk [vmem:[%s2163_s1 + $0x8] sm:$0xff] %vm357_vm1, %v390_v31  }
  0x97   :  { %1056 = vst.msk [vmem:[%s2163_s1 + $0x8] sm:$0xff] %vm426_vm2, %v459_v29  }
  0x98   :  { %v563_v32 = vpop.permute.xlu2 %562  }
  0x9c   :  { %v528_v33 = vpop.permute.xlu1 %527  }
  0x9d   :  { %1073 = vst.msk [vmem:[%s2163_s1 + $0x8] sm:$0xff] %vm495_vm3, %v528_v33   ;;  %v494_v34 = vpop.permute.xlu0 %493  }
  0x9e   :  { %496 = vst.msk [vmem:[%s2163_s1] sm:$0xff] %vm495_vm3, %v494_v34  }
  0x9f   :  { %565 = vst.msk [vmem:[%s2163_s1] sm:$0xff] %vm564_vm4, %v563_v32  }
  0xa0   :  { %v666_v35 = vpop.permute.xlu2 %665  }
  0xa4   :  { %v632_v36 = vpop.permute.xlu1 %631  }
  0xa5   :  { %634 = vst.msk [vmem:[%s2163_s1] sm:$0xff] %vm633_vm5, %v632_v36   ;;  %v597_v37 = vpop.permute.xlu0 %596  }
  0xa6   :  { %1090 = vst.msk [vmem:[%s2163_s1 + $0x8] sm:$0xff] %vm564_vm4, %v597_v37  }
  0xa7   :  { %1107 = vst.msk [vmem:[%s2163_s1 + $0x8] sm:$0xff] %vm633_vm5, %v666_v35  }
  0xa8   :  { %v770_v38 = vpop.permute.xlu2 %769  }
  0xac   :  { %v735_v39 = vpop.permute.xlu1 %734  }
  0xad   :  { %1124 = vst.msk [vmem:[%s2163_s1 + $0x8] sm:$0xff] %vm702_vm6, %v735_v39   ;;  %v701_v40 = vpop.permute.xlu0 %700  }
  0xae   :  { %703 = vst.msk [vmem:[%s2163_s1] sm:$0xff] %vm702_vm6, %v701_v40  }
  0xaf   :  { %772 = vst.msk [vmem:[%s2163_s1] sm:$0xff] %vm771_vm7, %v770_v38  }
  0xb0   :  { %v873_v41 = vpop.permute.xlu2 %872  }
  0xb4   :  { %v839_v42 = vpop.permute.xlu1 %838  }
  0xb5   :  { %841 = vst.msk [vmem:[%s2163_s1] sm:$0xff] %vm840_vm8, %v839_v42   ;;  %v804_v43 = vpop.permute.xlu0 %803  }
  0xb6   :  { %1141 = vst.msk [vmem:[%s2163_s1 + $0x8] sm:$0xff] %vm771_vm7, %v804_v43  }
  0xb7   :  { %1158 = vst.msk [vmem:[%s2163_s1 + $0x8] sm:$0xff] %vm840_vm8, %v873_v41  }
  0xbc   :  { %v942_v44 = vpop.permute.xlu1 %941  }
  0xbd   :  { %1175 = vst.msk [vmem:[%s2163_s1 + $0x8] sm:$0xff] %vm909_vm9, %v942_v44   ;;  %v908_v45 = vpop.permute.xlu0 %907  }
  0xbe   :  { %910 = vst.msk [vmem:[%s2163_s1] sm:$0xff] %vm909_vm9, %v908_v45  }

// kernel: tile.67
= control target key start
LH: loop header
LB: loop body
LE: loop exit
PB: predicated region body
PF: predicated region fallthrough
CT: control target
= control target key end

     0   :  { %vm65_vm0 = vcmask 1043458   ;;  %vm70_vm1 = vcmask 1045508   ;;  %vm75_vm2 = vcmask 1047558   ;;  %s105_s6 = smov 3  ;;  %s108_s7 = smov 12  ;;  %vm4_vm3 = vcmask 1047556   ;;  %s1322_s0 = inlined_call_operand.vmem [shape: f32[14,16,16], index: 0, kind: input, shape index: {}]   ;;  %s1323_s1 = inlined_call_operand.vmem [shape: f32[224,16], index: 1, kind: output, shape index: {}]  }
   0x1   :  { %v634_v0 = vld [vmem:[%s1322_s0 + $0x6] ss:$16 sm:%s105_s6]   ;;  %s113_s12 = smov 48  ;;  %s118_s13 = smov 192  ;;  %vm6_vm4 = vcmask 130048   ;;  %vm169_vm5 = vcmask 786048  }
   0x2   :  { %v635_v1 = vld [vmem:[%s1322_s0 + $0x6] ss:$16 sm:%s108_s7]   ;;  %s60_s18 = smov 3  ;;  %s63_s21 = smov 12  ;;  %vm79_vm6 = vcmask 1048448   ;;  %vm124_vm7 = vcmask 917248  }
   0x3   :  { %v111_v2 = vsel %vm65_vm0, %v635_v1, %v634_v0  ;;  %v636_v3 = vld [vmem:[%s1322_s0 + $0x6] ss:$16 sm:%s113_s12]   ;;  %v625_v6 = vld [vmem:[%s1322_s0 + $0x7] ss:$16 sm:%s60_s18]   ;;  %s68_s22 = smov 48  ;;  %s73_s27 = smov 192 }
   0x4   :  { %v637_v4 = vld [vmem:[%s1322_s0 + $0x6] ss:$16 sm:%s118_s13]   ;;  %v116_v5 = vsel %vm70_vm1, %v636_v3, %v111_v2  ;;  %v626_v8 = vld [vmem:[%s1322_s0 + $0x7] ss:$16 sm:%s63_s21]   ;;  %s745_s28 = smov 96   ;;  %s127_s2 = smov 3 }
   0x5   :  { %v121_v7 = vsel %vm75_vm2, %v637_v4, %v116_v5  ;;  %v627_v9 = vld [vmem:[%s1322_s0 + $0x7] ss:$16 sm:%s68_s22]   ;;  %v66_v10 = vsel %vm65_vm0, %v626_v8, %v625_v6  ;;  %s130_s3 = smov 12  ;;  %v638_v13 = vld [vmem:[%s1322_s0 + $0x86] ss:$16 sm:%s127_s2]   ;;  %s135_s8 = smov 48 }
   0x6   :  { %122 = vrot.lane.b32.xlu1 %v121_v7, %s745_s28  ;;  %v628_v11 = vld [vmem:[%s1322_s0 + $0x7] ss:$16 sm:%s73_s27]   ;;  %v71_v12 = vsel %vm70_vm1, %v627_v9, %v66_v10  ;;  %s140_s9 = smov 192  ;;  %s82_s14 = smov 3  ;;  %vm260_vm8 = vcmask 654848   ;;  %vm351_vm9 = vcmask 523648  }
   0x7   :  { %v639_v14 = vld [vmem:[%s1322_s0 + $0x86] ss:$16 sm:%s130_s3]   ;;  %v76_v15 = vsel %vm75_vm2, %v628_v11, %v71_v12  ;;  %s85_s15 = smov 12  ;;  %s746_s16 = smov 112   ;;  %v629_v20 = vld [vmem:[%s1322_s0 + $0x87] ss:$16 sm:%s82_s14]  }
   0x8   :  { %v133_v16 = vsel %vm65_vm0, %v639_v14, %v638_v13  ;;  %v640_v17 = vld [vmem:[%s1322_s0 + $0x86] ss:$16 sm:%s135_s8]   ;;  %77 = vrot.lane.b32.xlu0 %v76_v15, %s746_s16  ;;  %s90_s19 = smov 48  ;;  %s95_s20 = smov 192  ;;  %vm442_vm10 = vcmask 392448   ;;  %vm533_vm11 = vcmask 261248  }
   0x9   :  { %v641_v18 = vld [vmem:[%s1322_s0 + $0x86] ss:$16 sm:%s140_s9]   ;;  %v138_v19 = vsel %vm70_vm1, %v640_v17, %v133_v16  ;;  %v630_v21 = vld [vmem:[%s1322_s0 + $0x87] ss:$16 sm:%s85_s15]   ;;  %s218_s25 = smov 3  ;;  %s221_s2 = smov 12 }
   0xa   :  { %v631_v22 = vld [vmem:[%s1322_s0 + $0x87] ss:$16 sm:%s90_s19]   ;;  %v143_v23 = vsel %vm75_vm2, %v641_v18, %v138_v19  ;;  %v88_v24 = vsel %vm65_vm0, %v630_v21, %v629_v20  ;;  %v657_v26 = vld [vmem:[%s1322_s0 + $0x8d] ss:$16 sm:%s218_s25]   ;;  %s226_s3 = smov 48  ;;  %s231_s6 = smov 192 }
   0xb   :  { %v632_v25 = vld [vmem:[%s1322_s0 + $0x87] ss:$16 sm:%s95_s20]   ;;  %v93_v27 = vsel %vm70_vm1, %v631_v22, %v88_v24  ;;  %v658_v28 = vld [vmem:[%s1322_s0 + $0x8d] ss:$16 sm:%s221_s2]   ;;  %s195_s7 = smov 3  ;;  %s198_s12 = smov 12 }
   0xc   :  { %v224_v29 = vsel %vm65_vm0, %v658_v28, %v657_v26  ;;  %v659_v30 = vld [vmem:[%s1322_s0 + $0x8d] ss:$16 sm:%s226_s3]   ;;  %v652_v31 = vld [vmem:[%s1322_s0 + $0x85] ss:$16 sm:%s195_s7]   ;;  %s203_s13 = smov 48  ;;  %v98_v32 = vsel %vm75_vm2, %v632_v25, %v93_v27  ;;  %s150_s15 = smov 3 }
   0xd   :  { %v653_v33 = vld [vmem:[%s1322_s0 + $0x85] ss:$16 sm:%s198_s12]   ;;  %v660_v34 = vld [vmem:[%s1322_s0 + $0x8d] ss:$16 sm:%s231_s6]   ;;  %s153_s21 = smov 12  ;;  %s158_s22 = smov 48  ;;  %v229_v36 = vsel %vm70_vm1, %v659_v30, %v224_v29 }
   0xe   :  { %144 = vrot.lane.b32.xlu1 %v143_v23, %s745_s28  ;;  %v654_v35 = vld [vmem:[%s1322_s0 + $0x85] ss:$16 sm:%s203_s13]   ;;  %v201_v37 = vsel %vm65_vm0, %v653_v33, %v652_v31  ;;  %s208_s23 = smov 192  ;;  %s163_s29 = smov 192  ;;  %v234_v45 = vsel %vm75_vm2, %v660_v34, %v229_v36 }
   0xf   :  { %v643_v38 = vld [vmem:[%s1322_s0 + $0x5] ss:$16 sm:%s150_s15]   ;;  %s286_s2 = smov 3  ;;  %s289_s3 = smov 12  ;;  %v206_v46 = vsel %vm70_vm1, %v654_v35, %v201_v37 }
  0x10   :  { %v644_v39 = vld [vmem:[%s1322_s0 + $0x5] ss:$16 sm:%s153_s21]   ;;  %99 = vrot.lane.b32.xlu0 %v98_v32, %s746_s16  ;;  %s294_s8 = smov 48  ;;  %s299_s9 = smov 192 }
  0x11   :  { %v156_v40 = vsel %vm65_vm0, %v644_v39, %v643_v38  ;;  %v645_v41 = vld [vmem:[%s1322_s0 + $0x5] ss:$16 sm:%s158_s22]   ;;  %v671_v44 = vld [vmem:[%s1322_s0 + $0x84] ss:$16 sm:%s286_s2]   ;;  %s263_s28 = smov 3  ;;  %s266_s14 = smov 12 }
  0x12   :  { %v161_v42 = vsel %vm70_vm1, %v645_v41, %v156_v40  ;;  %v646_v43 = vld [vmem:[%s1322_s0 + $0x5] ss:$16 sm:%s163_s29]   ;;  %v672_v49 = vld [vmem:[%s1322_s0 + $0x84] ss:$16 sm:%s289_s3]   ;;  %s747_s15 = smov 80   ;;  %s271_s19 = smov 48 }
  0x13   :  { %v655_v47 = vld [vmem:[%s1322_s0 + $0x85] ss:$16 sm:%s208_s23]   ;;  %v166_v48 = vsel %vm75_vm2, %v646_v43, %v161_v42  ;;  %v673_v50 = vld [vmem:[%s1322_s0 + $0x84] ss:$16 sm:%s294_s8]   ;;  %v292_v51 = vsel %vm65_vm0, %v672_v49, %v671_v44  ;;  %s172_s24 = smov 3  ;;  %s175_s25 = smov 12 }
  0x14   :  { %167 = vrot.lane.b32.xlu2 %v166_v48, %s747_s15  ;;  %v666_v52 = vld [vmem:[%s1322_s0 + $0xc] ss:$16 sm:%s263_s28]   ;;  %v211_v54 = vsel %vm75_vm2, %v655_v47, %v206_v46  ;;  %s180_s29 = smov 48  ;;  %s185_s16 = smov 192  ;;  %v297_v58 = vsel %vm70_vm1, %v673_v50, %v292_v51 }
  0x15   :  { %v667_v53 = vld [vmem:[%s1322_s0 + $0xc] ss:$16 sm:%s266_s14]   ;;  %v674_v55 = vld [vmem:[%s1322_s0 + $0x84] ss:$16 sm:%s299_s9]   ;;  %s354_s5 = smov 3  ;;  %s276_s6 = smov 192 }
  0x16   :  { %235 = vrot.lane.b32.xlu1 %v234_v45, %s747_s15  ;;  %v668_v56 = vld [vmem:[%s1322_s0 + $0xc] ss:$16 sm:%s271_s19]   ;;  %v269_v59 = vsel %vm65_vm0, %v667_v53, %v666_v52  ;;  %s357_s11 = smov 12  ;;  %s362_s28 = smov 48  ;;  %v302_v3 = vsel %vm75_vm2, %v674_v55, %v297_v58 }
  0x17   :  { %v647_v57 = vld [vmem:[%s1322_s0 + $0xd] ss:$16 sm:%s172_s24]   ;;  %v685_v1 = vld [vmem:[%s1322_s0 + $0xb] ss:$16 sm:%s354_s5]   ;;  %s332_s20 = smov 3  ;;  %s335_s21 = smov 12  ;;  %v274_v4 = vsel %vm70_vm1, %v668_v56, %v269_v59 }
  0x18   :  { %v648_v60 = vld [vmem:[%s1322_s0 + $0xd] ss:$16 sm:%s175_s25]   ;;  %212 = vrot.lane.b32.xlu0 %v211_v54, %s747_s15  ;;  %s367_s24 = smov 192  ;;  %s340_s25 = smov 48 }
  0x19   :  { %v649_v61 = vld [vmem:[%s1322_s0 + $0xd] ss:$16 sm:%s180_s29]   ;;  %v178_v62 = vsel %vm65_vm0, %v648_v60, %v647_v57  ;;  %v686_v2 = vld [vmem:[%s1322_s0 + $0xb] ss:$16 sm:%s357_s11]   ;;  %s241_s27 = smov 3  ;;  %s244_s29 = smov 12 }
  0x1a   :  { %v650_v63 = vld [vmem:[%s1322_s0 + $0xd] ss:$16 sm:%s185_s16]   ;;  %v183_v0 = vsel %vm70_vm1, %v649_v61, %v178_v62  ;;  %v669_v5 = vld [vmem:[%s1322_s0 + $0xc] ss:$16 sm:%s276_s6]   ;;  %v360_v8 = vsel %vm65_vm0, %v686_v2, %v685_v1  ;;  %s249_s4 = smov 48  ;;  %s254_s5 = smov 192 }
  0x1b   :  { %v188_v6 = vsel %vm75_vm2, %v650_v63, %v183_v0  ;;  %v687_v7 = vld [vmem:[%s1322_s0 + $0xb] ss:$16 sm:%s362_s28]   ;;  %v681_v9 = vld [vmem:[%s1322_s0 + $0x3] ss:$16 sm:%s332_s20]   ;;  %s748_s6 = smov 64   ;;  %v279_v11 = vsel %vm75_vm2, %v669_v5, %v274_v4  ;;  %s423_s14 = smov 3 }
  0x1c   :  { %189 = vrot.lane.b32.xlu2 %v188_v6, %s747_s15  ;;  %v682_v10 = vld [vmem:[%s1322_s0 + $0x3] ss:$16 sm:%s335_s21]   ;;  %s426_s17 = smov 12  ;;  %v365_v16 = vsel %vm70_vm1, %v687_v7, %v360_v8  ;;  %s345_s18 = smov 192 }
  0x1d   :  { %v688_v12 = vld [vmem:[%s1322_s0 + $0xb] ss:$16 sm:%s367_s24]   ;;  %v683_v13 = vld [vmem:[%s1322_s0 + $0x3] ss:$16 sm:%s340_s25]   ;;  %v338_v17 = vsel %vm65_vm0, %v682_v10, %v681_v9  ;;  %s431_s23 = smov 48  ;;  %s436_s2 = smov 192 }
  0x1e   :  { %303 = vrot.lane.b32.xlu1 %v302_v3, %s748_s6  ;;  %v662_v14 = vld [vmem:[%s1322_s0 + $0x4] ss:$16 sm:%s241_s27]   ;;  %s400_s27 = smov 3  ;;  %v370_v25 = vsel %vm75_vm2, %v688_v12, %v365_v16  ;;  %v343_v26 = vsel %vm70_vm1, %v683_v13, %v338_v17  ;;  %s309_s3 = smov 3 }
  0x1f   :  { %v663_v15 = vld [vmem:[%s1322_s0 + $0x4] ss:$16 sm:%s244_s29]   ;;  %v700_v23 = vld [vmem:[%s1322_s0 + $0x2] ss:$16 sm:%s423_s14]   ;;  %s403_s29 = smov 12  ;;  %s312_s7 = smov 12 }
  0x20   :  { %v247_v18 = vsel %vm65_vm0, %v663_v15, %v662_v14  ;;  %v664_v19 = vld [vmem:[%s1322_s0 + $0x4] ss:$16 sm:%s249_s4]   ;;  %280 = vrot.lane.b32.xlu0 %v279_v11, %s748_s6  ;;  %s317_s8 = smov 48  ;;  %s408_s13 = smov 48 }
  0x21   :  { %v665_v20 = vld [vmem:[%s1322_s0 + $0x4] ss:$16 sm:%s254_s5]   ;;  %v252_v21 = vsel %vm70_vm1, %v664_v19, %v247_v18  ;;  %v701_v24 = vld [vmem:[%s1322_s0 + $0x2] ss:$16 sm:%s426_s17]   ;;  %s322_s28 = smov 192  ;;  %s749_s14 = smov 48  }
  0x22   :  { %v257_v22 = vsel %vm75_vm2, %v665_v20, %v252_v21  ;;  %v684_v27 = vld [vmem:[%s1322_s0 + $0x3] ss:$16 sm:%s345_s18]   ;;  %v702_v28 = vld [vmem:[%s1322_s0 + $0x2] ss:$16 sm:%s431_s23]   ;;  %v429_v29 = vsel %vm65_vm0, %v701_v24, %v700_v23  ;;  %s491_s25 = smov 3  ;;  %s494_s15 = smov 12 }
  0x23   :  { %v695_v30 = vld [vmem:[%s1322_s0 + $0x8b] ss:$16 sm:%s400_s27]   ;;  %v348_v32 = vsel %vm75_vm2, %v684_v27, %v343_v26  ;;  %v703_v33 = vld [vmem:[%s1322_s0 + $0x2] ss:$16 sm:%s436_s2]   ;;  %v434_v37 = vsel %vm70_vm1, %v702_v28, %v429_v29  ;;  %s499_s2 = smov 48  ;;  %s471_s9 = smov 12 }
  0x24   :  { %258 = vrot.lane.b32.xlu2 %v257_v22, %s748_s6  ;;  %v696_v31 = vld [vmem:[%s1322_s0 + $0x8b] ss:$16 sm:%s403_s29]   ;;  %s413_s29 = smov 192  ;;  %s377_s10 = smov 3  ;;  %v439_v46 = vsel %vm75_vm2, %v703_v33, %v434_v37 }
  0x25   :  { %v676_v34 = vld [vmem:[%s1322_s0 + $0x8c] ss:$16 sm:%s309_s3]   ;;  %v406_v38 = vsel %vm65_vm0, %v696_v31, %v695_v30  ;;  %v697_v39 = vld [vmem:[%s1322_s0 + $0x8b] ss:$16 sm:%s408_s13]   ;;  %s468_s3 = smov 3  ;;  %s380_s17 = smov 12 }
  0x26   :  { %371 = vrot.lane.b32.xlu1 %v370_v25, %s749_s14  ;;  %v677_v35 = vld [vmem:[%s1322_s0 + $0x8c] ss:$16 sm:%s312_s7]   ;;  %v411_v47 = vsel %vm70_vm1, %v697_v39, %v406_v38  ;;  %s385_s19 = smov 48  ;;  %s390_s20 = smov 192 }
  0x27   :  { %v678_v36 = vld [vmem:[%s1322_s0 + $0x8c] ss:$16 sm:%s317_s8]   ;;  %v315_v40 = vsel %vm65_vm0, %v677_v35, %v676_v34  ;;  %v714_v44 = vld [vmem:[%s1322_s0 + $0x8a] ss:$16 sm:%s491_s25]   ;;  %s504_s21 = smov 192  ;;  %s476_s24 = smov 48 }
  0x28   :  { %v679_v41 = vld [vmem:[%s1322_s0 + $0x8c] ss:$16 sm:%s322_s28]   ;;  %349 = vrot.lane.b32.xlu0 %v348_v32, %s749_s14  ;;  %v320_v42 = vsel %vm70_vm1, %v678_v36, %v315_v40  ;;  %s750_s26 = smov 32   ;;  %s481_s27 = smov 192 }
  0x29   :  { %v325_v43 = vsel %vm75_vm2, %v679_v41, %v320_v42  ;;  %v715_v45 = vld [vmem:[%s1322_s0 + $0x8a] ss:$16 sm:%s494_s15]   ;;  %v698_v48 = vld [vmem:[%s1322_s0 + $0x8b] ss:$16 sm:%s413_s29]   ;;  %s559_s5 = smov 3  ;;  %s562_s7 = smov 12 }
  0x2a   :  { %v716_v49 = vld [vmem:[%s1322_s0 + $0x8a] ss:$16 sm:%s499_s2]   ;;  %v709_v50 = vld [vmem:[%s1322_s0 + $0x82] ss:$16 sm:%s468_s3]   ;;  %v497_v51 = vsel %vm65_vm0, %v715_v45, %v714_v44  ;;  %v416_v54 = vsel %vm75_vm2, %v698_v48, %v411_v47  ;;  %s567_s12 = smov 48  ;;  %s536_s13 = smov 3 }
  0x2b   :  { %v710_v52 = vld [vmem:[%s1322_s0 + $0x82] ss:$16 sm:%s471_s9]   ;;  %v690_v53 = vld [vmem:[%s1322_s0 + $0x83] ss:$16 sm:%s377_s10]   ;;  %v502_v59 = vsel %vm70_vm1, %v716_v49, %v497_v51  ;;  %s445_s22 = smov 3  ;;  %s448_s23 = smov 12 }
  0x2c   :  { %326 = vrot.lane.b32.xlu2 %v325_v43, %s748_s6  ;;  %v691_v55 = vld [vmem:[%s1322_s0 + $0x83] ss:$16 sm:%s380_s17]   ;;  %v474_v61 = vsel %vm65_vm0, %v710_v52, %v709_v50  ;;  %s539_s6 = smov 12  ;;  %s572_s15 = smov 192 }
  0x2d   :  { %v383_v56 = vsel %vm65_vm0, %v691_v55, %v690_v53  ;;  %v692_v57 = vld [vmem:[%s1322_s0 + $0x83] ss:$16 sm:%s385_s19]   ;;  %v717_v60 = vld [vmem:[%s1322_s0 + $0x8a] ss:$16 sm:%s504_s21]   ;;  %s453_s16 = smov 48  ;;  %s544_s2 = smov 48 }
  0x2e   :  { %440 = vrot.lane.b32.xlu1 %v439_v46, %s750_s26  ;;  %v693_v58 = vld [vmem:[%s1322_s0 + $0x83] ss:$16 sm:%s390_s20]   ;;  %v388_v63 = vsel %vm70_vm1, %v692_v57, %v383_v56  ;;  %v507_v4 = vsel %vm75_vm2, %v717_v60, %v502_v59  ;;  %s458_s3 = smov 192  ;;  %s514_s9 = smov 3 }
  0x2f   :  { %v711_v62 = vld [vmem:[%s1322_s0 + $0x82] ss:$16 sm:%s476_s24]   ;;  %v393_v1 = vsel %vm75_vm2, %v693_v58, %v388_v63  ;;  %v728_v2 = vld [vmem:[%s1322_s0 + $0x81] ss:$16 sm:%s559_s5]   ;;  %s517_s10 = smov 12  ;;  %s590_s29 = smov 48 }
  0x30   :  { %417 = vrot.lane.b32.xlu0 %v416_v54, %s749_s14  ;;  %v712_v0 = vld [vmem:[%s1322_s0 + $0x82] ss:$16 sm:%s481_s27]   ;;  %v479_v5 = vsel %vm70_vm1, %v711_v62, %v474_v61  ;;  %v2_v40 = vld [vmem:[%s1322_s0] ss:$8 sm:$0xf]  }
  0x31   :  { %v729_v3 = vld [vmem:[%s1322_s0 + $0x81] ss:$16 sm:%s562_s7]   ;;  %v723_v7 = vld [vmem:[%s1322_s0 + $0x9] ss:$16 sm:%s536_s13]   ;;  %v484_v12 = vsel %vm75_vm2, %v712_v0, %v479_v5  ;;  %s549_s13 = smov 192 }
  0x32   :  { %v730_v6 = vld [vmem:[%s1322_s0 + $0x81] ss:$16 sm:%s567_s12]   ;;  %v724_v8 = vld [vmem:[%s1322_s0 + $0x9] ss:$16 sm:%s539_s6]   ;;  %v565_v9 = vsel %vm65_vm0, %v729_v3, %v728_v2  ;;  %s522_s6 = smov 48 }
  0x33   :  { %v704_v10 = vld [vmem:[%s1322_s0 + $0xa] ss:$16 sm:%s445_s22]   ;;  %v731_v13 = vld [vmem:[%s1322_s0 + $0x81] ss:$16 sm:%s572_s15]   ;;  %s582_s22 = smov 3  ;;  %v570_v19 = vsel %vm70_vm1, %v730_v6, %v565_v9  ;;  %v542_v20 = vsel %vm65_vm0, %v724_v8, %v723_v7 }
  0x34   :  { %394 = vrot.lane.b32.xlu2 %v393_v1, %s749_s14  ;;  %v705_v11 = vld [vmem:[%s1322_s0 + $0xa] ss:$16 sm:%s448_s23]   ;;  %s585_s23 = smov 12  ;;  %v575_v28 = vsel %vm75_vm2, %v731_v13, %v570_v19  ;;  %v3_v41 = vld [vmem:[%s1322_s0] ss:$8 sm:$0xf0]  }
  0x35   :  { %v451_v14 = vsel %vm65_vm0, %v705_v11, %v704_v10  ;;  %v706_v15 = vld [vmem:[%s1322_s0 + $0xa] ss:$16 sm:%s453_s16]   ;;  %v725_v16 = vld [vmem:[%s1322_s0 + $0x9] ss:$16 sm:%s544_s2]   ;;  %s595_s16 = smov 192  ;;  %v5_v42 = vsel %vm4_vm3, %v3_v41, %v2_v40 }
  0x36   :  { %508 = vrot.lane.b32.xlu1 %v507_v4, %s750_s26  ;;  %v456_v17 = vsel %vm70_vm1, %v706_v15, %v451_v14  ;;  %v707_v18 = vld [vmem:[%s1322_s0 + $0xa] ss:$16 sm:%s458_s3]   ;;  %v547_v29 = vsel %vm70_vm1, %v725_v16, %v542_v20  ;;  %7 = vst.msk [vmem:[%s1323_s1] ss:$8 sm:$0x3] %vm6_vm4, %v5_v42  }
  0x37   :  { %v719_v21 = vld [vmem:[%s1322_s0 + $0x1] ss:$16 sm:%s514_s9]   ;;  %v726_v23 = vld [vmem:[%s1322_s0 + $0x9] ss:$16 sm:%s549_s13]   ;;  %v461_v24 = vsel %vm75_vm2, %v707_v18, %v456_v17  ;;  %s527_s9 = smov 192 }
  0x38   :  { %v720_v22 = vld [vmem:[%s1322_s0 + $0x1] ss:$16 sm:%s517_s10]   ;;  %485 = vrot.lane.b32.xlu0 %v484_v12, %s750_s26  ;;  %v552_v36 = vsel %vm75_vm2, %v726_v23, %v547_v29  ;;  %604 = vst.msk [vmem:[%s1323_s1 - $0xf] ss:$8 sm:$0xc] %vm6_vm4, %v5_v42  }
  0x39   :  { %v721_v25 = vld [vmem:[%s1322_s0 + $0x1] ss:$16 sm:%s522_s6]   ;;  %v733_v26 = vld [vmem:[%s1322_s0 + $0x89] ss:$16 sm:%s582_s22]   ;;  %v520_v30 = vsel %vm65_vm0, %v720_v22, %v719_v21 }
  0x3a   :  { %v734_v27 = vld [vmem:[%s1322_s0 + $0x89] ss:$16 sm:%s585_s23]   ;;  %v525_v37 = vsel %vm70_vm1, %v721_v25, %v520_v30  ;;  %v722_v38 = vld [vmem:[%s1322_s0 + $0x1] ss:$16 sm:%s527_s9]  }
  0x3b   :  { %v588_v31 = vsel %vm65_vm0, %v734_v27, %v733_v26  ;;  %v735_v32 = vld [vmem:[%s1322_s0 + $0x89] ss:$16 sm:%s590_s29]   ;;  %v530_v39 = vsel %vm75_vm2, %v722_v38, %v525_v37  ;;  %605 = vst.msk [vmem:[%s1323_s1 - $0x1e] ss:$8 sm:$0x30] %vm6_vm4, %v5_v42  }
  0x3c   :  { %v736_v33 = vld [vmem:[%s1322_s0 + $0x89] ss:$16 sm:%s595_s16]   ;;  %462 = vrot.lane.b32.xlu2 %v461_v24, %s750_s26  ;;  %v593_v34 = vsel %vm70_vm1, %v735_v32, %v588_v31  ;;  %s751_s26 = smov 16   ;;  %606 = vst.msk [vmem:[%s1323_s1 - $0x2d] ss:$8 sm:$0xc0] %vm6_vm4, %v5_v42  }
  0x3d   :  { %v598_v35 = vsel %vm75_vm2, %v736_v33, %v593_v34  ;;  %v613_v43 = vld [vmem:[%s1322_s0 + $0x80] ss:$8 sm:$0xf]  }
  0x3e   :  { %576 = vrot.lane.b32.xlu1 %v575_v28, %s751_s26  ;;  %v614_v44 = vld [vmem:[%s1322_s0 + $0x80] ss:$8 sm:$0xf0]  }
  0x3f   :  { %v34_v45 = vsel %vm4_vm3, %v614_v44, %v613_v43  ;;  %v619_v46 = vld [vmem:[%s1322_s0 + $0xc0] ss:$8 sm:$0xf]  }
  0x40   :  { %553 = vrot.lane.b32.xlu0 %v552_v36, %s751_s26  ;;  %v620_v47 = vld [vmem:[%s1322_s0 + $0xc0] ss:$8 sm:$0xf0]   ;;  %615 = vst.msk [vmem:[%s1323_s1 + $0x10] ss:$8 sm:$0x3] %vm6_vm4, %v34_v45  }
  0x41   :  { %616 = vst.msk [vmem:[%s1323_s1 + $0x1] ss:$8 sm:$0xc] %vm6_vm4, %v34_v45   ;;  %v49_v48 = vsel %vm4_vm3, %v620_v47, %v619_v46  ;;  %v607_v49 = vld [vmem:[%s1322_s0 + $0x40] ss:$8 sm:$0xf]  }
  0x42   :  { %617 = vst.msk [vmem:[%s1323_s1 - $0xe] ss:$8 sm:$0x30] %vm6_vm4, %v34_v45   ;;  %v608_v50 = vld [vmem:[%s1322_s0 + $0x40] ss:$8 sm:$0xf0]  }
  0x43   :  { %618 = vst.msk [vmem:[%s1323_s1 - $0x1d] ss:$8 sm:$0xc0] %vm6_vm4, %v34_v45   ;;  %v19_v51 = vsel %vm4_vm3, %v608_v50, %v607_v49 }
  0x44   :  { %531 = vrot.lane.b32.xlu2 %v530_v39, %s751_s26  ;;  %621 = vst.msk [vmem:[%s1323_s1 + $0x14] ss:$8 sm:$0x3] %vm6_vm4, %v49_v48  }
  0x45   :  { %622 = vst.msk [vmem:[%s1323_s1 + $0x5] ss:$8 sm:$0xc] %vm6_vm4, %v49_v48  }
  0x46   :  { %623 = vst.msk [vmem:[%s1323_s1 - $0xa] ss:$8 sm:$0x30] %vm6_vm4, %v49_v48  }
  0x47   :  { %624 = vst.msk [vmem:[%s1323_s1 - $0x19] ss:$8 sm:$0xc0] %vm6_vm4, %v49_v48  }
  0x48   :  { %609 = vst.msk [vmem:[%s1323_s1 + $0x4] ss:$8 sm:$0x3] %vm6_vm4, %v19_v51  }
  0x49   :  { %610 = vst.msk [vmem:[%s1323_s1 - $0xb] ss:$8 sm:$0xc] %vm6_vm4, %v19_v51  }
  0x4a   :  { %611 = vst.msk [vmem:[%s1323_s1 - $0x1a] ss:$8 sm:$0x30] %vm6_vm4, %v19_v51  }
  0x4b   :  { %612 = vst.msk [vmem:[%s1323_s1 - $0x29] ss:$8 sm:$0xc0] %vm6_vm4, %v19_v51  }
  0x4c   :  { %599 = vrot.lane.b32.xlu2 %v598_v35, %s751_s26 }
  0x6e   :  { %v168_v52 = vpop.permute.xlu2 %167  }
  0x76   :  { %v190_v53 = vpop.permute.xlu2 %189  }
  0x77   :  { %651 = vst.msk [vmem:[%s1323_s1 + $0x8] sm:$0xff] %vm169_vm5, %v190_v53  }
  0x78   :  { %v123_v54 = vpop.permute.xlu1 %122  }
  0x7a   :  { %v78_v55 = vpop.permute.xlu0 %77  }
  0x7b   :  { %80 = vst.msk [vmem:[%s1323_s1] sm:$0xff] %vm79_vm6, %v78_v55  }
  0x7c   :  { %125 = vst.msk [vmem:[%s1323_s1] sm:$0xff] %vm124_vm7, %v123_v54  }
  0x7d   :  { %170 = vst.msk [vmem:[%s1323_s1] sm:$0xff] %vm169_vm5, %v168_v52  }
  0x7e   :  { %v259_v56 = vpop.permute.xlu2 %258  }
  0x7f   :  { %261 = vst.msk [vmem:[%s1323_s1] sm:$0xff] %vm260_vm8, %v259_v56  }
  0x80   :  { %v145_v57 = vpop.permute.xlu1 %144  }
  0x82   :  { %v100_v58 = vpop.permute.xlu0 %99  }
  0x83   :  { %633 = vst.msk [vmem:[%s1323_s1 + $0x10] sm:$0xff] %vm79_vm6, %v100_v58  }
  0x84   :  { %642 = vst.msk [vmem:[%s1323_s1 + $0x10] sm:$0xff] %vm124_vm7, %v145_v57  }
  0x86   :  { %v327_v59 = vpop.permute.xlu2 %326  }
  0x88   :  { %v236_v60 = vpop.permute.xlu1 %235  }
  0x89   :  { %661 = vst.msk [vmem:[%s1323_s1 + $0x18] sm:$0xff] %vm169_vm5, %v236_v60  }
  0x8a   :  { %680 = vst.msk [vmem:[%s1323_s1 + $0x18] sm:$0xff] %vm260_vm8, %v327_v59   ;;  %v213_v61 = vpop.permute.xlu0 %212  }
  0x8b   :  { %656 = vst.msk [vmem:[%s1323_s1 + $0x10] sm:$0xff] %vm169_vm5, %v213_v61  }
  0x8e   :  { %v395_v62 = vpop.permute.xlu2 %394  }
  0x90   :  { %v304_v63 = vpop.permute.xlu1 %303  }
  0x91   :  { %675 = vst.msk [vmem:[%s1323_s1 + $0x10] sm:$0xff] %vm260_vm8, %v304_v63  }
  0x92   :  { %694 = vst.msk [vmem:[%s1323_s1 + $0x10] sm:$0xff] %vm351_vm9, %v395_v62   ;;  %v281_v0 = vpop.permute.xlu0 %280  }
  0x93   :  { %670 = vst.msk [vmem:[%s1323_s1 + $0x8] sm:$0xff] %vm260_vm8, %v281_v0  }
  0x96   :  { %v463_v1 = vpop.permute.xlu2 %462  }
  0x98   :  { %v372_v2 = vpop.permute.xlu1 %371  }
  0x99   :  { %689 = vst.msk [vmem:[%s1323_s1 + $0x8] sm:$0xff] %vm351_vm9, %v372_v2  }
  0x9a   :  { %708 = vst.msk [vmem:[%s1323_s1 + $0x8] sm:$0xff] %vm442_vm10, %v463_v1   ;;  %v350_v3 = vpop.permute.xlu0 %349  }
  0x9b   :  { %352 = vst.msk [vmem:[%s1323_s1] sm:$0xff] %vm351_vm9, %v350_v3  }
  0x9e   :  { %v532_v4 = vpop.permute.xlu2 %531  }
  0xa0   :  { %v441_v5 = vpop.permute.xlu1 %440  }
  0xa1   :  { %443 = vst.msk [vmem:[%s1323_s1] sm:$0xff] %vm442_vm10, %v441_v5  }
  0xa2   :  { %534 = vst.msk [vmem:[%s1323_s1] sm:$0xff] %vm533_vm11, %v532_v4   ;;  %v418_v6 = vpop.permute.xlu0 %417  }
  0xa3   :  { %699 = vst.msk [vmem:[%s1323_s1 + $0x18] sm:$0xff] %vm351_vm9, %v418_v6  }
  0xa6   :  { %v600_v7 = vpop.permute.xlu2 %599  }
  0xa8   :  { %v509_v8 = vpop.permute.xlu1 %508  }
  0xa9   :  { %718 = vst.msk [vmem:[%s1323_s1 + $0x18] sm:$0xff] %vm442_vm10, %v509_v8  }
  0xaa   :  { %737 = vst.msk [vmem:[%s1323_s1 + $0x18] sm:$0xff] %vm533_vm11, %v600_v7   ;;  %v486_v9 = vpop.permute.xlu0 %485  }
  0xab   :  { %713 = vst.msk [vmem:[%s1323_s1 + $0x10] sm:$0xff] %vm442_vm10, %v486_v9  }
  0xb0   :  { %v577_v10 = vpop.permute.xlu1 %576  }
  0xb1   :  { %732 = vst.msk [vmem:[%s1323_s1 + $0x10] sm:$0xff] %vm533_vm11, %v577_v10  }
  0xb2   :  { %v554_v11 = vpop.permute.xlu0 %553  }
  0xb3   :  { %727 = vst.msk [vmem:[%s1323_s1 + $0x8] sm:$0xff] %vm533_vm11, %v554_v11  }

// kernel: cnn_forward.1
= control target key start
LH: loop header
LB: loop body
LE: loop exit
PB: predicated region body
PF: predicated region fallthrough
CT: control target
= control target key end

     0   :  { %s4417_s0 = inlined_call_operand.vmem [shape: f32[56,28], index: 0, kind: input, shape index: {}]   ;;  %s4418_s1 = inlined_call_operand.vmem [shape: f32[90,224], index: 1, kind: input, shape index: {}]   ;;  %s4419_s2 = inlined_call_operand.vmem [shape: f32[1,224], index: 2, kind: input, shape index: {}]   ;;  %s4420_s3 = inlined_call_operand.vmem [shape: f32[1,224], index: 3, kind: input, shape index: {}]   ;;  %s4421_s4 = inlined_call_operand.vmem [shape: f32[1,224], index: 4, kind: input, shape index: {}]   ;;  %s4422_s5 = inlined_call_operand.vmem [shape: f32[224,8], index: 5, kind: input, shape index: {}]   ;;  %s4423_s6 = inlined_call_operand.vmem [shape: f32[8,224], index: 6, kind: input, shape index: {}]   ;;  %s4424_s7 = inlined_call_operand.vmem [shape: f32[224,112], index: 7, kind: input, shape index: {}]   ;;  %s4425_s8 = inlined_call_operand.vmem [shape: f32[224,112], index: 8, kind: input, shape index: {}]   ;;  %s4426_s9 = inlined_call_operand.vmem [shape: f32[28,56], index: 9, kind: input, shape index: {}]   ;;  %s4427_s10 = inlined_call_operand.vmem [shape: f32[28,56], index: 10, kind: input, shape index: {}]   ;;  %s4428_s11 = inlined_call_operand.vmem [shape: f32[384,224], index: 11, kind: input, shape index: {}]   ;;  %s4429_s12 = inlined_call_operand.vmem [shape: f32[1,224], index: 12, kind: input, shape index: {}]   ;;  %s4430_s13 = inlined_call_operand.vmem [shape: f32[1,224], index: 13, kind: input, shape index: {}]   ;;  %s4431_s14 = inlined_call_operand.vmem [shape: f32[1,224], index: 14, kind: input, shape index: {}]   ;;  %s4432_s15 = inlined_call_operand.vmem [shape: f32[224,16], index: 15, kind: input, shape index: {}]   ;;  %s4433_s16 = inlined_call_operand.vmem [shape: f32[16,224], index: 16, kind: input, shape index: {}]   ;;  %s4434_s17 = inlined_call_operand.vmem [shape: f32[224,112], index: 17, kind: input, shape index: {}]   ;;  %s4435_s18 = inlined_call_operand.vmem [shape: f32[224,112], index: 18, kind: input, shape index: {}]   ;;  %s4436_s19 = inlined_call_operand.vmem [shape: f32[14,28], index: 19, kind: input, shape index: {}]   ;;  %s4437_s20 = inlined_call_operand.vmem [shape: f32[14,28], index: 20, kind: input, shape index: {}]   ;;  %s4438_s21 = inlined_call_operand.vmem [shape: f32[784,128], index: 21, kind: input, shape index: {}]   ;;  %s4439_s22 = inlined_call_operand.vmem [shape: f32[1,128], index: 22, kind: input, shape index: {}]   ;;  %s4440_s23 = inlined_call_operand.hbm [shape: f32[2,128], index: 23, kind: output, shape index: {}]  }
   0x1   :  { %4456 = sst [smem:[#allocation5_spill]] %s4417_s0 }
   0x2   :  { %4457 = sst [smem:[#allocation6_spill]] %s4418_s1 }
   0x3   :  { %4458 = sst [smem:[#allocation7_spill]] %s4419_s2 }
   0x4   :  { %4459 = sst [smem:[#allocation8_spill]] %s4420_s3 }
   0x5   :  { %4460 = sst [smem:[#allocation9_spill]] %s4421_s4 }
   0x6   :  { %4461 = sst [smem:[#allocation10_spill]] %s4422_s5 }
   0x7   :  { %4462 = sst [smem:[#allocation11_spill]] %s4423_s6 }
   0x8   :  { %4463 = sst [smem:[#allocation12_spill]] %s4424_s7 }
   0x9   :  { %s4464_s24 = sld [smem:[#allocation5_spill]]  ;;  %s2427_s1 = smov 1  }
   0xf   :  { %v77_v0 = vld [vmem:[%s4464_s24 + $0x10] sm:$0xff]  ;;  %v75_v1 = vld [vmem:[%s4464_s24] sm:$0xff] }
  0x10   :  { %93 = vrot.lane.b32.xlu1 %v77_v0, %s2427_s1  ;;  %89 = vrot.lane.b32.xlu0 %v75_v1, %s2427_s1  ;;  %v79_v2 = vld [vmem:[%s4464_s24 + $0x20] sm:$0xff] }
  0x11   :  { %97 = vrot.lane.b32.xlu2 %v79_v2, %s2427_s1 }
  0x12   :  { %28 = vsyncpa [#allocation3], 0  ;;  %v78_v3 = vld [vmem:[%s4464_s24 + $0x18] sm:$0xff]  ;;  %v76_v4 = vld [vmem:[%s4464_s24 + $0x8] sm:$0xff]  ;;  %vm110_vm0 = vcmask 7168   ;;  %vm118_vm1 = vcmask 236544  }
  0x13   :  { %v80_v5 = vld [vmem:[%s4464_s24 + $0x28] sm:$0xff]  ;;  %v81_v6 = vld [vmem:[%s4464_s24 + $0x30] sm:$0xff]  ;;  %vm130_vm2 = vcmask 1040384   ;;  %s2428_s30 = smov 30   ;;  %vm160_vm3 = vcmask 1046528   ;;  %vm156_vm4 = vcmask 1043456  }
  0x14   :  { %vm158_vm5 = vcmask 1044480   ;;  %s2429_s24 = smov 60   ;;  %vm293_vm6 = vcmask 1041408   ;;  %vm177_vm7 = vcmask 1042432   ;;  %vm233_vm8 = vcmask 490496   ;;  %s4466_s3 = sld [smem:[#allocation10_spill]] }
  0x15   :  { %vm225_vm9 = vcmask 244736   ;;  %vm271_vm10 = vcmask 736256   ;;  %vm402_vm11 = vcmask 785408   ;;  %s4468_s4 = sld [smem:[#allocation11_spill]]  ;;  %vm503_vm13 = vcmask 64512   ;;  %s2431_s27 = smov 8  }
  0x16   :  { %s4479_s2 = sld [smem:[#allocation12_spill]]  ;;  %s2433_s25 = smov 112  }
  0x17   :  { %s4480_s6 = sld [smem:[#allocation8_spill]]  ;;  %s2434_s5 = smov 96  }
  0x18   :  { %95 = vrot.lane.b32.xlu1 %v78_v3, %s2427_s1  ;;  %91 = vrot.lane.b32.xlu0 %v76_v4, %s2427_s1  ;;  %s4481_s7 = sld [smem:[#allocation9_spill]]  ;;  %s2437_s26 = smov 80  }
  0x19   :  { %99 = vrot.lane.b32.xlu2 %v80_v5, %s2427_s1  ;;  %s2291_s28 = sshll.u32 %s4440_s23, 4  ;;  %s2292_s28 = int_to_ptr.hbm [resolvable:$true] %s2291_s28 }
  0x20   :  { %101 = vrot.lane.b32.xlu0 %v81_v6, %s2427_s1  ;;  %s4465_s1 = sld [smem:[#allocation6_spill]] }
  0x26   :  { %v263_v38 = vld [vmem:[%s4465_s1 + $0xb0] sm:$0x3]  ;;  %v264_v39 = vld [vmem:[%s4465_s1 + $0xb8] sm:$0x3]  ;;  %v261_v42 = vld [vmem:[%s4465_s1 + $0xa0] sm:$0xff] }
  0x27   :  { %2300 = vmatpush.msk.msra.mxu0 %vm293_vm6, %v263_v38  ;;  %2308 = vmatpush.msk.msra.mxu1 %vm293_vm6, %v264_v39  ;;  %v262_v43 = vld [vmem:[%s4465_s1 + $0xa8] sm:$0xff]  ;;  %v259_v47 = vld [vmem:[%s4465_s1 + $0x90] sm:$0xff]  ;;  %v260_v50 = vld [vmem:[%s4465_s1 + $0x98] sm:$0xff]  ;;  %vm1101_vm6 = vcmask 982016  }
  0x28   :  { %v257_v54 = vld [vmem:[%s4465_s1 + $0x80] sm:$0xff]  ;;  %v258_v56 = vld [vmem:[%s4465_s1 + $0x88] sm:$0xff]  ;;  %v255_v3 = vld [vmem:[%s4465_s1 + $0x70] sm:$0xff] }
  0x29   :  { %305 = vmatpush.msra.mxu0 %v261_v42  ;;  %343 = vmatpush.msra.mxu1 %v262_v43  ;;  %v256_v4 = vld [vmem:[%s4465_s1 + $0x78] sm:$0xff]  ;;  %v253_v5 = vld [vmem:[%s4465_s1 + $0x60] sm:$0xff]  ;;  %v254_v6 = vld [vmem:[%s4465_s1 + $0x68] sm:$0xff] }
  0x2b   :  { %306 = vmatpush.msra.mxu0 %v259_v47  ;;  %344 = vmatpush.msra.mxu1 %v260_v50  ;;  %v2775_v50 = vld [vmem:[%s4466_s3 + $0x78] sm:$0xff] }
  0x2c   :  { %453 = vmatpush.msra.mxu2 %v2775_v50 }
  0x2d   :  { %307 = vmatpush.msra.mxu0 %v257_v54  ;;  %345 = vmatpush.msra.mxu1 %v258_v56  ;;  %v2787_v54 = vld [vmem:[%s4466_s3 + $0x68] sm:$0xff]  ;;  %v2799_v56 = vld [vmem:[%s4466_s3 + $0x58] sm:$0xff] }
  0x2f   :  { %308 = vmatpush.msra.mxu0 %v255_v3  ;;  %346 = vmatpush.msra.mxu1 %v256_v4  ;;  %v2853_v3 = vld [vmem:[%s4466_s3 + $0xb8] sm:$0xff]  ;;  %v2859_v4 = vld [vmem:[%s4466_s3 + $0x30] sm:$0xff] }
  0x31   :  { %309 = vmatpush.msra.mxu0 %v253_v5  ;;  %347 = vmatpush.msra.mxu1 %v254_v6 }
  0x6b   :  { %v98_v7 = vpop.permute.xlu2 %97 }
  0x6c   :  { %v115_v8 = vsel %vm110_vm0, 0.0, %v98_v7  ;;  %v251_v7 = vld [vmem:[%s4465_s1 + $0x50] sm:$0xff] }
  0x6d   :  { %v2587_v12 = vsel %vm118_vm1, %v115_v8, 0.0  ;;  %v252_v8 = vld [vmem:[%s4465_s1 + $0x58] sm:$0xff]  ;;  %310 = vmatpush.msra.mxu0 %v251_v7  ;;  %v2865_v7 = vld [vmem:[%s4466_s3 + $0xb0] sm:$0xff] }
  0x6e   :  { %v145_v14 = vrot.slane %v2587_v12, 7  ;;  %v169_v58 = vrot.slane %v2587_v12, 1  ;;  %348 = vmatpush.msra.mxu1 %v252_v8  ;;  %v2871_v8 = vld [vmem:[%s4466_s3 + $0x28] sm:$0xff] }
  0x73   :  { %v100_v9 = vpop.permute.xlu2 %99 }
  0x74   :  { %v116_v10 = vsel %vm110_vm0, 0.0, %v100_v9  ;;  %v249_v9 = vld [vmem:[%s4465_s1 + $0x40] sm:$0xff] }
  0x75   :  { %v2584_v11 = vsel %vm118_vm1, %v116_v10, 0.0  ;;  %v250_v10 = vld [vmem:[%s4465_s1 + $0x48] sm:$0xff]  ;;  %311 = vmatpush.msra.mxu0 %v249_v9 }
  0x76   :  { %v147_v13 = vrot.slane %v2584_v11, 7  ;;  %v171_v59 = vrot.slane %v2584_v11, 1  ;;  %349 = vmatpush.msra.mxu1 %v250_v10  ;;  %v2877_v9 = vld [vmem:[%s4466_s3 + $0xa8] sm:$0xff]  ;;  %v2882_v10 = vld [vmem:[%s4466_s3 + $0x20] sm:$0xff] }
  0x78   :  { %v2594_v15 = vsel %vm130_vm2, %v145_v14, %v147_v13  ;;  %v172_v62 = vsel %vm160_vm3, %v169_v58, %v171_v59 }
  0x82   :  { %v94_v16 = vpop.permute.xlu1 %93  ;;  %v90_v17 = vpop.permute.xlu0 %89 }
  0x83   :  { %v111_v18 = vsel %vm110_vm0, 0.0, %v90_v17  ;;  %v113_v20 = vsel %vm110_vm0, 0.0, %v94_v16  ;;  %v243_v16 = vld [vmem:[%s4465_s1 + $0x10] sm:$0xff]  ;;  %v244_v17 = vld [vmem:[%s4465_s1 + $0x18] sm:$0xff] }
  0x84   :  { %v2598_v19 = vsel %vm118_vm1, %v111_v18, 0.0  ;;  %v121_v21 = vsel %vm118_vm1, %v113_v20, 0.0  ;;  %v241_v18 = vld [vmem:[%s4465_s1] sm:$0xff]  ;;  %v242_v20 = vld [vmem:[%s4465_s1 + $0x8] sm:$0xff] }
  0x85   :  { %181 = vrot.lane.b32.xlu1 %v2598_v19, %s2428_s30  ;;  %v164_v24 = vrot.slane %v121_v21, 1  ;;  %v134_v27 = vrot.slane %v121_v21, 7  ;;  %v161_v30 = vrot.slane %v2598_v19, 1  ;;  %v131_v34 = vrot.slane %v2598_v19, 7 }
  0x8a   :  { %v96_v22 = vpop.permute.xlu1 %95  ;;  %v92_v23 = vpop.permute.xlu0 %91 }
  0x8b   :  { %v114_v25 = vsel %vm110_vm0, 0.0, %v96_v22  ;;  %v112_v26 = vsel %vm110_vm0, 0.0, %v92_v23  ;;  %v155_v22 = vsel %vm130_vm2, 0.0, %v131_v34 }
  0x8c   :  { %v122_v28 = vsel %vm118_vm1, %v114_v25, 0.0  ;;  %v120_v29 = vsel %vm118_vm1, %v112_v26, 0.0 }
  0x8d   :  { %v136_v31 = vrot.slane %v122_v28, 7  ;;  %v132_v32 = vrot.slane %v120_v29, 7  ;;  %v162_v33 = vrot.slane %v120_v29, 1  ;;  %183 = vrot.lane.b32.xlu0 %v120_v29, %s2428_s30  ;;  %v166_v37 = vrot.slane %v122_v28, 1 }
  0x8f   :  { %v165_v35 = vsel %vm160_vm3, %v162_v33, %v164_v24  ;;  %v163_v36 = vsel %vm160_vm3, %v161_v30, %v162_v33  ;;  %v2622_v40 = vsel %vm130_vm2, %v132_v32, %v134_v27  ;;  %v2627_v41 = vsel %vm130_vm2, %v131_v34, %v132_v32 }
  0x90   :  { %206 = vrot.lane.b32.xlu1 %v165_v35, %s2429_s24  ;;  %204 = vrot.lane.b32.xlu2 %v163_v36, %s2429_s24  ;;  %v137_v44 = vsel %vm130_vm2, %v134_v27, %v136_v31  ;;  %v2637_v45 = vsel %vm130_vm2, %v136_v31, %v145_v14  ;;  %v167_v52 = vsel %vm160_vm3, %v164_v24, %v166_v37  ;;  %v178_v61 = vsel %vm177_vm7, %v166_v37, 0.0  ;;  %v246_v14 = vld [vmem:[%s4465_s1 + $0x28] sm:$0xff] }
  0x91   :  { %v157_v48 = vsel %vm156_vm4, %v137_v44, 0.0  ;;  %v170_v60 = vsel %vm160_vm3, %v166_v37, %v169_v58  ;;  %v2810_v58 = vld [vmem:[%s4466_s3 + $0x50] sm:$0xff] }
  0x92   :  { %v102_v46 = vpop.permute.xlu0 %101  ;;  %v2648_v51 = vsel %vm158_vm5, %v157_v48, %v136_v31  ;;  %v179_v0 = vsel %vm156_vm4, %v178_v61, %v170_v60 }
  0x93   :  { %v117_v49 = vsel %vm110_vm0, 0.0, %v102_v46 }
  0x94   :  { %v125_v53 = vsel %vm118_vm1, %v117_v49, 0.0  ;;  %vm990_vm1 = vcmask 457728  }
  0x95   :  { %208 = vrot.lane.b32.xlu0 %v167_v52, %s2429_s24  ;;  %v149_v55 = vrot.slane %v125_v53, 7  ;;  %v173_v63 = vrot.slane %v125_v53, 1 }
  0x97   :  { %v2662_v57 = vsel %vm130_vm2, %v147_v13, %v149_v55  ;;  %v174_v1 = vsel %vm160_vm3, %v171_v59, %v173_v63  ;;  %v180_v2 = vsel %vm160_vm3, %v173_v63, 0.0  ;;  %v245_v13 = vld [vmem:[%s4465_s1 + $0x20] sm:$0xff]  ;;  %v2815_v59 = vld [vmem:[%s4466_s3 + $0xd0] sm:$0xff]  ;;  %v2829_v63 = vld [vmem:[%s4466_s3 + $0xc8] sm:$0xff] }
  0x98   :  { %187 = vrot.lane.b32.xlu1 %v122_v28, %s2428_s30  ;;  %185 = vrot.lane.b32.xlu2 %v121_v21, %s2428_s30  ;;  %v2793_v55 = vld [vmem:[%s4466_s3 + $0x60] sm:$0xff] }
  0x9d   :  { %189 = vrot.lane.b32.xlu0 %v2587_v12, %s2428_s30  ;;  %v248_v12 = vld [vmem:[%s4465_s1 + $0x38] sm:$0xff] }
  0x9e   :  { %350 = vmatpush.msra.mxu1 %v248_v12 }
  0xa0   :  { %212 = vrot.lane.b32.xlu1 %v172_v62, %s2429_s24  ;;  %210 = vrot.lane.b32.xlu2 %v179_v0, %s2429_s24  ;;  %v2823_v62 = vld [vmem:[%s4466_s3 + $0x48] sm:$0xff]  ;;  %v2835_v0 = vld [vmem:[%s4466_s3 + $0x40] sm:$0xff] }
  0xa1   :  { %351 = vmatpush.msra.mxu1 %v246_v14  ;;  %v2902_v14 = vld [vmem:[%s4466_s3 + $0x98] sm:$0xff] }
  0xa3   :  { %352 = vmatpush.msra.mxu1 %v244_v17 }
  0xa5   :  { %214 = vrot.lane.b32.xlu0 %v174_v1, %s2429_s24  ;;  %353 = vmatpush.msra.mxu1 %v242_v20  ;;  %v2841_v1 = vld [vmem:[%s4466_s3 + $0xc0] sm:$0xff]  ;;  %v2920_v20 = vld [vmem:[%s4466_s3 + $0x8] sm:$0xff] }
  0xa8   :  { %191 = vrot.lane.b32.xlu2 %v2584_v11, %s2428_s30  ;;  %193 = vrot.lane.b32.xlu1 %v125_v53, %s2428_s30  ;;  %v247_v11 = vld [vmem:[%s4465_s1 + $0x30] sm:$0xff]  ;;  %s4467_s1 = sld [smem:[#allocation7_spill]] }
  0xa9   :  { %312 = vmatpush.msra.mxu0 %v247_v11  ;;  %v2887_v11 = vld [vmem:[%s4466_s3 + $0xa0] sm:$0xff] }
  0xab   :  { %313 = vmatpush.msra.mxu0 %v245_v13  ;;  %v2896_v13 = vld [vmem:[%s4466_s3 + $0x18] sm:$0xff] }
  0xad   :  { %314 = vmatpush.msra.mxu0 %v243_v16  ;;  %v2908_v16 = vld [vmem:[%s4466_s3 + $0x10] sm:$0xff] }
  0xae   :  { %v265_v12 = vld [vmem:[%s4467_s1] sm:$0x3] }
  0xaf   :  { %315 = vmatpush.msra.mxu0 %v241_v18  ;;  %v268_v17 = vperm.slane %v265_v12, 1  ;;  %v2914_v18 = vld [vmem:[%s4466_s3 + $0x90] sm:$0xff] }
  0xb0   :  { %216 = vrot.lane.b32.xlu2 %v180_v2, %s2429_s24  ;;  %v2847_v2 = vld [vmem:[%s4466_s3 + $0x38] sm:$0xff] }
  0xea   :  { %v205_v23 = vpop.permute.xlu2 %204 }
  0xf2   :  { %v186_v19 = vpop.permute.xlu2 %185 }
  0xf3   :  { %v228_v31 = vsel %vm225_vm9, %v2622_v40, %v186_v19  ;;  %v2948_v19 = vld [vmem:[%s4466_s3 + $0x80] sm:$0xff] }
  0xf7   :  { %v182_v21 = vpop.permute.xlu1 %181 }
  0xf8   :  { %v226_v24 = vsel %vm225_vm9, %v155_v22, %v182_v21  ;;  %v267_v21 = vperm.slane %v265_v12, 0 }
  0xf9   :  { %v234_v25 = vsel %vm233_vm8, %v226_v24, %v205_v23 }
  0xfa   :  { %2301 = vmatmul.msk.f32.vlgmr.msra.gmra.mxu0 %vm271_vm10, %v234_v25  ;;  %2309 = vmatmul.msk.f32.vlgmr.msra.gmra.mxu1 %vm271_vm10, %v234_v25  ;;  %v211_v35 = vpop.permute.xlu2 %210  ;;  %v2928_v25 = vld [vmem:[%s4466_s3 + $0x88] sm:$0xff] }
  0xff   :  { %v184_v26 = vpop.permute.xlu0 %183 }
 0x100   :  { %v227_v27 = vsel %vm225_vm9, %v2627_v41, %v184_v26  ;;  %v2934_v26 = vld [vmem:[%s4466_s3] sm:$0xff] }
 0x102   :  { %v207_v28 = vpop.permute.xlu1 %206  ;;  %v192_v41 = vpop.permute.xlu2 %191 }
 0x103   :  { %v235_v29 = vsel %vm233_vm8, %v227_v27, %v207_v28  ;;  %v231_v43 = vsel %vm225_vm9, %v2594_v15, %v192_v41 }
 0x104   :  { %2302 = vmatmul.msk.f32.gmra.mxu0 %vm271_vm10, %v235_v29  ;;  %2310 = vmatmul.msk.f32.gmra.mxu1 %vm271_vm10, %v235_v29 }
 0x107   :  { %v209_v30 = vpop.permute.xlu0 %208 }
 0x108   :  { %v236_v32 = vsel %vm233_vm8, %v228_v31, %v209_v30 }
 0x10a   :  { %v188_v33 = vpop.permute.xlu1 %187  ;;  %v217_v47 = vpop.permute.xlu2 %216 }
 0x10b   :  { %v229_v34 = vsel %vm225_vm9, %v2648_v51, %v188_v33  ;;  %v2781_v51 = vld [vmem:[%s4466_s3 + $0x70] sm:$0xff] }
 0x10c   :  { %2303 = vmatmul.msk.f32.gmra.mxu0 %vm271_vm10, %v236_v32  ;;  %2311 = vmatmul.msk.f32.gmra.mxu1 %vm271_vm10, %v236_v32  ;;  %v237_v36 = vsel %vm233_vm8, %v229_v34, %v211_v35 }
 0x10d   :  { %454 = vmatpush.msra.mxu2 %v2781_v51 }
 0x10f   :  { %v190_v37 = vpop.permute.xlu0 %189  ;;  %455 = vmatpush.msra.mxu2 %v2787_v54 }
 0x110   :  { %v230_v39 = vsel %vm225_vm9, %v2637_v45, %v190_v37 }
 0x111   :  { %456 = vmatpush.msra.mxu2 %v2793_v55 }
 0x112   :  { %v213_v38 = vpop.permute.xlu1 %212 }
 0x113   :  { %v238_v40 = vsel %vm233_vm8, %v230_v39, %v213_v38  ;;  %457 = vmatpush.msra.mxu2 %v2799_v56 }
 0x114   :  { %2304 = vmatmul.msk.f32.gmra.mxu0 %vm271_vm10, %v237_v36  ;;  %2312 = vmatmul.msk.f32.gmra.mxu1 %vm271_vm10, %v237_v36 }
 0x115   :  { %458 = vmatpush.msra.mxu2 %v2810_v58 }
 0x117   :  { %v215_v42 = vpop.permute.xlu0 %214  ;;  %459 = vmatpush.msra.mxu2 %v2823_v62 }
 0x118   :  { %v239_v44 = vsel %vm233_vm8, %v231_v43, %v215_v42 }
 0x119   :  { %460 = vmatpush.msra.mxu2 %v2835_v0 }
 0x11a   :  { %v194_v46 = vpop.permute.xlu1 %193 }
 0x11b   :  { %v232_v45 = vsel %vm225_vm9, %v2662_v57, %v194_v46  ;;  %v2805_v57 = vld [vmem:[%s4466_s3 + $0xd8] sm:$0xff]  ;;  %461 = vmatpush.msra.mxu2 %v2847_v2  ;;  %vm1123_vm9 = vcmask 1045504  }
 0x11c   :  { %2305 = vmatmul.msk.f32.gmra.mxu0 %vm271_vm10, %v238_v40  ;;  %2313 = vmatmul.msk.f32.gmra.mxu1 %vm271_vm10, %v238_v40  ;;  %v240_v48 = vsel %vm233_vm8, %v232_v45, %v217_v47  ;;  %vm2344_vm8 = vmneg %vm130_vm2 }
 0x11d   :  { %477 = vmatpush.msra.mxu3 %v2805_v57  ;;  %462 = vmatpush.msra.mxu2 %v2859_v4 }
 0x11f   :  { %478 = vmatpush.msra.mxu3 %v2815_v59  ;;  %463 = vmatpush.msra.mxu2 %v2871_v8 }
 0x121   :  { %479 = vmatpush.msra.mxu3 %v2829_v63  ;;  %464 = vmatpush.msra.mxu2 %v2882_v10 }
 0x123   :  { %480 = vmatpush.msra.mxu3 %v2841_v1  ;;  %465 = vmatpush.msra.mxu2 %v2896_v13 }
 0x124   :  { %2306 = vmatmul.msk.f32.gmra.mxu0 %vm271_vm10, %v239_v44  ;;  %2314 = vmatmul.msk.f32.gmra.mxu1 %vm271_vm10, %v239_v44 }
 0x125   :  { %481 = vmatpush.msra.mxu3 %v2853_v3  ;;  %466 = vmatpush.msra.mxu2 %v2908_v16 }
 0x127   :  { %482 = vmatpush.msra.mxu3 %v2865_v7  ;;  %467 = vmatpush.msra.mxu2 %v2920_v20 }
 0x129   :  { %483 = vmatpush.msra.mxu3 %v2877_v9  ;;  %468 = vmatpush.msra.mxu2 %v2934_v26 }
 0x12b   :  { %484 = vmatpush.msra.mxu3 %v2887_v11 }
 0x12c   :  { %2307 = vmatmul.msk.f32.gmra.mxu0 %vm271_vm10, %v240_v48  ;;  %2315 = vmatmul.msk.f32.gmra.mxu1 %vm271_vm10, %v240_v48 }
 0x12d   :  { %485 = vmatpush.msra.mxu3 %v2902_v14 }
 0x12f   :  { %486 = vmatpush.msra.mxu3 %v2914_v18 }
 0x131   :  { %487 = vmatpush.msra.mxu3 %v2928_v25 }
 0x133   :  { %488 = vmatpush.msra.mxu3 %v2948_v19 }
 0x177   :  { %v2768_v49 = vpop.f32.mrf.mxu0  ;;  %v2770_v15 = vpop.f32.mrf.mxu1 }
 0x178   :  { %v2937_v27 = vadd.f32 %v2770_v15, %v268_v17  ;;  %v2951_v30 = vadd.f32 %v2768_v49, %v267_v21 }
 0x17a   :  { %v4455_v34 = vmax.f32 %v2937_v27, 0.0  ;;  %v376_v39 = vmax.f32 %v2951_v30, 0.0 }
 0x17c   :  { %v403_v47 = vsel %vm402_vm11, %v4455_v34, 0.0 }
 0x181   :  { %v320_v52 = vpop.f32.mrf.mxu0  ;;  %v358_v53 = vpop.f32.mrf.mxu1 }
 0x182   :  { %v2922_v22 = vadd.f32 %v358_v53, %v268_v17  ;;  %v2939_v28 = vadd.f32 %v320_v52, %v267_v21 }
 0x184   :  { %v4454_v31 = vmax.f32 %v2922_v22, 0.0  ;;  %v378_v35 = vmax.f32 %v2939_v28, 0.0 }
 0x186   :  { %v404_v40 = vsel %vm402_vm11, %v4454_v31, 0.0  ;;  %v390_v48 = vadd.f32 %v378_v35, %v376_v39 }
 0x189   :  { %v323_v60 = vpop.f32.mrf.mxu0  ;;  %v361_v61 = vpop.f32.mrf.mxu1 }
 0x18a   :  { %v2942_v29 = vadd.f32 %v361_v61, %v268_v17  ;;  %v2955_v32 = vadd.f32 %v323_v60, %v267_v21  ;;  %v405_v60 = vadd.f32 %v404_v40, %v403_v47 }
 0x18c   :  { %v4453_v36 = vmax.f32 %v2942_v29, 0.0  ;;  %v4447_v43 = vmax.f32 %v2955_v32, 0.0 }
 0x18e   :  { %v406_v49 = vsel %vm402_vm11, %v4453_v36, 0.0  ;;  %v391_v61 = vadd.f32 %v390_v48, %v4447_v43 }
 0x191   :  { %v326_v5 = vpop.f32.mrf.mxu0  ;;  %v364_v6 = vpop.f32.mrf.mxu1 }
 0x192   :  { %v2957_v33 = vadd.f32 %v364_v6, %v268_v17  ;;  %v2963_v37 = vadd.f32 %v326_v5, %v267_v21 }
 0x194   :  { %v4446_v44 = vmax.f32 %v2957_v33, 0.0  ;;  %v4449_v15 = vmax.f32 %v2963_v37, 0.0 }
 0x196   :  { %v408_v5 = vsel %vm402_vm11, %v4446_v44, 0.0 }
 0x199   :  { %v329_v23 = vpop.f32.mrf.mxu0  ;;  %v367_v24 = vpop.f32.mrf.mxu1 }
 0x19a   :  { %v2965_v38 = vadd.f32 %v367_v24, %v268_v17  ;;  %v2973_v46 = vadd.f32 %v329_v23, %v267_v21  ;;  %v407_v23 = vadd.f32 %v406_v49, %v405_v60  ;;  %v392_v24 = vadd.f32 %v391_v61, %v4449_v15 }
 0x19c   :  { %v4448_v52 = vmax.f32 %v2965_v38, 0.0  ;;  %v4451_v6 = vmax.f32 %v2973_v46, 0.0 }
 0x19e   :  { %v393_v44 = vadd.f32 %v392_v24, %v4451_v6 }
 0x1a1   :  { %v332_v41 = vpop.f32.mrf.mxu0  ;;  %v370_v42 = vpop.f32.mrf.mxu1 }
 0x1a2   :  { %v2975_v45 = vadd.f32 %v370_v42, %v268_v17  ;;  %v2989_v53 = vadd.f32 %v332_v41, %v267_v21  ;;  %v410_v41 = vsel %vm402_vm11, %v4448_v52, 0.0  ;;  %v409_v42 = vadd.f32 %v408_v5, %v407_v23 }
 0x1a4   :  { %v4450_v12 = vmax.f32 %v2975_v45, 0.0  ;;  %v4452_v40 = vmax.f32 %v2989_v53, 0.0  ;;  %v411_v61 = vadd.f32 %v410_v41, %v409_v42 }
 0x1a6   :  { %v412_v43 = vsel %vm402_vm11, %v4450_v12, 0.0  ;;  %v394_v52 = vadd.f32 %v393_v44, %v4452_v40 }
 0x1a7   :  { %v413_v23 = vadd.f32 %v412_v43, %v411_v61 }
 0x1a9   :  { %v335_v47 = vpop.f32.mrf.mxu0  ;;  %v373_v48 = vpop.f32.mrf.mxu1 }
 0x1aa   :  { %v3009_v49 = vadd.f32 %v335_v47, %v267_v21  ;;  %v3011_v60 = vadd.f32 %v373_v48, %v268_v17 }
 0x1ac   :  { %v388_v15 = vmax.f32 %v3009_v49, 0.0  ;;  %v389_v5 = vmax.f32 %v3011_v60, 0.0 }
 0x1ae   :  { %v395_v24 = vadd.f32 %v394_v52, %v388_v15  ;;  %v414_v12 = vsel %vm402_vm11, %v389_v5, 0.0  ;;  %v501_v52 = vld [vmem:[%s4468_s4] sm:$0xff] }
 0x1af   :  { %v415_v21 = vadd.f32 %v414_v12, %v413_v23  ;;  %v502_v12 = vld [vmem:[%s4468_s4 + $0x8] sm:$0xff]  ;;  %522 = vmatpush.msrb.mxu3 %v501_v52  ;;  %v4478_v23 = vmax.f32 %v2989_v53, 0.0 }
 0x1b0   :  { %v396_v47 = vrot.slane %v395_v24, 4  ;;  %542 = vmatpush.msrb.mxu2 %v502_v12 }
 0x1b1   :  { %v416_v17 = vrot.slane %v415_v21, 4 }
 0x1b2   :  { %v397_v48 = vadd.f32 %v396_v47, %v395_v24 }
 0x1b3   :  { %v417_v41 = vadd.f32 %v416_v17, %v415_v21 }
 0x1b4   :  { %v398_v42 = vrot.slane %v397_v48, 2 }
 0x1b5   :  { %v418_v6 = vrot.slane %v417_v41, 2 }
 0x1b6   :  { %v399_v44 = vadd.f32 %v398_v42, %v397_v48 }
 0x1b7   :  { %v419_v40 = vadd.f32 %v418_v6, %v417_v41  ;;  %v2430_v6 = vmov 1568.0  }
 0x1b8   :  { %v400_v36 = vrot.slane %v399_v44, 1  ;;  %2393 = vrcp.f32 %v2430_v6 }
 0x1b9   :  { %v420_v31 = vrot.slane %v419_v40, 1 }
 0x1ba   :  { %v401_v34 = vadd.f32 %v400_v36, %v399_v44 }
 0x1bb   :  { %v421_v43 = vadd.f32 %v420_v31, %v419_v40 }
 0x1bc   :  { %469 = vmatmul.f32.vlgmr.msra.gmra.mxu2 %v401_v34 }
 0x1bd   :  { %2316 = vmatmul.msk.f32.vlgmr.msra.gmra.mxu3 %vm402_vm11, %v421_v43  ;;  %635 = vmatpush.msra.mxu2 %v2805_v57 }
 0x1be   :  { %611 = vmatpush.msra.mxu3 %v2775_v50  ;;  %v2394_v31 = vpop.eup %2393 }
 0x1bf   :  { %636 = vmatpush.msra.mxu2 %v2815_v59  ;;  %v494_v50 = vmul.f32 1568.0, %v2394_v31  ;;  %vm498_vm12 = vweird.f32 %v2394_v31 }
 0x1c0   :  { %612 = vmatpush.msra.mxu3 %v2781_v51 }
 0x1c1   :  { %637 = vmatpush.msra.mxu2 %v2829_v63  ;;  %v495_v51 = vsub.f32 1.0, %v494_v50 }
 0x1c2   :  { %613 = vmatpush.msra.mxu3 %v2787_v54 }
 0x1c3   :  { %638 = vmatpush.msra.mxu2 %v2841_v1  ;;  %v496_v54 = vmul.f32 %v2394_v31, %v495_v51 }
 0x1c4   :  { %614 = vmatpush.msra.mxu3 %v2793_v55 }
 0x1c5   :  { %639 = vmatpush.msra.mxu2 %v2853_v3  ;;  %v497_v55 = vadd.f32 %v2394_v31, %v496_v54 }
 0x1c6   :  { %615 = vmatpush.msra.mxu3 %v2799_v56 }
 0x1c7   :  { %640 = vmatpush.msra.mxu2 %v2865_v7  ;;  %v4469_v7 = vmax.f32 %v2937_v27, 0.0  ;;  %v4474_v27 = vmax.f32 %v2963_v37, 0.0 }
 0x1c8   :  { %616 = vmatpush.msra.mxu3 %v2810_v58  ;;  %v3055_v58 = vsel %vm498_vm12, %v2394_v31, %v497_v55 }
 0x1c9   :  { %641 = vmatpush.msra.mxu2 %v2877_v9  ;;  %v4470_v9 = vmax.f32 %v2922_v22, 0.0 }
 0x1ca   :  { %617 = vmatpush.msra.mxu3 %v2823_v62 }
 0x1cb   :  { %642 = vmatpush.msra.mxu2 %v2887_v11  ;;  %v4471_v11 = vmax.f32 %v2942_v29, 0.0 }
 0x1cc   :  { %618 = vmatpush.msra.mxu3 %v2835_v0 }
 0x1cd   :  { %643 = vmatpush.msra.mxu2 %v2902_v14 }
 0x1ce   :  { %619 = vmatpush.msra.mxu3 %v2847_v2 }
 0x1cf   :  { %644 = vmatpush.msra.mxu2 %v2914_v18 }
 0x1d0   :  { %620 = vmatpush.msra.mxu3 %v2859_v4 }
 0x1d1   :  { %645 = vmatpush.msra.mxu2 %v2928_v25 }
 0x1d2   :  { %621 = vmatpush.msra.mxu3 %v2871_v8 }
 0x1d3   :  { %646 = vmatpush.msra.mxu2 %v2948_v19  ;;  %v4475_v19 = vmax.f32 %v2965_v38, 0.0 }
 0x1d4   :  { %622 = vmatpush.msra.mxu3 %v2882_v10 }
 0x1d6   :  { %623 = vmatpush.msra.mxu3 %v2896_v13 }
 0x1d8   :  { %624 = vmatpush.msra.mxu3 %v2908_v16  ;;  %v4472_v16 = vmax.f32 %v2955_v32, 0.0 }
 0x1da   :  { %625 = vmatpush.msra.mxu3 %v2920_v20  ;;  %v4473_v20 = vmax.f32 %v2957_v33, 0.0  ;;  %v4476_v33 = vmax.f32 %v2973_v46, 0.0 }
 0x1dc   :  { %626 = vmatpush.msra.mxu3 %v2934_v26 }
 0x23f   :  { %v470_v56 = vpop.f32.mrf.mxu2 }
 0x240   :  { %v490_v57 = vpop.f32.mrf.mxu3 }
 0x241   :  { %v491_v59 = vadd.f32 %v490_v57, %v470_v56 }
 0x243   :  { %v500_v62 = vmul.f32 %v3055_v58, %v491_v59 }
 0x245   :  { %2317 = vmatmul.msk.f32.vlgmr.msrb.gmra.mxu3 %vm503_vm13, %v500_v62  ;;  %2318 = vmatmul.msk.f32.vlgmr.msrb.gmra.mxu2 %vm503_vm13, %v500_v62 }
 0x246   :  { %681 = vmatpush.msrb.mxu2 %v501_v52  ;;  %701 = vmatpush.msrb.mxu3 %v502_v12 }
 0x2c8   :  { %v524_v63 = vpop.f32.mrf.mxu3  ;;  %v544_v0 = vpop.f32.mrf.mxu2 }
 0x2c9   :  { %v547_v1 = vperm.slane %v524_v63, 0  ;;  %v548_v2 = vperm.slane %v544_v0, 0 }
 0x2cb   :  { %v3064_v3 = vsub.f32 %v376_v39, %v547_v1  ;;  %v3068_v4 = vsub.f32 %v378_v35, %v547_v1  ;;  %v3072_v8 = vsub.f32 %v4469_v7, %v548_v2  ;;  %v3076_v10 = vsub.f32 %v4470_v9, %v548_v2 }
 0x2cc   :  { %v3080_v13 = vsub.f32 %v4471_v11, %v548_v2  ;;  %v3086_v18 = vsub.f32 %v4472_v16, %v547_v1  ;;  %v3090_v25 = vsub.f32 %v4473_v20, %v548_v2  ;;  %v3098_v28 = vsub.f32 %v4474_v27, %v547_v1  ;;  %v764_v27 = vld [vmem:[%s4479_s2 + $0x70] sm:$0xff] }
 0x2cd   :  { %v564_v14 = vmul.f32 %v3072_v8, %v3072_v8  ;;  %v566_v22 = vmul.f32 %v3076_v10, %v3076_v10  ;;  %v563_v26 = vmul.f32 %v3064_v3, %v3064_v3  ;;  %v565_v29 = vmul.f32 %v3068_v4, %v3068_v4 }
 0x2ce   :  { %v3104_v30 = vsub.f32 %v4475_v19, %v548_v2  ;;  %v568_v32 = vmul.f32 %v3080_v13, %v3080_v13  ;;  %v3110_v34 = vsub.f32 %v4476_v33, %v547_v1  ;;  %v567_v35 = vmul.f32 %v3086_v18, %v3086_v18  ;;  %v763_v19 = vld [vmem:[%s4479_s2 + $0x68] sm:$0xff]  ;;  %v777_v33 = vld [vmem:[%s4479_s2 + $0xd8] sm:$0xff] }
 0x2cf   :  { %v577_v36 = vadd.f32 %v565_v29, %v563_v26  ;;  %v589_v37 = vsel %vm402_vm11, %v564_v14, 0.0  ;;  %v4477_v39 = vmax.f32 %v2975_v45, 0.0  ;;  %v570_v38 = vmul.f32 %v3090_v25, %v3090_v25  ;;  %v890_v26 = vld [vmem:[%s4425_s8 + $0x78] sm:$0xff]  ;;  %v889_v29 = vld [vmem:[%s4425_s8 + $0x70] sm:$0xff]  ;;  %841 = vmatpush.msrb.mxu1 %v777_v33 }
 0x2d0   :  { %v590_v61 = vsel %vm402_vm11, %v566_v22, 0.0  ;;  %v3124_v46 = vsub.f32 %v4478_v23, %v547_v1  ;;  %v569_v24 = vmul.f32 %v3098_v28, %v3098_v28  ;;  %v3130_v17 = vsub.f32 %v389_v5, %v548_v2  ;;  %v765_v22 = vld [vmem:[%s4479_s2 + $0x78] sm:$0xff]  ;;  %v775_v23 = vld [vmem:[%s4479_s2 + $0xc8] sm:$0xff]  ;;  %v752_v33 = vld [vmem:[%s4479_s2 + $0x10] sm:$0xff] }
 0x2d1   :  { %v3117_v40 = vsub.f32 %v4477_v39, %v548_v2  ;;  %v578_v21 = vadd.f32 %v577_v36, %v567_v35  ;;  %v591_v47 = vadd.f32 %v590_v61, %v589_v37  ;;  %v572_v45 = vmul.f32 %v3104_v30, %v3104_v30  ;;  %799 = vmatpush.msrb.mxu0 %v765_v22  ;;  %v902_v35 = vld [vmem:[%s4425_s8 + $0xd8] sm:$0xff]  ;;  %v762_v36 = vld [vmem:[%s4479_s2 + $0x60] sm:$0xff]  ;;  %v776_v39 = vld [vmem:[%s4479_s2 + $0xd0] sm:$0xff] }
 0x2d2   :  { %v592_v48 = vsel %vm402_vm11, %v568_v32, 0.0  ;;  %v3137_v41 = vsub.f32 %v388_v15, %v547_v1  ;;  %v571_v53 = vmul.f32 %v3110_v34, %v3110_v34  ;;  %v594_v60 = vsel %vm402_vm11, %v570_v38, 0.0  ;;  %v888_v32 = vld [vmem:[%s4425_s8 + $0x68] sm:$0xff]  ;;  %v887_v37 = vld [vmem:[%s4425_s8 + $0x60] sm:$0xff]  ;;  %v901_v61 = vld [vmem:[%s4425_s8 + $0xd0] sm:$0xff]  ;;  %842 = vmatpush.msrb.mxu1 %v776_v39 }
 0x2d3   :  { %v579_v42 = vadd.f32 %v578_v21, %v569_v24  ;;  %v593_v44 = vadd.f32 %v592_v48, %v591_v47  ;;  %v574_v43 = vmul.f32 %v3117_v40, %v3117_v40  ;;  %v573_v5 = vmul.f32 %v3124_v46, %v3124_v46  ;;  %800 = vmatpush.msrb.mxu0 %v764_v27  ;;  %v761_v24 = vld [vmem:[%s4479_s2 + $0x58] sm:$0xff]  ;;  %v900_v47 = vld [vmem:[%s4425_s8 + $0xc8] sm:$0xff]  ;;  %v774_v48 = vld [vmem:[%s4479_s2 + $0xc0] sm:$0xff] }
 0x2d4   :  { %v576_v49 = vmul.f32 %v3130_v17, %v3130_v17  ;;  %v596_v15 = vsel %vm402_vm11, %v572_v45, 0.0  ;;  %v575_v6 = vmul.f32 %v3137_v41, %v3137_v41  ;;  %v886_v21 = vld [vmem:[%s4425_s8 + $0x58] sm:$0xff]  ;;  %843 = vmatpush.msrb.mxu1 %v775_v23  ;;  %v879_v22 = vld [vmem:[%s4425_s8 + $0x20] sm:$0xff]  ;;  %v751_v39 = vld [vmem:[%s4479_s2 + $0x8] sm:$0xff] }
 0x2d5   :  { %v580_v52 = vadd.f32 %v579_v42, %v571_v53  ;;  %v595_v12 = vadd.f32 %v594_v60, %v593_v44  ;;  %v598_v51 = vsel %vm402_vm11, %v574_v43, 0.0  ;;  %801 = vmatpush.msrb.mxu0 %v763_v19  ;;  %v899_v53 = vld [vmem:[%s4425_s8 + $0xc0] sm:$0xff]  ;;  %v760_v44 = vld [vmem:[%s4479_s2 + $0x50] sm:$0xff]  ;;  %v773_v60 = vld [vmem:[%s4479_s2 + $0xb8] sm:$0xff] }
 0x2d6   :  { %v600_v56 = vsel %vm402_vm11, %v576_v49, 0.0  ;;  %v885_v43 = vld [vmem:[%s4425_s8 + $0x50] sm:$0xff]  ;;  %v884_v49 = vld [vmem:[%s4425_s8 + $0x48] sm:$0xff]  ;;  %844 = vmatpush.msrb.mxu1 %v774_v48  ;;  %v753_v27 = vld [vmem:[%s4479_s2 + $0x18] sm:$0xff] }
 0x2d7   :  { %v581_v31 = vadd.f32 %v580_v52, %v573_v5  ;;  %v597_v50 = vadd.f32 %v596_v15, %v595_v12  ;;  %802 = vmatpush.msrb.mxu0 %v762_v36  ;;  %v898_v5 = vld [vmem:[%s4425_s8 + $0xb8] sm:$0xff]  ;;  %v759_v12 = vld [vmem:[%s4479_s2 + $0x48] sm:$0xff]  ;;  %v772_v15 = vld [vmem:[%s4479_s2 + $0xb0] sm:$0xff] }
 0x2d8   :  { %845 = vmatpush.msrb.mxu1 %v773_v60  ;;  %v878_v19 = vld [vmem:[%s4425_s8 + $0x18] sm:$0xff]  ;;  %v877_v36 = vld [vmem:[%s4425_s8 + $0x10] sm:$0xff]  ;;  %v892_v23 = vld [vmem:[%s4425_s8 + $0x88] sm:$0xff] }
 0x2d9   :  { %v582_v54 = vadd.f32 %v581_v31, %v575_v6  ;;  %v599_v55 = vadd.f32 %v598_v51, %v597_v50  ;;  %803 = vmatpush.msrb.mxu0 %v761_v24  ;;  %v758_v31 = vld [vmem:[%s4479_s2 + $0x40] sm:$0xff]  ;;  %v771_v51 = vld [vmem:[%s4479_s2 + $0xa8] sm:$0xff] }
 0x2da   :  { %v883_v50 = vld [vmem:[%s4425_s8 + $0x40] sm:$0xff]  ;;  %846 = vmatpush.msrb.mxu1 %v772_v15 }
 0x2db   :  { %v583_v57 = vrot.slane %v582_v54, 4  ;;  %v601_v59 = vadd.f32 %v600_v56, %v599_v55  ;;  %804 = vmatpush.msrb.mxu0 %v760_v44  ;;  %v757_v55 = vld [vmem:[%s4479_s2 + $0x38] sm:$0xff]  ;;  %v750_v24 = vld [vmem:[%s4479_s2] sm:$0xff] }
 0x2dc   :  { %v882_v56 = vld [vmem:[%s4425_s8 + $0x38] sm:$0xff]  ;;  %847 = vmatpush.msrb.mxu1 %v771_v51  ;;  %v706_v48 = vld [vmem:[%s4480_s6] sm:$0x3] }
 0x2dd   :  { %v584_v62 = vadd.f32 %v583_v57, %v582_v54  ;;  %v602_v63 = vrot.slane %v601_v59, 4  ;;  %805 = vmatpush.msrb.mxu0 %v759_v12  ;;  %v896_v54 = vld [vmem:[%s4425_s8 + $0xa8] sm:$0xff]  ;;  %v756_v57 = vld [vmem:[%s4479_s2 + $0x30] sm:$0xff]  ;;  %v730_v60 = vld [vmem:[%s4481_s7] sm:$0x3] }
 0x2de   :  { %v732_v15 = vperm.slane %v730_v60, 0 }
 0x2df   :  { %v585_v0 = vrot.slane %v584_v62, 2  ;;  %v603_v1 = vadd.f32 %v602_v63, %v601_v59  ;;  %806 = vmatpush.msrb.mxu0 %v758_v31  ;;  %v881_v59 = vld [vmem:[%s4425_s8 + $0x30] sm:$0xff]  ;;  %v880_v63 = vld [vmem:[%s4425_s8 + $0x28] sm:$0xff] }
 0x2e1   :  { %v586_v2 = vadd.f32 %v585_v0, %v584_v62  ;;  %v604_v7 = vrot.slane %v603_v1, 2  ;;  %807 = vmatpush.msrb.mxu0 %v757_v55  ;;  %v755_v62 = vld [vmem:[%s4479_s2 + $0x28] sm:$0xff] }
 0x2e3   :  { %v587_v9 = vrot.slane %v586_v2, 1  ;;  %v605_v11 = vadd.f32 %v604_v7, %v603_v1  ;;  %808 = vmatpush.msrb.mxu0 %v756_v57 }
 0x2e5   :  { %v588_v14 = vadd.f32 %v587_v9, %v586_v2  ;;  %v606_v16 = vrot.slane %v605_v11, 1  ;;  %809 = vmatpush.msrb.mxu0 %v755_v62 }
 0x2e7   :  { %627 = vmatmul.f32.vlgmr.msra.gmra.mxu3 %v588_v14  ;;  %v607_v20 = vadd.f32 %v606_v16, %v605_v11  ;;  %v754_v16 = vld [vmem:[%s4479_s2 + $0x20] sm:$0xff] }
 0x2e8   :  { %945 = vmatpush.msra.mxu3 %v902_v35  ;;  %810 = vmatpush.msrb.mxu0 %v754_v16  ;;  %v768_v35 = vld [vmem:[%s4479_s2 + $0x90] sm:$0xff] }
 0x2e9   :  { %2319 = vmatmul.msk.f32.vlgmr.msra.gmra.mxu2 %vm402_vm11, %v607_v20  ;;  %v770_v20 = vld [vmem:[%s4479_s2 + $0xa0] sm:$0xff] }
 0x2ea   :  { %903 = vmatpush.msra.mxu2 %v890_v26  ;;  %946 = vmatpush.msra.mxu3 %v901_v61  ;;  %v895_v26 = vld [vmem:[%s4425_s8 + $0xa0] sm:$0xff]  ;;  %v876_v61 = vld [vmem:[%s4425_s8 + $0x8] sm:$0xff] }
 0x2eb   :  { %848 = vmatpush.msrb.mxu1 %v770_v20  ;;  %811 = vmatpush.msrb.mxu0 %v753_v27 }
 0x2ec   :  { %904 = vmatpush.msra.mxu2 %v889_v29  ;;  %947 = vmatpush.msra.mxu3 %v900_v47  ;;  %v769_v29 = vld [vmem:[%s4479_s2 + $0x98] sm:$0xff]  ;;  %v875_v47 = vld [vmem:[%s4425_s8] sm:$0xff] }
 0x2ed   :  { %849 = vmatpush.msrb.mxu1 %v769_v29  ;;  %812 = vmatpush.msrb.mxu0 %v752_v33 }
 0x2ee   :  { %905 = vmatpush.msra.mxu2 %v888_v32  ;;  %948 = vmatpush.msra.mxu3 %v899_v53  ;;  %v894_v32 = vld [vmem:[%s4425_s8 + $0x98] sm:$0xff]  ;;  %v708_v53 = vperm.slane %v706_v48, 0 }
 0x2ef   :  { %850 = vmatpush.msrb.mxu1 %v768_v35  ;;  %813 = vmatpush.msrb.mxu0 %v751_v39 }
 0x2f0   :  { %906 = vmatpush.msra.mxu2 %v887_v37  ;;  %949 = vmatpush.msra.mxu3 %v898_v5  ;;  %v893_v37 = vld [vmem:[%s4425_s8 + $0x90] sm:$0xff] }
 0x2f1   :  { %814 = vmatpush.msrb.mxu0 %v750_v24 }
 0x2f2   :  { %907 = vmatpush.msra.mxu2 %v886_v21  ;;  %v766_v21 = vld [vmem:[%s4479_s2 + $0x80] sm:$0xff] }
 0x2f4   :  { %908 = vmatpush.msra.mxu2 %v885_v43 }
 0x2f6   :  { %909 = vmatpush.msra.mxu2 %v884_v49 }
 0x2f8   :  { %910 = vmatpush.msra.mxu2 %v883_v50 }
 0x2fa   :  { %911 = vmatpush.msra.mxu2 %v882_v56 }
 0x2fc   :  { %912 = vmatpush.msra.mxu2 %v881_v59 }
 0x2fe   :  { %913 = vmatpush.msra.mxu2 %v880_v63 }
 0x300   :  { %914 = vmatpush.msra.mxu2 %v879_v22 }
 0x302   :  { %915 = vmatpush.msra.mxu2 %v878_v19 }
 0x304   :  { %916 = vmatpush.msra.mxu2 %v877_v36 }
 0x306   :  { %917 = vmatpush.msra.mxu2 %v876_v61 }
 0x308   :  { %918 = vmatpush.msra.mxu2 %v875_v47 }
 0x36a   :  { %v628_v38 = vpop.f32.mrf.mxu3 }
 0x36c   :  { %v648_v45 = vpop.f32.mrf.mxu2 }
 0x36d   :  { %v649_v42 = vadd.f32 %v648_v45, %v628_v38  ;;  %v767_v38 = vld [vmem:[%s4479_s2 + $0x88] sm:$0xff]  ;;  %v891_v45 = vld [vmem:[%s4425_s8 + $0x80] sm:$0xff] }
 0x36e   :  { %851 = vmatpush.msrb.mxu1 %v767_v38 }
 0x36f   :  { %v651_v52 = vmul.f32 %v649_v42, %v3055_v58  ;;  %v897_v58 = vld [vmem:[%s4425_s8 + $0xb0] sm:$0xff]  ;;  %v709_v42 = vperm.slane %v706_v48, 1 }
 0x370   :  { %950 = vmatpush.msra.mxu3 %v897_v58  ;;  %852 = vmatpush.msrb.mxu1 %v766_v21  ;;  %v733_v58 = vperm.slane %v730_v60, 1 }
 0x371   :  { %v652_v6 = vadd.f32 1e-05, %v651_v52 }
 0x372   :  { %951 = vmatpush.msra.mxu3 %v896_v54 }
 0x373   :  { %2395 = vrsqrt.f32 %v652_v6  ;;  %vm659_vm15 = vweird.f32 %v652_v6 }
 0x374   :  { %952 = vmatpush.msra.mxu3 %v895_v26 }
 0x376   :  { %953 = vmatpush.msra.mxu3 %v894_v32 }
 0x378   :  { %954 = vmatpush.msra.mxu3 %v893_v37 }
 0x379   :  { %v2396_v0 = vpop.eup %2395 }
 0x37a   :  { %v654_v1 = vmul.f32 %v2396_v0, %v652_v6  ;;  %vm660_vm14 = vweird.f32 %v2396_v0  ;;  %955 = vmatpush.msra.mxu3 %v892_v23 }
 0x37b   :  { %vm661_vm0 = vmor %vm659_vm15, %vm660_vm14  ;;  %vm2028_vm14 = vcmask 916480   ;;  %vm2033_vm15 = vcmask 523264  }
 0x37c   :  { %v655_v2 = vmul.f32 %v2396_v0, %v654_v1  ;;  %956 = vmatpush.msra.mxu3 %v891_v45 }
 0x37e   :  { %v656_v7 = vmul.f32 0.5, %v655_v2 }
 0x380   :  { %v657_v9 = vsub.f32 1.5, %v656_v7 }
 0x382   :  { %v658_v11 = vmul.f32 %v2396_v0, %v657_v9 }
 0x384   :  { %v662_v14 = vsel %vm661_vm0, %v2396_v0, %v658_v11  ;;  %vm2035_vm0 = vcmask 392192  }
 0x385   :  { %2320 = vmatmul.msk.f32.vlgmr.msrb.gmra.mxu2 %vm503_vm13, %v662_v14  ;;  %2321 = vmatmul.msk.f32.vlgmr.msrb.gmra.mxu3 %vm503_vm13, %v662_v14 }
 0x408   :  { %v683_v44 = vpop.f32.mrf.mxu2  ;;  %v703_v43 = vpop.f32.mrf.mxu3 }
 0x409   :  { %v712_v5 = vmul.f32 %v708_v53, %v683_v44  ;;  %v713_v52 = vmul.f32 %v709_v42, %v703_v43 }
 0x40b   :  { %v714_v12 = vperm.slane %v712_v5, 0  ;;  %v715_v49 = vperm.slane %v713_v52, 0 }
 0x40d   :  { %v716_v6 = vmul.f32 %v714_v12, %v3064_v3  ;;  %v717_v31 = vmul.f32 %v715_v49, %v3072_v8  ;;  %v718_v54 = vmul.f32 %v714_v12, %v3068_v4  ;;  %v719_v55 = vmul.f32 %v715_v49, %v3076_v10 }
 0x40e   :  { %v720_v3 = vmul.f32 %v714_v12, %v3086_v18  ;;  %v721_v8 = vmul.f32 %v715_v49, %v3080_v13  ;;  %v722_v4 = vmul.f32 %v714_v12, %v3098_v28  ;;  %v723_v10 = vmul.f32 %v715_v49, %v3090_v25 }
 0x40f   :  { %v736_v50 = vadd.f32 %v732_v15, %v716_v6  ;;  %v737_v51 = vadd.f32 %v733_v58, %v717_v31  ;;  %v738_v56 = vadd.f32 %v732_v15, %v718_v54  ;;  %v739_v57 = vadd.f32 %v733_v58, %v719_v55 }
 0x410   :  { %v740_v59 = vadd.f32 %v732_v15, %v720_v3  ;;  %v741_v62 = vadd.f32 %v733_v58, %v721_v8  ;;  %v742_v63 = vadd.f32 %v732_v15, %v722_v4  ;;  %v743_v0 = vadd.f32 %v733_v58, %v723_v10  ;;  %v986_v10 = vld [vmem:[%s4426_s9] sm:$0xff] }
 0x411   :  { %815 = vmatmul.f32.vlgmr.msrb.gmra.mxu0 %v736_v50  ;;  %2322 = vmatmul.msk.f32.vlgmr.msrb.gmra.mxu1 %vm402_vm11, %v737_v51  ;;  %v724_v13 = vmul.f32 %v714_v12, %v3110_v34  ;;  %v725_v18 = vmul.f32 %v715_v49, %v3104_v30  ;;  %v726_v25 = vmul.f32 %v714_v12, %v3124_v46 }
 0x412   :  { %919 = vmatmul.f32.vlgmr.msra.gmra.mxu2 %v736_v50  ;;  %2329 = vmatmul.msk.f32.vlgmr.msra.gmra.mxu3 %vm402_vm11, %v737_v51  ;;  %v727_v28 = vmul.f32 %v715_v49, %v3117_v40  ;;  %v728_v30 = vmul.f32 %v714_v12, %v3137_v41  ;;  %v729_v34 = vmul.f32 %v715_v49, %v3130_v17 }
 0x413   :  { %v744_v1 = vadd.f32 %v732_v15, %v724_v13  ;;  %v745_v2 = vadd.f32 %v733_v58, %v725_v18  ;;  %v746_v7 = vadd.f32 %v732_v15, %v726_v25  ;;  %v1033_v13 = vld [vmem:[%s4427_s10 + $0x8] sm:$0xff]  ;;  %v988_v18 = vld [vmem:[%s4426_s9 + $0x10] sm:$0xff]  ;;  %v1035_v25 = vld [vmem:[%s4427_s10 + $0x18] sm:$0xf] }
 0x414   :  { %v747_v9 = vadd.f32 %v733_v58, %v727_v28  ;;  %v748_v11 = vadd.f32 %v732_v15, %v728_v30  ;;  %v749_v14 = vadd.f32 %v733_v58, %v729_v34  ;;  %v1203_v28 = vld [vmem:[%s4428_s11 + $0x1f0] sm:$0xff]  ;;  %v1172_v30 = vld [vmem:[%s4428_s11 + $0xf8] sm:$0xff] }
 0x415   :  { %1272 = vmatpush.msrb.mxu2 %v1203_v28  ;;  %v1199_v34 = vld [vmem:[%s4428_s11 + $0x1d0] sm:$0xff]  ;;  %v1145_v28 = vld [vmem:[%s4428_s11 + $0x20] sm:$0xff] }
 0x419   :  { %818 = vmatmul.f32.gmra.mxu0 %v738_v56  ;;  %2323 = vmatmul.msk.f32.gmra.mxu1 %vm402_vm11, %v739_v57 }
 0x41a   :  { %922 = vmatmul.f32.gmra.mxu2 %v738_v56  ;;  %2330 = vmatmul.msk.f32.gmra.mxu3 %vm402_vm11, %v739_v57 }
 0x421   :  { %821 = vmatmul.f32.gmra.mxu0 %v740_v59  ;;  %2324 = vmatmul.msk.f32.gmra.mxu1 %vm402_vm11, %v741_v62 }
 0x422   :  { %925 = vmatmul.f32.gmra.mxu2 %v740_v59  ;;  %2331 = vmatmul.msk.f32.gmra.mxu3 %vm402_vm11, %v741_v62 }
 0x429   :  { %824 = vmatmul.f32.gmra.mxu0 %v742_v63  ;;  %2325 = vmatmul.msk.f32.gmra.mxu1 %vm402_vm11, %v743_v0 }
 0x42a   :  { %928 = vmatmul.f32.gmra.mxu2 %v742_v63  ;;  %2332 = vmatmul.msk.f32.gmra.mxu3 %vm402_vm11, %v743_v0  ;;  %v1032_v63 = vld [vmem:[%s4427_s10] sm:$0xff]  ;;  %v987_v0 = vld [vmem:[%s4426_s9 + $0x8] sm:$0xff] }
 0x431   :  { %827 = vmatmul.f32.gmra.mxu0 %v744_v1  ;;  %2326 = vmatmul.msk.f32.gmra.mxu1 %vm402_vm11, %v745_v2 }
 0x432   :  { %931 = vmatmul.f32.gmra.mxu2 %v744_v1  ;;  %2333 = vmatmul.msk.f32.gmra.mxu3 %vm402_vm11, %v745_v2  ;;  %v1034_v1 = vld [vmem:[%s4427_s10 + $0x10] sm:$0xff]  ;;  %v989_v2 = vld [vmem:[%s4426_s9 + $0x18] sm:$0xf]  ;;  %s2438_s10 = smov 32  }
 0x439   :  { %830 = vmatmul.f32.gmra.mxu0 %v746_v7  ;;  %2327 = vmatmul.msk.f32.gmra.mxu1 %vm402_vm11, %v747_v9 }
 0x43a   :  { %934 = vmatmul.f32.gmra.mxu2 %v746_v7  ;;  %2334 = vmatmul.msk.f32.gmra.mxu3 %vm402_vm11, %v747_v9  ;;  %v1201_v7 = vld [vmem:[%s4428_s11 + $0x1e0] sm:$0xff]  ;;  %v1171_v9 = vld [vmem:[%s4428_s11 + $0xf0] sm:$0xff] }
 0x43b   :  { %1243 = vmatpush.msrb.mxu3 %v1171_v9  ;;  %1273 = vmatpush.msrb.mxu2 %v1201_v7  ;;  %v1215_v7 = vld [vmem:[%s4428_s11 + $0x250] sm:$0xff]  ;;  %v1146_v9 = vld [vmem:[%s4428_s11 + $0x28] sm:$0xff] }
 0x43d   :  { %1274 = vmatpush.msrb.mxu2 %v1199_v34  ;;  %v1143_v34 = vld [vmem:[%s4428_s11 + $0x10] sm:$0xff] }
 0x441   :  { %833 = vmatmul.f32.gmra.mxu0 %v748_v11  ;;  %2328 = vmatmul.msk.f32.gmra.mxu1 %vm402_vm11, %v749_v14 }
 0x442   :  { %937 = vmatmul.f32.gmra.mxu2 %v748_v11  ;;  %2335 = vmatmul.msk.f32.gmra.mxu3 %vm402_vm11, %v749_v14  ;;  %v1169_v11 = vld [vmem:[%s4428_s11 + $0xe0] sm:$0xff]  ;;  %v1170_v14 = vld [vmem:[%s4428_s11 + $0xe8] sm:$0xff] }
 0x443   :  { %1244 = vmatpush.msrb.mxu3 %v1169_v11  ;;  %v1213_v11 = vld [vmem:[%s4428_s11 + $0x240] sm:$0xff] }
 0x48e   :  { %v816_v40 = vpop.f32.mrf.mxu0  ;;  %v854_v46 = vpop.f32.mrf.mxu1 }
 0x48f   :  { %v855_v59 = vadd.f32 %v854_v46, %v816_v40  ;;  %v1167_v40 = vld [vmem:[%s4428_s11 + $0xd0] sm:$0xff]  ;;  %v1168_v46 = vld [vmem:[%s4428_s11 + $0xd8] sm:$0xff] }
 0x490   :  { %1245 = vmatpush.msrb.mxu3 %v1167_v40  ;;  %v1234_v40 = vld [vmem:[%s4428_s11 + $0x2e8] sm:$0xff] }
 0x495   :  { %v920_v16 = vpop.f32.mrf.mxu2  ;;  %v958_v20 = vpop.f32.mrf.mxu3 }
 0x496   :  { %v819_v22 = vpop.f32.mrf.mxu0  ;;  %v857_v26 = vpop.f32.mrf.mxu1  ;;  %v959_v57 = vadd.f32 %v958_v20, %v920_v16  ;;  %v1197_v16 = vld [vmem:[%s4428_s11 + $0x1c0] sm:$0xff]  ;;  %v1235_v20 = vld [vmem:[%s4428_s11 + $0x2f0] sm:$0xff] }
 0x497   :  { %v858_v3 = vadd.f32 %v857_v26, %v819_v22  ;;  %1275 = vmatpush.msrb.mxu2 %v1197_v16  ;;  %v1211_v16 = vld [vmem:[%s4428_s11 + $0x230] sm:$0xff] }
 0x498   :  { %v979_v4 = vmax.f32 %v855_v59, %v959_v57  ;;  %v1149_v57 = vld [vmem:[%s4428_s11 + $0x40] sm:$0xff]  ;;  %v1219_v59 = vld [vmem:[%s4428_s11 + $0x270] sm:$0xff] }
 0x49d   :  { %v923_v27 = vpop.f32.mrf.mxu2  ;;  %v961_v29 = vpop.f32.mrf.mxu3 }
 0x49e   :  { %v822_v19 = vpop.f32.mrf.mxu0  ;;  %v860_v41 = vpop.f32.mrf.mxu1  ;;  %v962_v54 = vadd.f32 %v961_v29, %v923_v27  ;;  %v1165_v27 = vld [vmem:[%s4428_s11 + $0xc0] sm:$0xff] }
 0x49f   :  { %v861_v55 = vadd.f32 %v860_v41, %v822_v19  ;;  %v1195_v19 = vld [vmem:[%s4428_s11 + $0x1b0] sm:$0xff]  ;;  %v1166_v41 = vld [vmem:[%s4428_s11 + $0xc8] sm:$0xff]  ;;  %1246 = vmatpush.msrb.mxu3 %v1165_v27  ;;  %v1204_v27 = vld [vmem:[%s4428_s11 + $0x1f8] sm:$0xff] }
 0x4a0   :  { %v980_v62 = vmax.f32 %v858_v3, %v962_v54  ;;  %1276 = vmatpush.msrb.mxu2 %v1195_v19  ;;  %v1152_v54 = vld [vmem:[%s4428_s11 + $0x58] sm:$0xff]  ;;  %v1207_v19 = vld [vmem:[%s4428_s11 + $0x210] sm:$0xff] }
 0x4a5   :  { %v926_v32 = vpop.f32.mrf.mxu2  ;;  %v964_v17 = vpop.f32.mrf.mxu3 }
 0x4a6   :  { %v825_v33 = vpop.f32.mrf.mxu0  ;;  %v863_v35 = vpop.f32.mrf.mxu1  ;;  %v965_v31 = vadd.f32 %v964_v17, %v926_v32  ;;  %v1233_v32 = vld [vmem:[%s4428_s11 + $0x2e0] sm:$0xff]  ;;  %v1163_v17 = vld [vmem:[%s4428_s11 + $0xb0] sm:$0xff] }
 0x4a7   :  { %v864_v50 = vadd.f32 %v863_v35, %v825_v33  ;;  %v1231_v33 = vld [vmem:[%s4428_s11 + $0x2d0] sm:$0xff]  ;;  %v1193_v35 = vld [vmem:[%s4428_s11 + $0x1a0] sm:$0xff]  ;;  %1247 = vmatpush.msrb.mxu3 %v1163_v17 }
 0x4a8   :  { %v981_v8 = vmax.f32 %v861_v55, %v965_v31  ;;  %1277 = vmatpush.msrb.mxu2 %v1193_v35  ;;  %v1151_v31 = vld [vmem:[%s4428_s11 + $0x50] sm:$0xff]  ;;  %v1205_v17 = vld [vmem:[%s4428_s11 + $0x200] sm:$0xff]  ;;  %v1226_v35 = vld [vmem:[%s4428_s11 + $0x2a8] sm:$0xff] }
 0x4ad   :  { %v929_v36 = vpop.f32.mrf.mxu2  ;;  %v967_v37 = vpop.f32.mrf.mxu3 }
 0x4ae   :  { %v828_v39 = vpop.f32.mrf.mxu0  ;;  %v866_v38 = vpop.f32.mrf.mxu1  ;;  %v968_v15 = vadd.f32 %v967_v37, %v929_v36  ;;  %v1164_v36 = vld [vmem:[%s4428_s11 + $0xb8] sm:$0xff]  ;;  %v1161_v37 = vld [vmem:[%s4428_s11 + $0xa0] sm:$0xff] }
 0x4af   :  { %v867_v58 = vadd.f32 %v866_v38, %v828_v39  ;;  %v1229_v39 = vld [vmem:[%s4428_s11 + $0x2c0] sm:$0xff]  ;;  %v1191_v38 = vld [vmem:[%s4428_s11 + $0x190] sm:$0xff]  ;;  %1248 = vmatpush.msrb.mxu3 %v1161_v37  ;;  %v1224_v37 = vld [vmem:[%s4428_s11 + $0x298] sm:$0xff] }
 0x4b0   :  { %v982_v56 = vmax.f32 %v864_v50, %v968_v15  ;;  %1278 = vmatpush.msrb.mxu2 %v1191_v38  ;;  %v1223_v15 = vld [vmem:[%s4428_s11 + $0x290] sm:$0xff]  ;;  %v1221_v50 = vld [vmem:[%s4428_s11 + $0x280] sm:$0xff]  ;;  %v1222_v38 = vld [vmem:[%s4428_s11 + $0x288] sm:$0xff] }
 0x4b5   :  { %v932_v61 = vpop.f32.mrf.mxu2  ;;  %v970_v23 = vpop.f32.mrf.mxu3 }
 0x4b6   :  { %v831_v24 = vpop.f32.mrf.mxu0  ;;  %v869_v21 = vpop.f32.mrf.mxu1  ;;  %v971_v52 = vadd.f32 %v970_v23, %v932_v61  ;;  %v1162_v61 = vld [vmem:[%s4428_s11 + $0xa8] sm:$0xff]  ;;  %v1159_v23 = vld [vmem:[%s4428_s11 + $0x90] sm:$0xff] }
 0x4b7   :  { %v870_v12 = vadd.f32 %v869_v21, %v831_v24  ;;  %v1227_v24 = vld [vmem:[%s4428_s11 + $0x2b0] sm:$0xff]  ;;  %v1189_v21 = vld [vmem:[%s4428_s11 + $0x180] sm:$0xff]  ;;  %1249 = vmatpush.msrb.mxu3 %v1159_v23  ;;  %v1220_v23 = vld [vmem:[%s4428_s11 + $0x278] sm:$0xff] }
 0x4b8   :  { %v983_v51 = vmax.f32 %v867_v58, %v971_v52  ;;  %1279 = vmatpush.msrb.mxu2 %v1189_v21  ;;  %v1185_v52 = vld [vmem:[%s4428_s11 + $0x160] sm:$0xff]  ;;  %v1183_v58 = vld [vmem:[%s4428_s11 + $0x150] sm:$0xff]  ;;  %v1218_v21 = vld [vmem:[%s4428_s11 + $0x268] sm:$0xff] }
 0x4bd   :  { %v935_v47 = vpop.f32.mrf.mxu2  ;;  %v973_v45 = vpop.f32.mrf.mxu3 }
 0x4be   :  { %v834_v48 = vpop.f32.mrf.mxu0  ;;  %v872_v53 = vpop.f32.mrf.mxu1  ;;  %v974_v43 = vadd.f32 %v973_v45, %v935_v47  ;;  %v1160_v47 = vld [vmem:[%s4428_s11 + $0x98] sm:$0xff] }
 0x4bf   :  { %v873_v60 = vadd.f32 %v872_v53, %v834_v48  ;;  %v1157_v53 = vld [vmem:[%s4428_s11 + $0x80] sm:$0xff] }
 0x4c0   :  { %v984_v6 = vmax.f32 %v870_v12, %v974_v43  ;;  %v1158_v43 = vld [vmem:[%s4428_s11 + $0x88] sm:$0xff]  ;;  %1250 = vmatpush.msrb.mxu3 %v1157_v53  ;;  %v1156_v12 = vld [vmem:[%s4428_s11 + $0x78] sm:$0xff] }
 0x4c1   :  { %v1214_v53 = vld [vmem:[%s4428_s11 + $0x248] sm:$0xff] }
 0x4c5   :  { %v938_v42 = vpop.f32.mrf.mxu2  ;;  %v976_v44 = vpop.f32.mrf.mxu3 }
 0x4c6   :  { %v977_v5 = vadd.f32 %v976_v44, %v938_v42  ;;  %v1187_v44 = vld [vmem:[%s4428_s11 + $0x170] sm:$0xff] }
 0x4c7   :  { %1280 = vmatpush.msrb.mxu2 %v1187_v44  ;;  %v1212_v44 = vld [vmem:[%s4428_s11 + $0x238] sm:$0xff] }
 0x4c8   :  { %v985_v49 = vmax.f32 %v873_v60, %v977_v5  ;;  %v1155_v60 = vld [vmem:[%s4428_s11 + $0x70] sm:$0xff]  ;;  %v1225_v5 = vld [vmem:[%s4428_s11 + $0x2a0] sm:$0xff] }
 0x4c9   :  { %1251 = vmatpush.msrb.mxu3 %v1155_v60  ;;  %1281 = vmatpush.msrb.mxu2 %v1185_v52  ;;  %v1210_v60 = vld [vmem:[%s4428_s11 + $0x228] sm:$0xff] }
 0x4ca   :  { %1012 = vmatpush.msra.mxu0 %v985_v49  ;;  %1057 = vmatpush.msra.mxu1 %v985_v49  ;;  %v1153_v49 = vld [vmem:[%s4428_s11 + $0x60] sm:$0xff] }
 0x4cb   :  { %1252 = vmatpush.msrb.mxu3 %v1153_v49  ;;  %1282 = vmatpush.msrb.mxu2 %v1183_v58 }
 0x4cc   :  { %1013 = vmatpush.msra.mxu0 %v984_v6  ;;  %1058 = vmatpush.msra.mxu1 %v984_v6  ;;  %v1154_v6 = vld [vmem:[%s4428_s11 + $0x68] sm:$0xff] }
 0x4cd   :  { %1253 = vmatpush.msrb.mxu3 %v1151_v31  ;;  %v1206_v31 = vld [vmem:[%s4428_s11 + $0x208] sm:$0xff] }
 0x4ce   :  { %1014 = vmatpush.msra.mxu0 %v983_v51  ;;  %1059 = vmatpush.msra.mxu1 %v983_v51  ;;  %v1181_v51 = vld [vmem:[%s4428_s11 + $0x140] sm:$0xff] }
 0x4cf   :  { %1283 = vmatpush.msrb.mxu2 %v1181_v51  ;;  %1254 = vmatpush.msrb.mxu3 %v1149_v57  ;;  %v1176_v51 = vld [vmem:[%s4428_s11 + $0x118] sm:$0xff] }
 0x4d0   :  { %1015 = vmatpush.msra.mxu0 %v982_v56  ;;  %1060 = vmatpush.msra.mxu1 %v982_v56 }
 0x4d2   :  { %1016 = vmatpush.msra.mxu0 %v981_v8  ;;  %1061 = vmatpush.msra.mxu1 %v981_v8  ;;  %v1179_v8 = vld [vmem:[%s4428_s11 + $0x130] sm:$0xff] }
 0x4d3   :  { %1284 = vmatpush.msrb.mxu2 %v1179_v8 }
 0x4d4   :  { %1017 = vmatpush.msra.mxu0 %v980_v62  ;;  %1062 = vmatpush.msra.mxu1 %v980_v62  ;;  %v1150_v62 = vld [vmem:[%s4428_s11 + $0x48] sm:$0xff] }
 0x4d6   :  { %1018 = vmatpush.msra.mxu0 %v979_v4  ;;  %1063 = vmatpush.msra.mxu1 %v979_v4  ;;  %v1177_v4 = vld [vmem:[%s4428_s11 + $0x120] sm:$0xff] }
 0x4d7   :  { %2336 = vmatmul.msk.f32.vlgmr.msra.gmra.mxu0 %vm990_vm1, %v986_v10  ;;  %2340 = vmatmul.msk.f32.vlgmr.msra.gmra.mxu1 %vm990_vm1, %v1032_v63  ;;  %v1175_v10 = vld [vmem:[%s4428_s11 + $0x110] sm:$0xff] }
 0x4d8   :  { %1330 = vmatpush.msrb.mxu1 %v1172_v30  ;;  %1301 = vmatpush.msrb.mxu0 %v1235_v20  ;;  %v1236_v30 = vld [vmem:[%s4428_s11 + $0x2f8] sm:$0xff]  ;;  %v1142_v20 = vld [vmem:[%s4428_s11 + $0x8] sm:$0xff] }
 0x4d9   :  { %1285 = vmatpush.msrb.mxu2 %v1177_v4 }
 0x4da   :  { %1331 = vmatpush.msrb.mxu1 %v1170_v14  ;;  %1302 = vmatpush.msrb.mxu0 %v1233_v32  ;;  %v1144_v14 = vld [vmem:[%s4428_s11 + $0x18] sm:$0xff] }
 0x4db   :  { %1286 = vmatpush.msrb.mxu2 %v1175_v10  ;;  %v1228_v32 = vld [vmem:[%s4428_s11 + $0x2b8] sm:$0xff] }
 0x4dc   :  { %1332 = vmatpush.msrb.mxu1 %v1168_v46  ;;  %1303 = vmatpush.msrb.mxu0 %v1231_v33  ;;  %v1141_v46 = vld [vmem:[%s4428_s11] sm:$0xff]  ;;  %v1200_v33 = vld [vmem:[%s4428_s11 + $0x1d8] sm:$0xff] }
 0x4de   :  { %1333 = vmatpush.msrb.mxu1 %v1166_v41  ;;  %1304 = vmatpush.msrb.mxu0 %v1229_v39  ;;  %v1202_v41 = vld [vmem:[%s4428_s11 + $0x1e8] sm:$0xff]  ;;  %v1196_v39 = vld [vmem:[%s4428_s11 + $0x1b8] sm:$0xff] }
 0x4df   :  { %2337 = vmatmul.msk.f32.gmra.mxu0 %vm990_vm1, %v987_v0  ;;  %2341 = vmatmul.msk.f32.gmra.mxu1 %vm990_vm1, %v1033_v13 }
 0x4e0   :  { %1334 = vmatpush.msrb.mxu1 %v1164_v36  ;;  %1305 = vmatpush.msrb.mxu0 %v1227_v24  ;;  %v1198_v36 = vld [vmem:[%s4428_s11 + $0x1c8] sm:$0xff]  ;;  %v1192_v24 = vld [vmem:[%s4428_s11 + $0x198] sm:$0xff] }
 0x4e2   :  { %1335 = vmatpush.msrb.mxu1 %v1162_v61  ;;  %1306 = vmatpush.msrb.mxu0 %v1225_v5  ;;  %v1194_v61 = vld [vmem:[%s4428_s11 + $0x1a8] sm:$0xff] }
 0x4e3   :  { %v1182_v5 = vld [vmem:[%s4428_s11 + $0x148] sm:$0xff] }
 0x4e4   :  { %1336 = vmatpush.msrb.mxu1 %v1160_v47  ;;  %1307 = vmatpush.msrb.mxu0 %v1223_v15  ;;  %v1190_v47 = vld [vmem:[%s4428_s11 + $0x188] sm:$0xff]  ;;  %v1180_v15 = vld [vmem:[%s4428_s11 + $0x138] sm:$0xff] }
 0x4e6   :  { %1337 = vmatpush.msrb.mxu1 %v1158_v43  ;;  %1308 = vmatpush.msrb.mxu0 %v1221_v50  ;;  %v1184_v43 = vld [vmem:[%s4428_s11 + $0x158] sm:$0xff]  ;;  %v1178_v50 = vld [vmem:[%s4428_s11 + $0x128] sm:$0xff] }
 0x4e7   :  { %2338 = vmatmul.msk.f32.gmra.mxu0 %vm990_vm1, %v988_v18  ;;  %2342 = vmatmul.msk.f32.gmra.mxu1 %vm990_vm1, %v1034_v1  ;;  %v1147_v18 = vld [vmem:[%s4428_s11 + $0x30] sm:$0xff]  ;;  %v1148_v1 = vld [vmem:[%s4428_s11 + $0x38] sm:$0xff] }
 0x4e8   :  { %1338 = vmatpush.msrb.mxu1 %v1156_v12  ;;  %1309 = vmatpush.msrb.mxu0 %v1219_v59  ;;  %v1208_v12 = vld [vmem:[%s4428_s11 + $0x218] sm:$0xff] }
 0x4e9   :  { %1255 = vmatpush.msrb.mxu3 %v1147_v18 }
 0x4ea   :  { %1339 = vmatpush.msrb.mxu1 %v1154_v6 }
 0x4eb   :  { %1256 = vmatpush.msrb.mxu3 %v1145_v28 }
 0x4ec   :  { %1340 = vmatpush.msrb.mxu1 %v1152_v54 }
 0x4ed   :  { %1257 = vmatpush.msrb.mxu3 %v1143_v34 }
 0x4ee   :  { %1341 = vmatpush.msrb.mxu1 %v1150_v62 }
 0x4ef   :  { %2339 = vmatmul.msk.f32.gmra.mxu0 %vm990_vm1, %v989_v2  ;;  %2343 = vmatmul.msk.f32.gmra.mxu1 %vm990_vm1, %v1035_v25  ;;  %v1173_v2 = vld [vmem:[%s4428_s11 + $0x100] sm:$0xff]  ;;  %vm2037_vm1 = vcmask 261120  }
 0x4f0   :  { %1342 = vmatpush.msrb.mxu1 %v1148_v1  ;;  %v1217_v25 = vld [vmem:[%s4428_s11 + $0x260] sm:$0xff]  ;;  %1287 = vmatpush.msrb.mxu2 %v1173_v2 }
 0x4f1   :  { %1310 = vmatpush.msrb.mxu0 %v1217_v25  ;;  %1258 = vmatpush.msrb.mxu3 %v1141_v46 }
 0x4f2   :  { %1343 = vmatpush.msrb.mxu1 %v1146_v9  ;;  %1388 = vmatpush.msra.mxu2 %v1236_v30 }
 0x4f3   :  { %1311 = vmatpush.msrb.mxu0 %v1215_v7  ;;  %1359 = vmatpush.msra.mxu3 %v1204_v27  ;;  %v1461_v27 = vld [vmem:[%s4432_s15 + $0x60] sm:$0xff] }
 0x4f4   :  { %1344 = vmatpush.msrb.mxu1 %v1144_v14  ;;  %1389 = vmatpush.msra.mxu2 %v1234_v40 }
 0x4f5   :  { %1312 = vmatpush.msrb.mxu0 %v1213_v11  ;;  %1360 = vmatpush.msra.mxu3 %v1202_v41  ;;  %v1459_v41 = vld [vmem:[%s4432_s15 + $0x50] sm:$0xff] }
 0x4f6   :  { %1345 = vmatpush.msrb.mxu1 %v1142_v20  ;;  %v1464_v20 = vld [vmem:[%s4432_s15 + $0x78] sm:$0xff] }
 0x4f7   :  { %1313 = vmatpush.msrb.mxu0 %v1211_v16  ;;  %1361 = vmatpush.msra.mxu3 %v1200_v33  ;;  %v1458_v33 = vld [vmem:[%s4432_s15 + $0x48] sm:$0xff] }
 0x4f9   :  { %1362 = vmatpush.msra.mxu3 %v1198_v36  ;;  %v1457_v36 = vld [vmem:[%s4432_s15 + $0x40] sm:$0xff] }
 0x4fb   :  { %1363 = vmatpush.msra.mxu3 %v1196_v39  ;;  %v1455_v39 = vld [vmem:[%s4432_s15 + $0x30] sm:$0xff] }
 0x4fd   :  { %1364 = vmatpush.msra.mxu3 %v1194_v61 }
 0x4ff   :  { %1365 = vmatpush.msra.mxu3 %v1192_v24 }
 0x501   :  { %1366 = vmatpush.msra.mxu3 %v1190_v47  ;;  %v3749_v47 = vld [vmem:[%s4429_s12] sm:$0x3] }
 0x554   :  { %v1020_v22 = vpop.f32.mrf.mxu0  ;;  %v1065_v26 = vpop.f32.mrf.mxu1 }
 0x555   :  { %v1077_v29 = vmax.f32 %v1020_v22, %v1065_v26  ;;  %v1232_v22 = vld [vmem:[%s4428_s11 + $0x2d8] sm:$0xff]  ;;  %v1209_v26 = vld [vmem:[%s4428_s11 + $0x220] sm:$0xff] }
 0x556   :  { %1390 = vmatpush.msra.mxu2 %v1232_v22  ;;  %1314 = vmatpush.msrb.mxu0 %v1209_v26  ;;  %v1463_v22 = vld [vmem:[%s4432_s15 + $0x70] sm:$0xff]  ;;  %v1462_v26 = vld [vmem:[%s4432_s15 + $0x68] sm:$0xff] }
 0x557   :  { %1085 = vrot.lane.b32.xlu0 %v1077_v29, %s2431_s27  ;;  %v1230_v29 = vld [vmem:[%s4428_s11 + $0x2c8] sm:$0xff] }
 0x558   :  { %1391 = vmatpush.msra.mxu2 %v1230_v29  ;;  %1315 = vmatpush.msrb.mxu0 %v1207_v19  ;;  %v1460_v19 = vld [vmem:[%s4432_s15 + $0x58] sm:$0xff] }
 0x55a   :  { %1392 = vmatpush.msra.mxu2 %v1228_v32  ;;  %1316 = vmatpush.msrb.mxu0 %v1205_v17 }
 0x55c   :  { %v1023_v45 = vpop.f32.mrf.mxu0  ;;  %v1068_v48 = vpop.f32.mrf.mxu1  ;;  %1393 = vmatpush.msra.mxu2 %v1226_v35  ;;  %1480 = vmatpush.msra.mxu0 %v1464_v20 }
 0x55d   :  { %v1078_v42 = vmax.f32 %v1023_v45, %v1068_v48  ;;  %v1216_v45 = vld [vmem:[%s4428_s11 + $0x258] sm:$0xff] }
 0x55e   :  { %1394 = vmatpush.msra.mxu2 %v1224_v37  ;;  %v1188_v48 = vld [vmem:[%s4428_s11 + $0x178] sm:$0xff]  ;;  %1481 = vmatpush.msra.mxu0 %v1463_v22 }
 0x55f   :  { %1087 = vrot.lane.b32.xlu1 %v1078_v42, %s2431_s27  ;;  %v1186_v42 = vld [vmem:[%s4428_s11 + $0x168] sm:$0xff]  ;;  %1367 = vmatpush.msra.mxu3 %v1188_v48  ;;  %v1456_v37 = vld [vmem:[%s4432_s15 + $0x38] sm:$0xff] }
 0x560   :  { %1395 = vmatpush.msra.mxu2 %v1222_v38  ;;  %1482 = vmatpush.msra.mxu0 %v1462_v26  ;;  %v1452_v48 = vld [vmem:[%s4432_s15 + $0x18] sm:$0xff] }
 0x561   :  { %1368 = vmatpush.msra.mxu3 %v1186_v42  ;;  %v1451_v42 = vld [vmem:[%s4432_s15 + $0x10] sm:$0xff] }
 0x562   :  { %1396 = vmatpush.msra.mxu2 %v1220_v23  ;;  %1483 = vmatpush.msra.mxu0 %v1461_v27  ;;  %v1454_v23 = vld [vmem:[%s4432_s15 + $0x28] sm:$0xff] }
 0x563   :  { %1369 = vmatpush.msra.mxu3 %v1184_v43 }
 0x564   :  { %v1026_v55 = vpop.f32.mrf.mxu0  ;;  %v1071_v56 = vpop.f32.mrf.mxu1  ;;  %1397 = vmatpush.msra.mxu2 %v1218_v21  ;;  %1484 = vmatpush.msra.mxu0 %v1460_v19  ;;  %v1453_v21 = vld [vmem:[%s4432_s15 + $0x20] sm:$0xff] }
 0x565   :  { %v1079_v3 = vmax.f32 %v1026_v55, %v1071_v56  ;;  %1370 = vmatpush.msra.mxu3 %v1182_v5  ;;  %v1174_v55 = vld [vmem:[%s4428_s11 + $0x108] sm:$0xff]  ;;  %v1449_v5 = vld [vmem:[%s4432_s15] sm:$0xff]  ;;  %s2439_s11 = smov [#allocation2]  }
 0x566   :  { %1398 = vmatpush.msra.mxu2 %v1216_v45  ;;  %1485 = vmatpush.msra.mxu0 %v1459_v41  ;;  %v1239_v45 = vperm.slane %v3749_v47, 0 }
 0x567   :  { %1089 = vrot.lane.b32.xlu2 %v1079_v3, %s2431_s27  ;;  %1371 = vmatpush.msra.mxu3 %v1180_v15 }
 0x568   :  { %1399 = vmatpush.msra.mxu2 %v1214_v53  ;;  %1486 = vmatpush.msra.mxu0 %v1458_v33 }
 0x569   :  { %1372 = vmatpush.msra.mxu3 %v1178_v50 }
 0x56a   :  { %1400 = vmatpush.msra.mxu2 %v1212_v44  ;;  %1487 = vmatpush.msra.mxu0 %v1457_v36 }
 0x56b   :  { %1373 = vmatpush.msra.mxu3 %v1176_v51 }
 0x56c   :  { %v1029_v63 = vpop.f32.mrf.mxu0  ;;  %v1074_v0 = vpop.f32.mrf.mxu1  ;;  %1401 = vmatpush.msra.mxu2 %v1210_v60  ;;  %1488 = vmatpush.msra.mxu0 %v1456_v37  ;;  %v1450_v60 = vld [vmem:[%s4432_s15 + $0x8] sm:$0xff] }
 0x56d   :  { %v1080_v13 = vmax.f32 %v1029_v63, %v1074_v0  ;;  %1374 = vmatpush.msra.mxu3 %v1174_v55 }
 0x56e   :  { %1402 = vmatpush.msra.mxu2 %v1208_v12  ;;  %1489 = vmatpush.msra.mxu0 %v1455_v39 }
 0x56f   :  { %1091 = vrot.lane.b32.xlu0 %v1080_v13, %s2431_s27 }
 0x570   :  { %1403 = vmatpush.msra.mxu2 %v1206_v31  ;;  %1490 = vmatpush.msra.mxu0 %v1454_v23 }
 0x572   :  { %1491 = vmatpush.msra.mxu0 %v1453_v21 }
 0x574   :  { %1492 = vmatpush.msra.mxu0 %v1452_v48 }
 0x576   :  { %1493 = vmatpush.msra.mxu0 %v1451_v42 }
 0x578   :  { %1494 = vmatpush.msra.mxu0 %v1450_v60 }
 0x57a   :  { %1495 = vmatpush.msra.mxu0 %v1449_v5 }
 0x5c1   :  { %v1090_v54 = vpop.permute.xlu2 %1089 }
 0x5c2   :  { %v1099_v8 = vsel %vm503_vm13, 0.0, %v1090_v54 }
 0x5c3   :  { %v1104_v10 = vsel %vm1101_vm6, %v1099_v8, 0.0 }
 0x5c4   :  { %v1131_v1 = vrot.slane %v1104_v10, 1  ;;  %v1115_v28 = vrot.slane %v1104_v10, 7 }
 0x5c9   :  { %v1086_v52 = vpop.permute.xlu0 %1085 }
 0x5ca   :  { %v1097_v49 = vsel %vm503_vm13, 0.0, %v1086_v52 }
 0x5cb   :  { %v1102_v58 = vsel %vm1101_vm6, %v1097_v49, 0.0  ;;  %2346 = vmatmul.msk.f32.vlgmr.msrb.gmra.mxu2 %vm1101_vm6, %v1097_v49 }
 0x5cc   :  { %v1108_v6 = vrot.slane %v1102_v58, 7  ;;  %v1126_v59 = vrot.slane %v1102_v58, 1 }
 0x5ce   :  { %2345 = vmatmul.msk.f32.vlgmr.msrb.gmra.mxu3 %vm2344_vm8, %v1108_v6  ;;  %2352 = vmatmul.msk.f32.vlgmr.msrb.gmra.mxu1 %vm2344_vm8, %v1108_v6 }
 0x5cf   :  { %1620 = vmatpush.msrb.mxu3 %v1464_v20 }
 0x5d1   :  { %v1088_v56 = vpop.permute.xlu1 %1087  ;;  %1621 = vmatpush.msrb.mxu3 %v1463_v22 }
 0x5d2   :  { %v1098_v57 = vsel %vm503_vm13, 0.0, %v1088_v56  ;;  %v1476_v56 = vld [vmem:[%s4432_s15 + $0xd8] sm:$0xff] }
 0x5d3   :  { %v1103_v3 = vsel %vm1101_vm6, %v1098_v57, 0.0  ;;  %2347 = vmatmul.msk.f32.gmra.mxu2 %vm1101_vm6, %v1098_v57  ;;  %1622 = vmatpush.msrb.mxu3 %v1462_v26  ;;  %v1469_v26 = vld [vmem:[%s4432_s15 + $0xa0] sm:$0xff] }
 0x5d4   :  { %v1109_v62 = vrot.slane %v1103_v3, 7  ;;  %v1127_v4 = vrot.slane %v1103_v3, 1  ;;  %1504 = vmatpush.msra.mxu1 %v1476_v56  ;;  %1644 = vmatpush.msrb.mxu2 %v1476_v56 }
 0x5d5   :  { %1623 = vmatpush.msrb.mxu3 %v1461_v27  ;;  %v1240_v27 = vperm.slane %v3749_v47, 1 }
 0x5d6   :  { %v1128_v63 = vsel %vm160_vm3, %v1126_v59, %v1127_v4  ;;  %v1110_v0 = vsel %vm130_vm2, %v1108_v6, %v1109_v62  ;;  %v1132_v2 = vsel %vm160_vm3, %v1127_v4, %v1131_v1  ;;  %v1138_v25 = vsel %vm158_vm5, %v1127_v4, 0.0 }
 0x5d7   :  { %1317 = vmatmul.f32.vlgmr.msrb.gmra.mxu0 %v1128_v63  ;;  %v1124_v13 = vsel %vm1123_vm9, %v1110_v0, 0.0  ;;  %v1139_v7 = vsel %vm1123_vm9, %v1138_v25, %v1132_v2  ;;  %v1116_v9 = vsel %vm130_vm2, %v1109_v62, %v1115_v28  ;;  %1624 = vmatpush.msrb.mxu3 %v1460_v19  ;;  %vm1532_vm5 = vcmask 130048  }
 0x5d8   :  { %v1125_v18 = vsel %vm160_vm3, %v1124_v13, %v1109_v62 }
 0x5d9   :  { %1262 = vmatmul.f32.gmra.mxu3 %v1125_v18  ;;  %1349 = vmatmul.f32.gmra.mxu1 %v1125_v18  ;;  %v1474_v18 = vld [vmem:[%s4432_s15 + $0xc8] sm:$0xff] }
 0x5da   :  { %1625 = vmatpush.msrb.mxu3 %v1459_v41  ;;  %v1468_v41 = vld [vmem:[%s4432_s15 + $0x98] sm:$0xff] }
 0x5db   :  { %2348 = vmatmul.msk.f32.gmra.mxu2 %vm1101_vm6, %v1099_v8 }
 0x5dc   :  { %1626 = vmatpush.msrb.mxu3 %v1458_v33 }
 0x5de   :  { %1627 = vmatpush.msrb.mxu3 %v1457_v36 }
 0x5df   :  { %1320 = vmatmul.f32.gmra.mxu0 %v1139_v7 }
 0x5e0   :  { %1628 = vmatpush.msrb.mxu3 %v1456_v37 }
 0x5e1   :  { %1265 = vmatmul.f32.gmra.mxu3 %v1116_v9  ;;  %1352 = vmatmul.f32.gmra.mxu1 %v1116_v9  ;;  %v1092_v30 = vpop.permute.xlu0 %1091 }
 0x5e2   :  { %v1100_v34 = vsel %vm503_vm13, 0.0, %v1092_v30  ;;  %1629 = vmatpush.msrb.mxu3 %v1455_v39  ;;  %vm1937_vm13 = vcmask 228352  }
 0x5e3   :  { %v1105_v11 = vsel %vm1101_vm6, %v1100_v34, 0.0  ;;  %2349 = vmatmul.msk.f32.gmra.mxu2 %vm1101_vm6, %v1100_v34 }
 0x5e4   :  { %v1117_v14 = vrot.slane %v1105_v11, 7  ;;  %v1133_v40 = vrot.slane %v1105_v11, 1  ;;  %1630 = vmatpush.msrb.mxu3 %v1454_v23 }
 0x5e6   :  { %v1134_v46 = vsel %vm160_vm3, %v1131_v1, %v1133_v40  ;;  %v1118_v16 = vsel %vm130_vm2, %v1115_v28, %v1117_v14  ;;  %1631 = vmatpush.msrb.mxu3 %v1453_v21  ;;  %v1471_v14 = vld [vmem:[%s4432_s15 + $0xb0] sm:$0xff]  ;;  %vm1440_vm2 = vcmask 781312  }
 0x5e7   :  { %1323 = vmatmul.f32.gmra.mxu0 %v1134_v46 }
 0x5e8   :  { %1632 = vmatpush.msrb.mxu3 %v1452_v48 }
 0x5e9   :  { %1268 = vmatmul.f32.gmra.mxu3 %v1118_v16  ;;  %1355 = vmatmul.f32.gmra.mxu1 %v1118_v16  ;;  %v1470_v16 = vld [vmem:[%s4432_s15 + $0xa8] sm:$0xff] }
 0x5ea   :  { %1633 = vmatpush.msrb.mxu3 %v1451_v42 }
 0x5eb   :  { %1404 = vmatmul.f32.vlgmr.msra.gmra.mxu2 %v1128_v63  ;;  %v1475_v63 = vld [vmem:[%s4432_s15 + $0xd0] sm:$0xff] }
 0x5ec   :  { %1634 = vmatpush.msrb.mxu3 %v1450_v60  ;;  %1505 = vmatpush.msra.mxu1 %v1475_v63 }
 0x5ed   :  { %1645 = vmatpush.msrb.mxu2 %v1475_v63 }
 0x5ee   :  { %1635 = vmatpush.msrb.mxu3 %v1449_v5  ;;  %1506 = vmatpush.msra.mxu1 %v1474_v18 }
 0x5ef   :  { %2350 = vmatmul.msk.f32.gmra.mxu0 %vm177_vm7, %v1133_v40  ;;  %1646 = vmatpush.msrb.mxu2 %v1474_v18 }
 0x5f1   :  { %2353 = vmatmul.msk.f32.vlgmr.msra.gmra.mxu3 %vm1101_vm6, %v1097_v49 }
 0x5f3   :  { %1407 = vmatmul.f32.gmra.mxu2 %v1139_v7  ;;  %v1473_v7 = vld [vmem:[%s4432_s15 + $0xc0] sm:$0xff] }
 0x5f4   :  { %1507 = vmatpush.msra.mxu1 %v1473_v7  ;;  %1647 = vmatpush.msrb.mxu2 %v1473_v7  ;;  %v1531_v7 = vld [vmem:[%s4433_s16 + $0x18] sm:$0xff] }
 0x5f9   :  { %2354 = vmatmul.msk.f32.gmra.mxu3 %vm1101_vm6, %v1098_v57 }
 0x5fb   :  { %1410 = vmatmul.f32.gmra.mxu2 %v1134_v46 }
 0x601   :  { %2355 = vmatmul.msk.f32.gmra.mxu3 %vm1101_vm6, %v1099_v8 }
 0x603   :  { %2357 = vmatmul.msk.f32.gmra.mxu2 %vm177_vm7, %v1133_v40 }
 0x609   :  { %2356 = vmatmul.msk.f32.gmra.mxu3 %vm1101_vm6, %v1100_v34  ;;  %v1472_v34 = vld [vmem:[%s4432_s15 + $0xb8] sm:$0xff] }
 0x60a   :  { %1508 = vmatpush.msra.mxu1 %v1472_v34  ;;  %1648 = vmatpush.msrb.mxu2 %v1472_v34  ;;  %v2432_v34 = vmov 392.0  }
 0x60b   :  { %2397 = vrcp.f32 %v2432_v34  ;;  %v1773_v34 = vld [vmem:[%s4434_s17 + $0xd0] sm:$0xff] }
 0x60c   :  { %1509 = vmatpush.msra.mxu1 %v1471_v14  ;;  %1649 = vmatpush.msrb.mxu2 %v1471_v14 }
 0x60e   :  { %1510 = vmatpush.msra.mxu1 %v1470_v16  ;;  %1650 = vmatpush.msrb.mxu2 %v1470_v16 }
 0x610   :  { %1511 = vmatpush.msra.mxu1 %v1469_v26  ;;  %1651 = vmatpush.msrb.mxu2 %v1469_v26 }
 0x612   :  { %1512 = vmatpush.msra.mxu1 %v1468_v41  ;;  %1652 = vmatpush.msrb.mxu2 %v1468_v41 }
 0x64b   :  { %v1347_v50 = vpop.f32.mrf.mxu1 }
 0x64c   :  { %v1348_v36 = vadd.f32 %v1347_v50, %v1240_v27 }
 0x64e   :  { %v1289_v29 = vpop.f32.mrf.mxu2 }
 0x651   :  { %v1260_v32 = vpop.f32.mrf.mxu3 }
 0x652   :  { %v1261_v44 = vadd.f32 %v1260_v32, %v1239_v45  ;;  %v1467_v32 = vld [vmem:[%s4432_s15 + $0x90] sm:$0xff] }
 0x653   :  { %1513 = vmatpush.msra.mxu1 %v1467_v32  ;;  %1653 = vmatpush.msrb.mxu2 %v1467_v32 }
 0x654   :  { %v1318_v17 = vpop.f32.mrf.mxu0  ;;  %v1290_v58 = vadd.f32 %v1289_v29, %v1261_v44 }
 0x656   :  { %v1292_v35 = vpop.f32.mrf.mxu2  ;;  %v3766_v51 = vadd.f32 %v1318_v17, %v1290_v58  ;;  %v1350_v2 = vpop.f32.mrf.mxu1 }
 0x657   :  { %v1351_v17 = vadd.f32 %v1350_v2, %v1240_v27 }
 0x658   :  { %v1417_v59 = vmax.f32 %v3766_v51, 0.0 }
 0x65c   :  { %v1263_v38 = vpop.f32.mrf.mxu3  ;;  %v1321_v61 = vpop.f32.mrf.mxu0 }
 0x65d   :  { %v1264_v53 = vadd.f32 %v1263_v38, %v1239_v45  ;;  %v1465_v38 = vld [vmem:[%s4432_s15 + $0x80] sm:$0xff] }
 0x65e   :  { %v1295_v24 = vpop.f32.mrf.mxu2  ;;  %v1353_v29 = vpop.f32.mrf.mxu1 }
 0x65f   :  { %v1293_v12 = vadd.f32 %v1292_v35, %v1264_v53  ;;  %v1466_v35 = vld [vmem:[%s4432_s15 + $0x88] sm:$0xff] }
 0x660   :  { %1514 = vmatpush.msra.mxu1 %v1466_v35  ;;  %1654 = vmatpush.msrb.mxu2 %v1466_v35 }
 0x661   :  { %v3764_v31 = vadd.f32 %v1321_v61, %v1293_v12  ;;  %v1354_v61 = vadd.f32 %v1353_v29, %v1240_v27 }
 0x662   :  { %1515 = vmatpush.msra.mxu1 %v1465_v38  ;;  %1655 = vmatpush.msrb.mxu2 %v1465_v38 }
 0x663   :  { %v1419_v3 = vmax.f32 %v3764_v31, 0.0 }
 0x664   :  { %v1266_v43 = vpop.f32.mrf.mxu3  ;;  %v1324_v49 = vpop.f32.mrf.mxu0  ;;  %1570 = vmatpush.msrb.mxu1 %v1531_v7 }
 0x665   :  { %v1267_v52 = vadd.f32 %v1266_v43, %v1239_v45  ;;  %v1425_v13 = vadd.f32 %v1419_v3, %v1417_v59 }
 0x666   :  { %v1298_v15 = vpop.f32.mrf.mxu2  ;;  %v1356_v42 = vpop.f32.mrf.mxu1 }
 0x667   :  { %v1296_v6 = vadd.f32 %v1295_v24, %v1267_v52  ;;  %v1357_v43 = vadd.f32 %v1356_v42, %v1240_v27 }
 0x669   :  { %v3768_v54 = vadd.f32 %v1324_v49, %v1296_v6 }
 0x66b   :  { %v1421_v62 = vmax.f32 %v3768_v54, 0.0 }
 0x66c   :  { %v1269_v55 = vpop.f32.mrf.mxu3  ;;  %v1327_v10 = vpop.f32.mrf.mxu0 }
 0x66d   :  { %v1270_v57 = vadd.f32 %v1269_v55, %v1239_v45  ;;  %v1426_v25 = vadd.f32 %v1425_v13, %v1421_v62 }
 0x66e   :  { %v3776_v4 = vpop.f32.mrf.mxu2 }
 0x66f   :  { %v1299_v8 = vadd.f32 %v1298_v15, %v1270_v57 }
 0x671   :  { %v3781_v0 = vadd.f32 %v1327_v10, %v1299_v8 }
 0x673   :  { %v1423_v1 = vmax.f32 %v3781_v0, 0.0 }
 0x674   :  { %v1376_v28 = vpop.f32.mrf.mxu3 }
 0x675   :  { %v1427_v9 = vsel %vm156_vm4, %v1423_v1, 0.0  ;;  %v1377_v23 = vadd.f32 %v1376_v28, %v1348_v36  ;;  %v1530_v28 = vld [vmem:[%s4433_s16 + $0x10] sm:$0xff] }
 0x676   :  { %v1428_v30 = vadd.f32 %v1427_v9, %v1426_v25  ;;  %v1408_v46 = vpop.f32.mrf.mxu2  ;;  %v1528_v9 = vld [vmem:[%s4433_s16] sm:$0xff]  ;;  %1550 = vmatpush.msrb.mxu0 %v1530_v28 }
 0x677   :  { %v3827_v48 = vadd.f32 %v3776_v4, %v1377_v23 }
 0x678   :  { %v1429_v11 = vrot.slane %v1428_v30, 4  ;;  %1551 = vmatpush.msrb.mxu0 %v1528_v9 }
 0x679   :  { %v1418_v60 = vmax.f32 %v3827_v48, 0.0 }
 0x67a   :  { %v1430_v40 = vadd.f32 %v1429_v11, %v1428_v30  ;;  %v1529_v30 = vld [vmem:[%s4433_s16 + $0x8] sm:$0xff]  ;;  %v2398_v11 = vpop.eup %2397 }
 0x67b   :  { %v1435_v58 = vsel %vm402_vm11, %v1418_v60, 0.0  ;;  %1571 = vmatpush.msrb.mxu1 %v1529_v30  ;;  %v1521_v14 = vmul.f32 392.0, %v2398_v11  ;;  %vm1525_vm3 = vweird.f32 %v2398_v11 }
 0x67c   :  { %v1431_v20 = vrot.slane %v1430_v40, 2  ;;  %v1379_v22 = vpop.f32.mrf.mxu3 }
 0x67d   :  { %v1380_v37 = vadd.f32 %v1379_v22, %v1351_v17 }
 0x67e   :  { %v1432_v19 = vadd.f32 %v1431_v20, %v1430_v40  ;;  %v1411_v24 = vpop.f32.mrf.mxu2  ;;  %v1522_v40 = vsub.f32 1.0, %v1521_v14  ;;  %v1871_v14 = vld [vmem:[%s4435_s18 + $0xd0] sm:$0xff] }
 0x67f   :  { %v3824_v47 = vadd.f32 %v1408_v46, %v1380_v37 }
 0x680   :  { %v1433_v33 = vrot.slane %v1432_v19, 1  ;;  %v1523_v46 = vmul.f32 %v2398_v11, %v1522_v40  ;;  %v1772_v40 = vld [vmem:[%s4434_s17 + $0xc8] sm:$0xff] }
 0x681   :  { %v1420_v44 = vmax.f32 %v3824_v47, 0.0 }
 0x682   :  { %v1434_v39 = vadd.f32 %v1433_v33, %v1432_v19  ;;  %v1524_v16 = vadd.f32 %v2398_v11, %v1523_v46  ;;  %v1758_v46 = vld [vmem:[%s4434_s17 + $0x58] sm:$0xff] }
 0x683   :  { %v1436_v12 = vsel %vm402_vm11, %v1420_v44, 0.0 }
 0x684   :  { %v1382_v21 = vpop.f32.mrf.mxu3  ;;  %1496 = vmatmul.f32.vlgmr.msra.gmra.mxu0 %v1434_v39  ;;  %v1437_v55 = vadd.f32 %v1436_v12, %v1435_v58  ;;  %v3851_v26 = vsel %vm1525_vm3, %v2398_v11, %v1524_v16  ;;  %v1856_v16 = vld [vmem:[%s4435_s18 + $0x58] sm:$0xff] }
 0x685   :  { %v1383_v45 = vadd.f32 %v1382_v21, %v1354_v61  ;;  %1689 = vmatpush.msra.mxu0 %v1530_v28  ;;  %v1774_v28 = vld [vmem:[%s4434_s17 + $0xd8] sm:$0xff] }
 0x686   :  { %v1414_v15 = vpop.f32.mrf.mxu2 }
 0x687   :  { %v3829_v53 = vadd.f32 %v1411_v24, %v1383_v45  ;;  %1690 = vmatpush.msra.mxu0 %v1528_v9  ;;  %v1759_v9 = vld [vmem:[%s4434_s17 + $0x60] sm:$0xff] }
 0x689   :  { %v1422_v5 = vmax.f32 %v3829_v53, 0.0 }
 0x68b   :  { %v1438_v6 = vsel %vm402_vm11, %v1422_v5, 0.0 }
 0x68c   :  { %v1385_v52 = vpop.f32.mrf.mxu3  ;;  %v1439_v57 = vadd.f32 %v1438_v6, %v1437_v55 }
 0x68d   :  { %v1386_v49 = vadd.f32 %v1385_v52, %v1357_v43 }
 0x68f   :  { %v1415_v50 = vadd.f32 %v1414_v15, %v1386_v49 }
 0x691   :  { %v1424_v56 = vmax.f32 %v1415_v50, 0.0 }
 0x693   :  { %v1441_v8 = vsel %vm1440_vm2, %v1424_v56, 0.0 }
 0x694   :  { %v1442_v4 = vadd.f32 %v1441_v8, %v1439_v57 }
 0x696   :  { %v1443_v10 = vrot.slane %v1442_v4, 4 }
 0x698   :  { %v1444_v63 = vadd.f32 %v1443_v10, %v1442_v4  ;;  %v1762_v10 = vld [vmem:[%s4434_s17 + $0x78] sm:$0xff] }
 0x69a   :  { %v1445_v13 = vrot.slane %v1444_v63, 2 }
 0x69c   :  { %v1446_v18 = vadd.f32 %v1445_v13, %v1444_v63  ;;  %v1860_v63 = vld [vmem:[%s4435_s18 + $0x78] sm:$0xff]  ;;  %v1761_v13 = vld [vmem:[%s4434_s17 + $0x70] sm:$0xff] }
 0x69d   :  { %1873 = vmatpush.msra.mxu3 %v1860_v63  ;;  %v1765_v63 = vld [vmem:[%s4434_s17 + $0x90] sm:$0xff] }
 0x69e   :  { %v1447_v2 = vrot.slane %v1446_v18, 1 }
 0x6a0   :  { %v1448_v25 = vadd.f32 %v1447_v2, %v1446_v18  ;;  %v1859_v18 = vld [vmem:[%s4435_s18 + $0x70] sm:$0xff]  ;;  %v1760_v2 = vld [vmem:[%s4434_s17 + $0x68] sm:$0xff] }
 0x6a1   :  { %1874 = vmatpush.msra.mxu3 %v1859_v18  ;;  %v1863_v18 = vld [vmem:[%s4435_s18 + $0x90] sm:$0xff] }
 0x6a2   :  { %2358 = vmatmul.msk.f32.vlgmr.msra.gmra.mxu1 %vm402_vm11, %v1448_v25  ;;  %v1858_v25 = vld [vmem:[%s4435_s18 + $0x68] sm:$0xff] }
 0x6a3   :  { %1709 = vmatpush.msra.mxu1 %v1531_v7  ;;  %v1872_v7 = vld [vmem:[%s4435_s18 + $0xd8] sm:$0xff]  ;;  %1875 = vmatpush.msra.mxu3 %v1858_v25  ;;  %v1764_v25 = vld [vmem:[%s4434_s17 + $0x88] sm:$0xff] }
 0x6a4   :  { %1906 = vmatpush.msra.mxu2 %v1872_v7  ;;  %v1862_v7 = vld [vmem:[%s4435_s18 + $0x88] sm:$0xff] }
 0x6a5   :  { %1710 = vmatpush.msra.mxu1 %v1529_v30  ;;  %v1857_v30 = vld [vmem:[%s4435_s18 + $0x60] sm:$0xff] }
 0x6a6   :  { %1907 = vmatpush.msra.mxu2 %v1871_v14  ;;  %1876 = vmatpush.msra.mxu3 %v1857_v30  ;;  %v1763_v30 = vld [vmem:[%s4434_s17 + $0x80] sm:$0xff] }
 0x6a7   :  { %v1715_v14 = vld [vmem:[%s4430_s13] sm:$0x3]  ;;  %s2435_s13 = smov 64  }
 0x6a8   :  { %1877 = vmatpush.msra.mxu3 %v1856_v16 }
 0x701   :  { %v1497_v20 = vpop.f32.mrf.mxu0 }
 0x71f   :  { %v1517_v22 = vpop.f32.mrf.mxu1 }
 0x720   :  { %v1518_v27 = vadd.f32 %v1517_v22, %v1497_v20  ;;  %v1870_v20 = vld [vmem:[%s4435_s18 + $0xc8] sm:$0xff] }
 0x721   :  { %1908 = vmatpush.msra.mxu2 %v1870_v20  ;;  %v1733_v20 = vld [vmem:[%s4431_s14] sm:$0x3] }
 0x722   :  { %v1527_v29 = vmul.f32 %v3851_v26, %v1518_v27  ;;  %v1771_v27 = vld [vmem:[%s4434_s17 + $0xc0] sm:$0xff] }
 0x724   :  { %2359 = vmatmul.msk.f32.vlgmr.msrb.gmra.mxu0 %vm1532_vm5, %v1527_v29  ;;  %2360 = vmatmul.msk.f32.vlgmr.msrb.gmra.mxu1 %vm1532_vm5, %v1527_v29  ;;  %v1869_v29 = vld [vmem:[%s4435_s18 + $0xc0] sm:$0xff] }
 0x725   :  { %1787 = vmatpush.msrb.mxu0 %v1762_v10  ;;  %1820 = vmatpush.msrb.mxu1 %v1774_v28  ;;  %v1749_v10 = vld [vmem:[%s4434_s17 + $0x10] sm:$0xff]  ;;  %v1846_v28 = vld [vmem:[%s4435_s18 + $0x8] sm:$0xff] }
 0x726   :  { %1909 = vmatpush.msra.mxu2 %v1869_v29 }
 0x727   :  { %1788 = vmatpush.msrb.mxu0 %v1761_v13  ;;  %1821 = vmatpush.msrb.mxu1 %v1773_v34  ;;  %v1847_v13 = vld [vmem:[%s4435_s18 + $0x10] sm:$0xff]  ;;  %v1845_v34 = vld [vmem:[%s4435_s18] sm:$0xff] }
 0x729   :  { %1789 = vmatpush.msrb.mxu0 %v1760_v2  ;;  %1822 = vmatpush.msrb.mxu1 %v1772_v40  ;;  %v1748_v2 = vld [vmem:[%s4434_s17 + $0x8] sm:$0xff]  ;;  %v1717_v40 = vperm.slane %v1715_v14, 0 }
 0x72b   :  { %1790 = vmatpush.msrb.mxu0 %v1759_v9  ;;  %1823 = vmatpush.msrb.mxu1 %v1771_v27  ;;  %v1747_v9 = vld [vmem:[%s4434_s17] sm:$0xff] }
 0x72d   :  { %1791 = vmatpush.msrb.mxu0 %v1758_v46  ;;  %v1718_v46 = vperm.slane %v1715_v14, 1  ;;  %v2069_v14 = vld [vmem:[%s4438_s21 + $0xf0] sm:$0xff] }
 0x7a1   :  { %v1553_v19 = vpop.f32.mrf.mxu0  ;;  %v1573_v41 = vpop.f32.mrf.mxu1 }
 0x7a2   :  { %v1576_v32 = vperm.slane %v1553_v19, 0  ;;  %v1577_v17 = vperm.slane %v1573_v41, 0  ;;  %v1757_v41 = vld [vmem:[%s4434_s17 + $0x50] sm:$0xff] }
 0x7a3   :  { %1792 = vmatpush.msrb.mxu0 %v1757_v41  ;;  %v1735_v41 = vperm.slane %v1733_v20, 0 }
 0x7a4   :  { %v3858_v33 = vsub.f32 %v1417_v59, %v1576_v32  ;;  %v3862_v35 = vsub.f32 %v1419_v3, %v1576_v32  ;;  %v3866_v36 = vsub.f32 %v1421_v62, %v1576_v32  ;;  %v3870_v37 = vsub.f32 %v1423_v1, %v1576_v32  ;;  %v1855_v32 = vld [vmem:[%s4435_s18 + $0x50] sm:$0xff] }
 0x7a5   :  { %v3872_v39 = vsub.f32 %v1418_v60, %v1577_v17  ;;  %v3874_v38 = vsub.f32 %v1420_v44, %v1577_v17  ;;  %v3876_v61 = vsub.f32 %v1422_v5, %v1577_v17  ;;  %v3878_v51 = vsub.f32 %v1424_v56, %v1577_v17  ;;  %v1770_v17 = vld [vmem:[%s4434_s17 + $0xb8] sm:$0xff]  ;;  %1878 = vmatpush.msra.mxu3 %v1855_v32 }
 0x7a6   :  { %v1586_v31 = vmul.f32 %v3858_v33, %v3858_v33  ;;  %v1588_v54 = vmul.f32 %v3862_v35, %v3862_v35  ;;  %v1592_v3 = vmul.f32 %v3870_v37, %v3870_v37  ;;  %v1590_v1 = vmul.f32 %v3866_v36, %v3866_v36  ;;  %1824 = vmatpush.msrb.mxu1 %v1770_v17 }
 0x7a7   :  { %v1587_v59 = vmul.f32 %v3872_v39, %v3872_v39  ;;  %v1589_v62 = vmul.f32 %v3874_v38, %v3874_v38  ;;  %v1591_v0 = vmul.f32 %v3876_v61, %v3876_v61  ;;  %v1593_v24 = vmul.f32 %v3878_v51, %v3878_v51 }
 0x7a8   :  { %v1594_v23 = vadd.f32 %v1588_v54, %v1586_v31  ;;  %v1596_v53 = vsel %vm156_vm4, %v1592_v3, 0.0  ;;  %v1868_v31 = vld [vmem:[%s4435_s18 + $0xb8] sm:$0xff]  ;;  %v1756_v3 = vld [vmem:[%s4434_s17 + $0x48] sm:$0xff]  ;;  %v1736_v17 = vperm.slane %v1733_v20, 1 }
 0x7a9   :  { %v1604_v21 = vsel %vm402_vm11, %v1587_v59, 0.0  ;;  %v1605_v47 = vsel %vm402_vm11, %v1589_v62, 0.0  ;;  %v1607_v42 = vsel %vm402_vm11, %v1591_v0, 0.0  ;;  %v1609_v60 = vsel %vm1440_vm2, %v1593_v24, 0.0  ;;  %v1854_v59 = vld [vmem:[%s4435_s18 + $0x48] sm:$0xff]  ;;  %v1769_v62 = vld [vmem:[%s4434_s17 + $0xb0] sm:$0xff]  ;;  %1910 = vmatpush.msra.mxu2 %v1868_v31  ;;  %1793 = vmatpush.msrb.mxu0 %v1756_v3 }
 0x7aa   :  { %v1595_v45 = vadd.f32 %v1594_v23, %v1590_v1  ;;  %v1606_v48 = vadd.f32 %v1605_v47, %v1604_v21  ;;  %v1755_v1 = vld [vmem:[%s4434_s17 + $0x40] sm:$0xff]  ;;  %1879 = vmatpush.msra.mxu3 %v1854_v59  ;;  %v1768_v24 = vld [vmem:[%s4434_s17 + $0xa8] sm:$0xff]  ;;  %v1754_v47 = vld [vmem:[%s4434_s17 + $0x38] sm:$0xff]  ;;  %1825 = vmatpush.msrb.mxu1 %v1769_v62 }
 0x7ab   :  { %v1853_v23 = vld [vmem:[%s4435_s18 + $0x40] sm:$0xff]  ;;  %v1866_v21 = vld [vmem:[%s4435_s18 + $0xa8] sm:$0xff]  ;;  %1794 = vmatpush.msrb.mxu0 %v1755_v1  ;;  %v2050_v20 = vld [vmem:[%s4438_s21 + $0x58] sm:$0xff] }
 0x7ac   :  { %v1608_v44 = vadd.f32 %v1607_v42, %v1606_v48  ;;  %v1597_v43 = vadd.f32 %v1596_v53, %v1595_v45  ;;  %v1852_v45 = vld [vmem:[%s4435_s18 + $0x38] sm:$0xff]  ;;  %1880 = vmatpush.msra.mxu3 %v1853_v23  ;;  %v1753_v48 = vld [vmem:[%s4434_s17 + $0x30] sm:$0xff]  ;;  %1826 = vmatpush.msrb.mxu1 %v1768_v24  ;;  %v1752_v42 = vld [vmem:[%s4434_s17 + $0x28] sm:$0xff] }
 0x7ad   :  { %v1851_v53 = vld [vmem:[%s4435_s18 + $0x30] sm:$0xff]  ;;  %1795 = vmatpush.msrb.mxu0 %v1754_v47 }
 0x7ae   :  { %v1610_v5 = vadd.f32 %v1609_v60, %v1608_v44  ;;  %v1598_v52 = vrot.slane %v1597_v43, 4  ;;  %1881 = vmatpush.msra.mxu3 %v1852_v45  ;;  %v1850_v44 = vld [vmem:[%s4435_s18 + $0x28] sm:$0xff] }
 0x7af   :  { %1796 = vmatpush.msrb.mxu0 %v1753_v48 }
 0x7b0   :  { %v1611_v12 = vrot.slane %v1610_v5, 4  ;;  %v1599_v49 = vadd.f32 %v1598_v52, %v1597_v43  ;;  %1882 = vmatpush.msra.mxu3 %v1851_v53 }
 0x7b1   :  { %1797 = vmatpush.msrb.mxu0 %v1752_v42 }
 0x7b2   :  { %v1612_v15 = vadd.f32 %v1611_v12, %v1610_v5  ;;  %v1600_v58 = vrot.slane %v1599_v49, 2  ;;  %1883 = vmatpush.msra.mxu3 %v1850_v44 }
 0x7b4   :  { %v1601_v6 = vadd.f32 %v1600_v58, %v1599_v49  ;;  %v1613_v50 = vrot.slane %v1612_v15, 2  ;;  %v1751_v58 = vld [vmem:[%s4434_s17 + $0x20] sm:$0xff] }
 0x7b5   :  { %1798 = vmatpush.msrb.mxu0 %v1751_v58 }
 0x7b6   :  { %v1602_v55 = vrot.slane %v1601_v6, 1  ;;  %v1614_v56 = vadd.f32 %v1613_v50, %v1612_v15  ;;  %v1849_v50 = vld [vmem:[%s4435_s18 + $0x20] sm:$0xff] }
 0x7b7   :  { %1884 = vmatpush.msra.mxu3 %v1849_v50 }
 0x7b8   :  { %v1603_v57 = vadd.f32 %v1602_v55, %v1601_v6  ;;  %v1615_v8 = vrot.slane %v1614_v56, 1  ;;  %v1767_v6 = vld [vmem:[%s4434_s17 + $0xa0] sm:$0xff] }
 0x7b9   :  { %1827 = vmatpush.msrb.mxu1 %v1767_v6  ;;  %v1865_v55 = vld [vmem:[%s4435_s18 + $0xa0] sm:$0xff] }
 0x7ba   :  { %1636 = vmatmul.f32.vlgmr.msrb.gmra.mxu3 %v1603_v57  ;;  %v1616_v4 = vadd.f32 %v1615_v8, %v1614_v56  ;;  %v1750_v56 = vld [vmem:[%s4434_s17 + $0x18] sm:$0xff] }
 0x7bb   :  { %v1766_v57 = vld [vmem:[%s4434_s17 + $0x98] sm:$0xff]  ;;  %1799 = vmatpush.msrb.mxu0 %v1750_v56 }
 0x7bc   :  { %2361 = vmatmul.msk.f32.vlgmr.msrb.gmra.mxu2 %vm402_vm11, %v1616_v4  ;;  %v1848_v8 = vld [vmem:[%s4435_s18 + $0x18] sm:$0xff]  ;;  %1828 = vmatpush.msrb.mxu1 %v1766_v57 }
 0x7bd   :  { %v1864_v4 = vld [vmem:[%s4435_s18 + $0x98] sm:$0xff]  ;;  %1885 = vmatpush.msra.mxu3 %v1848_v8  ;;  %1800 = vmatpush.msrb.mxu0 %v1749_v10 }
 0x7be   :  { %1829 = vmatpush.msrb.mxu1 %v1765_v63 }
 0x7bf   :  { %1886 = vmatpush.msra.mxu3 %v1847_v13  ;;  %1801 = vmatpush.msrb.mxu0 %v1748_v2  ;;  %v1935_v2 = vld [vmem:[%s4436_s19] sm:$0xff] }
 0x7c0   :  { %1830 = vmatpush.msrb.mxu1 %v1764_v25  ;;  %v1970_v25 = vld [vmem:[%s4437_s20] sm:$0xff] }
 0x7c1   :  { %1887 = vmatpush.msra.mxu3 %v1846_v28  ;;  %1802 = vmatpush.msrb.mxu0 %v1747_v9  ;;  %v1936_v28 = vld [vmem:[%s4436_s19 + $0x8] sm:$0x3f]  ;;  %v2054_v9 = vld [vmem:[%s4438_s21 + $0x78] sm:$0xff] }
 0x7c2   :  { %1831 = vmatpush.msrb.mxu1 %v1763_v30  ;;  %v2053_v30 = vld [vmem:[%s4438_s21 + $0x70] sm:$0xff] }
 0x7c3   :  { %1888 = vmatpush.msra.mxu3 %v1845_v34  ;;  %v2070_v34 = vld [vmem:[%s4438_s21 + $0xf8] sm:$0xff] }
 0x7c5   :  { %2163 = vmatpush.msrb.mxu3 %v2070_v34  ;;  %v2133_v34 = vld [vmem:[%s4438_s21 + $0x2f0] sm:$0xff] }
 0x7c7   :  { %2164 = vmatpush.msrb.mxu3 %v2069_v14  ;;  %v2132_v14 = vld [vmem:[%s4438_s21 + $0x2e8] sm:$0xff] }
 0x83d   :  { %v1637_v11 = vpop.f32.mrf.mxu3 }
 0x83f   :  { %v1657_v22 = vpop.f32.mrf.mxu2 }
 0x840   :  { %v1658_v19 = vadd.f32 %v1657_v22, %v1637_v11  ;;  %v1861_v11 = vld [vmem:[%s4435_s18 + $0x80] sm:$0xff] }
 0x842   :  { %v1660_v54 = vmul.f32 %v1658_v19, %v3851_v26  ;;  %v1867_v26 = vld [vmem:[%s4435_s18 + $0xb0] sm:$0xff] }
 0x843   :  { %1911 = vmatpush.msra.mxu2 %v1867_v26 }
 0x844   :  { %v1661_v0 = vadd.f32 1e-05, %v1660_v54 }
 0x845   :  { %1912 = vmatpush.msra.mxu2 %v1866_v21 }
 0x846   :  { %2399 = vrsqrt.f32 %v1661_v0  ;;  %vm1668_vm10 = vweird.f32 %v1661_v0 }
 0x847   :  { %1913 = vmatpush.msra.mxu2 %v1865_v55 }
 0x849   :  { %1914 = vmatpush.msra.mxu2 %v1864_v4 }
 0x84b   :  { %1915 = vmatpush.msra.mxu2 %v1863_v18 }
 0x84c   :  { %v2400_v43 = vpop.eup %2399 }
 0x84d   :  { %v1663_v60 = vmul.f32 %v2400_v43, %v1661_v0  ;;  %vm1669_vm7 = vweird.f32 %v2400_v43  ;;  %1916 = vmatpush.msra.mxu2 %v1862_v7  ;;  %v1971_v7 = vld [vmem:[%s4437_s20 + $0x8] sm:$0x3f]  ;;  %s2289_s20 = sshll.u32 %s2439_s11, 4  ;;  %s2290_s20 = int_to_ptr.vmem [resolvable:$true] %s2289_s20 }
 0x84e   :  { %vm1670_vm12 = vmor %vm1668_vm10, %vm1669_vm7 }
 0x84f   :  { %v1664_v5 = vmul.f32 %v2400_v43, %v1663_v60  ;;  %1917 = vmatpush.msra.mxu2 %v1861_v11  ;;  %v2052_v11 = vld [vmem:[%s4438_s21 + $0x68] sm:$0xff] }
 0x851   :  { %v1665_v52 = vmul.f32 0.5, %v1664_v5  ;;  %2143 = vmatpush.msrb.mxu2 %v2054_v9  ;;  %v2094_v9 = vld [vmem:[%s4438_s21 + $0x1b8] sm:$0xff] }
 0x853   :  { %v1666_v12 = vsub.f32 1.5, %v1665_v52  ;;  %2144 = vmatpush.msrb.mxu2 %v2053_v30  ;;  %v2116_v30 = vld [vmem:[%s4438_s21 + $0x268] sm:$0xff] }
 0x855   :  { %v1667_v49 = vmul.f32 %v2400_v43, %v1666_v12  ;;  %2145 = vmatpush.msrb.mxu2 %v2052_v11  ;;  %v2115_v11 = vld [vmem:[%s4438_s21 + $0x260] sm:$0xff] }
 0x857   :  { %v1671_v15 = vsel %vm1670_vm12, %v2400_v43, %v1667_v49 }
 0x858   :  { %2362 = vmatmul.msk.f32.vlgmr.msra.gmra.mxu0 %vm1532_vm5, %v1671_v15  ;;  %2363 = vmatmul.msk.f32.vlgmr.msra.gmra.mxu1 %vm1532_vm5, %v1671_v15 }
 0x8d5   :  { %v1692_v16 = vpop.f32.mrf.mxu0  ;;  %v1712_v22 = vpop.f32.mrf.mxu1 }
 0x8d6   :  { %v1721_v27 = vmul.f32 %v1717_v40, %v1692_v16  ;;  %v1722_v29 = vmul.f32 %v1718_v46, %v1712_v22  ;;  %v2068_v40 = vld [vmem:[%s4438_s21 + $0xe8] sm:$0xff]  ;;  %v2051_v46 = vld [vmem:[%s4438_s21 + $0x60] sm:$0xff]  ;;  %v2066_v22 = vld [vmem:[%s4438_s21 + $0xd8] sm:$0xff] }
 0x8d7   :  { %v2067_v16 = vld [vmem:[%s4438_s21 + $0xe0] sm:$0xff]  ;;  %2165 = vmatpush.msrb.mxu3 %v2068_v40  ;;  %2146 = vmatpush.msrb.mxu2 %v2051_v46  ;;  %v2114_v40 = vld [vmem:[%s4438_s21 + $0x258] sm:$0xff] }
 0x8d8   :  { %v1723_v19 = vperm.slane %v1721_v27, 0  ;;  %v1724_v32 = vperm.slane %v1722_v29, 0  ;;  %v2049_v27 = vld [vmem:[%s4438_s21 + $0x50] sm:$0xff]  ;;  %v2131_v46 = vld [vmem:[%s4438_s21 + $0x2e0] sm:$0xff] }
 0x8d9   :  { %2166 = vmatpush.msrb.mxu3 %v2067_v16  ;;  %2147 = vmatpush.msrb.mxu2 %v2050_v20  ;;  %v2065_v29 = vld [vmem:[%s4438_s21 + $0xd0] sm:$0xff]  ;;  %v2130_v20 = vld [vmem:[%s4438_s21 + $0x2d8] sm:$0xff] }
 0x8da   :  { %v1725_v31 = vmul.f32 %v1723_v19, %v3858_v33  ;;  %v1726_v54 = vmul.f32 %v1724_v32, %v3872_v39  ;;  %v1728_v62 = vmul.f32 %v1724_v32, %v3874_v38  ;;  %v1727_v26 = vmul.f32 %v1723_v19, %v3862_v35  ;;  %v2113_v16 = vld [vmem:[%s4438_s21 + $0x250] sm:$0xff] }
 0x8db   :  { %v1730_v33 = vmul.f32 %v1724_v32, %v3876_v61  ;;  %v1729_v39 = vmul.f32 %v1723_v19, %v3866_v36  ;;  %v1732_v35 = vmul.f32 %v1724_v32, %v3878_v51  ;;  %v1731_v38 = vmul.f32 %v1723_v19, %v3870_v37  ;;  %v2048_v19 = vld [vmem:[%s4438_s21 + $0x48] sm:$0xff]  ;;  %2167 = vmatpush.msrb.mxu3 %v2066_v22 }
 0x8dc   :  { %v1739_v3 = vadd.f32 %v1735_v41, %v1725_v31  ;;  %v1740_v59 = vadd.f32 %v1736_v17, %v1726_v54  ;;  %v1741_v0 = vadd.f32 %v1735_v41, %v1727_v26  ;;  %v1742_v1 = vadd.f32 %v1736_v17, %v1728_v62  ;;  %2148 = vmatpush.msrb.mxu2 %v2049_v27  ;;  %v2064_v32 = vld [vmem:[%s4438_s21 + $0xc8] sm:$0xff]  ;;  %v2102_v31 = vld [vmem:[%s4438_s21 + $0x1f8] sm:$0xff]  ;;  %v2047_v54 = vld [vmem:[%s4438_s21 + $0x40] sm:$0xff] }
 0x8dd   :  { %v1743_v23 = vadd.f32 %v1735_v41, %v1729_v39  ;;  %v1744_v24 = vadd.f32 %v1736_v17, %v1730_v33  ;;  %v1745_v21 = vadd.f32 %v1735_v41, %v1731_v38  ;;  %v1746_v47 = vadd.f32 %v1736_v17, %v1732_v35  ;;  %v2086_v41 = vld [vmem:[%s4438_s21 + $0x178] sm:$0xff]  ;;  %v2085_v17 = vld [vmem:[%s4438_s21 + $0x170] sm:$0xff]  ;;  %2168 = vmatpush.msrb.mxu3 %v2065_v29  ;;  %v2063_v26 = vld [vmem:[%s4438_s21 + $0xc0] sm:$0xff] }
 0x8de   :  { %1803 = vmatmul.f32.vlgmr.msrb.gmra.mxu0 %v1739_v3  ;;  %2364 = vmatmul.msk.f32.vlgmr.msrb.gmra.mxu1 %vm402_vm11, %v1740_v59  ;;  %v2046_v33 = vld [vmem:[%s4438_s21 + $0x38] sm:$0xff]  ;;  %v2083_v39 = vld [vmem:[%s4438_s21 + $0x160] sm:$0xff]  ;;  %v2045_v38 = vld [vmem:[%s4438_s21 + $0x30] sm:$0xff] }
 0x8df   :  { %1889 = vmatmul.f32.vlgmr.msra.gmra.mxu3 %v1739_v3  ;;  %2368 = vmatmul.msk.f32.vlgmr.msra.gmra.mxu2 %vm402_vm11, %v1740_v59  ;;  %v2084_v3 = vld [vmem:[%s4438_s21 + $0x168] sm:$0xff]  ;;  %v2129_v27 = vld [vmem:[%s4438_s21 + $0x2d0] sm:$0xff]  ;;  %v2111_v29 = vld [vmem:[%s4438_s21 + $0x240] sm:$0xff] }
 0x8e0   :  { %2149 = vmatpush.msrb.mxu2 %v2048_v19  ;;  %2169 = vmatpush.msrb.mxu3 %v2064_v32  ;;  %v2112_v22 = vld [vmem:[%s4438_s21 + $0x248] sm:$0xff]  ;;  %v2127_v32 = vld [vmem:[%s4438_s21 + $0x2c0] sm:$0xff] }
 0x8e1   :  { %v2128_v19 = vld [vmem:[%s4438_s21 + $0x2c8] sm:$0xff] }
 0x8e2   :  { %2150 = vmatpush.msrb.mxu2 %v2047_v54  ;;  %2170 = vmatpush.msrb.mxu3 %v2063_v26  ;;  %v2076_v54 = vld [vmem:[%s4438_s21 + $0x128] sm:$0xff] }
 0x8e3   :  { %v2072_v26 = vld [vmem:[%s4438_s21 + $0x108] sm:$0xff] }
 0x8e4   :  { %2151 = vmatpush.msrb.mxu2 %v2046_v33  ;;  %v2093_v33 = vld [vmem:[%s4438_s21 + $0x1b0] sm:$0xff] }
 0x8e6   :  { %1806 = vmatmul.f32.gmra.mxu0 %v1741_v0  ;;  %2365 = vmatmul.msk.f32.gmra.mxu1 %vm402_vm11, %v1742_v1 }
 0x8e7   :  { %1892 = vmatmul.f32.gmra.mxu3 %v1741_v0  ;;  %2369 = vmatmul.msk.f32.gmra.mxu2 %vm402_vm11, %v1742_v1  ;;  %v2101_v0 = vld [vmem:[%s4438_s21 + $0x1f0] sm:$0xff] }
 0x8e8   :  { %2152 = vmatpush.msrb.mxu2 %v2045_v38  ;;  %v2106_v38 = vld [vmem:[%s4438_s21 + $0x218] sm:$0xff] }
 0x8ee   :  { %1809 = vmatmul.f32.gmra.mxu0 %v1743_v23  ;;  %2366 = vmatmul.msk.f32.gmra.mxu1 %vm402_vm11, %v1744_v24 }
 0x8ef   :  { %1895 = vmatmul.f32.gmra.mxu3 %v1743_v23  ;;  %2370 = vmatmul.msk.f32.gmra.mxu2 %vm402_vm11, %v1744_v24  ;;  %v2100_v23 = vld [vmem:[%s4438_s21 + $0x1e8] sm:$0xff] }
 0x8f6   :  { %1812 = vmatmul.f32.gmra.mxu0 %v1745_v21  ;;  %2367 = vmatmul.msk.f32.gmra.mxu1 %vm402_vm11, %v1746_v47 }
 0x8f7   :  { %1898 = vmatmul.f32.gmra.mxu3 %v1745_v21  ;;  %2371 = vmatmul.msk.f32.gmra.mxu2 %vm402_vm11, %v1746_v47  ;;  %v2062_v21 = vld [vmem:[%s4438_s21 + $0xb8] sm:$0xff] }
 0x8f8   :  { %v2082_v47 = vld [vmem:[%s4438_s21 + $0x158] sm:$0xff]  ;;  %2171 = vmatpush.msrb.mxu3 %v2062_v21  ;;  %v2125_v21 = vld [vmem:[%s4438_s21 + $0x2b0] sm:$0xff] }
 0x95b   :  { %v1804_v36 = vpop.f32.mrf.mxu0  ;;  %v1833_v61 = vpop.f32.mrf.mxu1 }
 0x95c   :  { %v1834_v63 = vadd.f32 %v1833_v61, %v1804_v36  ;;  %v2099_v36 = vld [vmem:[%s4438_s21 + $0x1e0] sm:$0xff]  ;;  %v2044_v61 = vld [vmem:[%s4438_s21 + $0x28] sm:$0xff] }
 0x95d   :  { %2153 = vmatpush.msrb.mxu2 %v2044_v61  ;;  %v2090_v61 = vld [vmem:[%s4438_s21 + $0x198] sm:$0xff] }
 0x962   :  { %v1890_v45 = vpop.f32.mrf.mxu3  ;;  %v1919_v48 = vpop.f32.mrf.mxu2 }
 0x963   :  { %v1807_v53 = vpop.f32.mrf.mxu0  ;;  %v1836_v42 = vpop.f32.mrf.mxu1  ;;  %v1920_v8 = vadd.f32 %v1919_v48, %v1890_v45  ;;  %v2061_v45 = vld [vmem:[%s4438_s21 + $0xb0] sm:$0xff] }
 0x964   :  { %v1837_v4 = vadd.f32 %v1836_v42, %v1807_v53  ;;  %v2081_v48 = vld [vmem:[%s4438_s21 + $0x150] sm:$0xff]  ;;  %v2098_v53 = vld [vmem:[%s4438_s21 + $0x1d8] sm:$0xff]  ;;  %v2043_v42 = vld [vmem:[%s4438_s21 + $0x20] sm:$0xff]  ;;  %2172 = vmatpush.msrb.mxu3 %v2061_v45 }
 0x965   :  { %v1931_v18 = vmax.f32 %v1834_v63, %v1920_v8  ;;  %2154 = vmatpush.msrb.mxu2 %v2043_v42  ;;  %v2078_v8 = vld [vmem:[%s4438_s21 + $0x138] sm:$0xff]  ;;  %v2089_v45 = vld [vmem:[%s4438_s21 + $0x190] sm:$0xff]  ;;  %v2088_v42 = vld [vmem:[%s4438_s21 + $0x188] sm:$0xff] }
 0x966   :  { %v2118_v63 = vld [vmem:[%s4438_s21 + $0x278] sm:$0xff] }
 0x96a   :  { %v1893_v44 = vpop.f32.mrf.mxu3  ;;  %v1922_v43 = vpop.f32.mrf.mxu2 }
 0x96b   :  { %v1810_v60 = vpop.f32.mrf.mxu0  ;;  %v1839_v51 = vpop.f32.mrf.mxu1  ;;  %v1923_v55 = vadd.f32 %v1922_v43, %v1893_v44  ;;  %v2060_v44 = vld [vmem:[%s4438_s21 + $0xa8] sm:$0xff] }
 0x96c   :  { %v1840_v56 = vadd.f32 %v1839_v51, %v1810_v60  ;;  %v2080_v51 = vld [vmem:[%s4438_s21 + $0x148] sm:$0xff]  ;;  %2173 = vmatpush.msrb.mxu3 %v2060_v44 }
 0x96d   :  { %v1932_v13 = vmax.f32 %v1837_v4, %v1923_v55  ;;  %v2040_v55 = vld [vmem:[%s4438_s21 + $0x8] sm:$0xff]  ;;  %v2039_v4 = vld [vmem:[%s4438_s21] sm:$0xff] }
 0x972   :  { %v1896_v5 = vpop.f32.mrf.mxu3  ;;  %v1925_v37 = vpop.f32.mrf.mxu2 }
 0x973   :  { %v1813_v52 = vpop.f32.mrf.mxu0  ;;  %v1842_v12 = vpop.f32.mrf.mxu1  ;;  %v1926_v58 = vadd.f32 %v1925_v37, %v1896_v5  ;;  %v2042_v37 = vld [vmem:[%s4438_s21 + $0x18] sm:$0xff] }
 0x974   :  { %v1843_v6 = vadd.f32 %v1842_v12, %v1813_v52  ;;  %v2059_v52 = vld [vmem:[%s4438_s21 + $0xa0] sm:$0xff]  ;;  %2155 = vmatpush.msrb.mxu2 %v2042_v37  ;;  %v2120_v37 = vld [vmem:[%s4438_s21 + $0x288] sm:$0xff] }
 0x975   :  { %v1933_v10 = vmax.f32 %v1840_v56, %v1926_v58  ;;  %v2058_v58 = vld [vmem:[%s4438_s21 + $0x98] sm:$0xff]  ;;  %2174 = vmatpush.msrb.mxu3 %v2059_v52  ;;  %v2057_v56 = vld [vmem:[%s4438_s21 + $0x90] sm:$0xff]  ;;  %v2136_v52 = vld [vmem:[%s4438_s21 + $0x308] sm:$0xff] }
 0x977   :  { %2175 = vmatpush.msrb.mxu3 %v2058_v58 }
 0x979   :  { %2176 = vmatpush.msrb.mxu3 %v2057_v56 }
 0x97a   :  { %v1899_v49 = vpop.f32.mrf.mxu3  ;;  %v1928_v15 = vpop.f32.mrf.mxu2 }
 0x97b   :  { %v1929_v50 = vadd.f32 %v1928_v15, %v1899_v49  ;;  %v2041_v15 = vld [vmem:[%s4438_s21 + $0x10] sm:$0xff] }
 0x97c   :  { %2156 = vmatpush.msrb.mxu2 %v2041_v15 }
 0x97d   :  { %v1934_v57 = vmax.f32 %v1843_v6, %v1929_v50  ;;  %v2097_v6 = vld [vmem:[%s4438_s21 + $0x1d0] sm:$0xff]  ;;  %v2079_v50 = vld [vmem:[%s4438_s21 + $0x140] sm:$0xff] }
 0x97e   :  { %2157 = vmatpush.msrb.mxu2 %v2040_v55 }
 0x97f   :  { %2372 = vmatpush.msk.msra.mxu1 %vm156_vm4, %v1934_v57  ;;  %2375 = vmatpush.msk.msra.mxu0 %vm156_vm4, %v1934_v57  ;;  %v2096_v57 = vld [vmem:[%s4438_s21 + $0x1c8] sm:$0xff]  ;;  %vm2031_vm4 = vcmask 654336  }
 0x980   :  { %2158 = vmatpush.msrb.mxu2 %v2039_v4 }
 0x981   :  { %1960 = vmatpush.msra.mxu1 %v1933_v10  ;;  %1991 = vmatpush.msra.mxu0 %v1933_v10  ;;  %v2056_v10 = vld [vmem:[%s4438_s21 + $0x88] sm:$0xff] }
 0x982   :  { %2177 = vmatpush.msrb.mxu3 %v2056_v10  ;;  %2223 = vmatpush.msra.mxu2 %v2118_v63 }
 0x983   :  { %1961 = vmatpush.msra.mxu1 %v1932_v13  ;;  %1992 = vmatpush.msra.mxu0 %v1932_v13 }
 0x985   :  { %1962 = vmatpush.msra.mxu1 %v1931_v18  ;;  %1993 = vmatpush.msra.mxu0 %v1931_v18  ;;  %v2055_v18 = vld [vmem:[%s4438_s21 + $0x80] sm:$0xff] }
 0x986   :  { %2373 = vmatmul.msk.f32.vlgmr.msra.gmra.mxu1 %vm1937_vm13, %v1935_v2  ;;  %2376 = vmatmul.msk.f32.vlgmr.msra.gmra.mxu0 %vm1937_vm13, %v1970_v25  ;;  %v2095_v2 = vld [vmem:[%s4438_s21 + $0x1c0] sm:$0xff]  ;;  %v2117_v25 = vld [vmem:[%s4438_s21 + $0x270] sm:$0xff] }
 0x987   :  { %2183 = vmatpush.msrb.mxu1 %v2086_v41  ;;  %2203 = vmatpush.msrb.mxu0 %v2102_v31  ;;  %v2110_v41 = vld [vmem:[%s4438_s21 + $0x238] sm:$0xff]  ;;  %v2108_v31 = vld [vmem:[%s4438_s21 + $0x228] sm:$0xff] }
 0x988   :  { %2178 = vmatpush.msrb.mxu3 %v2055_v18  ;;  %2224 = vmatpush.msra.mxu2 %v2117_v25 }
 0x989   :  { %2184 = vmatpush.msrb.mxu1 %v2085_v17  ;;  %2204 = vmatpush.msrb.mxu0 %v2101_v0  ;;  %v2109_v17 = vld [vmem:[%s4438_s21 + $0x230] sm:$0xff]  ;;  %v2071_v0 = vld [vmem:[%s4438_s21 + $0x100] sm:$0xff] }
 0x98a   :  { %2225 = vmatpush.msra.mxu2 %v2116_v30 }
 0x98b   :  { %2185 = vmatpush.msrb.mxu1 %v2084_v3  ;;  %2205 = vmatpush.msrb.mxu0 %v2100_v23  ;;  %v2075_v3 = vld [vmem:[%s4438_s21 + $0x120] sm:$0xff] }
 0x98c   :  { %2226 = vmatpush.msra.mxu2 %v2115_v11  ;;  %v2091_v23 = vld [vmem:[%s4438_s21 + $0x1a0] sm:$0xff] }
 0x98d   :  { %2186 = vmatpush.msrb.mxu1 %v2083_v39  ;;  %2206 = vmatpush.msrb.mxu0 %v2099_v36  ;;  %v2092_v39 = vld [vmem:[%s4438_s21 + $0x1a8] sm:$0xff] }
 0x98e   :  { %2374 = vmatmul.msk.f32.gmra.mxu1 %vm1937_vm13, %v1936_v28  ;;  %2377 = vmatmul.msk.f32.gmra.mxu0 %vm1937_vm13, %v1971_v7  ;;  %v2134_v28 = vld [vmem:[%s4438_s21 + $0x2f8] sm:$0xff]  ;;  %v2077_v7 = vld [vmem:[%s4438_s21 + $0x130] sm:$0xff]  ;;  %v2124_v36 = vld [vmem:[%s4438_s21 + $0x2a8] sm:$0xff] }
 0x98f   :  { %2187 = vmatpush.msrb.mxu1 %v2082_v47  ;;  %2207 = vmatpush.msrb.mxu0 %v2098_v53  ;;  %v2105_v47 = vld [vmem:[%s4438_s21 + $0x210] sm:$0xff]  ;;  %v2123_v53 = vld [vmem:[%s4438_s21 + $0x2a0] sm:$0xff] }
 0x990   :  { %2243 = vmatpush.msra.mxu3 %v2134_v28  ;;  %2227 = vmatpush.msra.mxu2 %v2114_v40 }
 0x991   :  { %2188 = vmatpush.msrb.mxu1 %v2081_v48  ;;  %2208 = vmatpush.msrb.mxu0 %v2097_v6  ;;  %v2104_v48 = vld [vmem:[%s4438_s21 + $0x208] sm:$0xff] }
 0x992   :  { %2244 = vmatpush.msra.mxu3 %v2133_v34  ;;  %2228 = vmatpush.msra.mxu2 %v2113_v16 }
 0x993   :  { %2189 = vmatpush.msrb.mxu1 %v2080_v51  ;;  %2209 = vmatpush.msrb.mxu0 %v2096_v57  ;;  %v2122_v51 = vld [vmem:[%s4438_s21 + $0x298] sm:$0xff] }
 0x994   :  { %2245 = vmatpush.msra.mxu3 %v2132_v14  ;;  %2229 = vmatpush.msra.mxu2 %v2112_v22 }
 0x995   :  { %2190 = vmatpush.msrb.mxu1 %v2079_v50  ;;  %2210 = vmatpush.msrb.mxu0 %v2095_v2 }
 0x996   :  { %2246 = vmatpush.msra.mxu3 %v2131_v46  ;;  %2230 = vmatpush.msra.mxu2 %v2111_v29 }
 0x997   :  { %2191 = vmatpush.msrb.mxu1 %v2078_v8  ;;  %2211 = vmatpush.msrb.mxu0 %v2094_v9 }
 0x998   :  { %2247 = vmatpush.msra.mxu3 %v2130_v20  ;;  %2231 = vmatpush.msra.mxu2 %v2110_v41 }
 0x999   :  { %2192 = vmatpush.msrb.mxu1 %v2077_v7  ;;  %2212 = vmatpush.msrb.mxu0 %v2093_v33 }
 0x99a   :  { %2248 = vmatpush.msra.mxu3 %v2129_v27  ;;  %2232 = vmatpush.msra.mxu2 %v2109_v17 }
 0x99b   :  { %2193 = vmatpush.msrb.mxu1 %v2076_v54  ;;  %2213 = vmatpush.msrb.mxu0 %v2092_v39 }
 0x99c   :  { %2249 = vmatpush.msra.mxu3 %v2128_v19  ;;  %2233 = vmatpush.msra.mxu2 %v2108_v31 }
 0x99d   :  { %2194 = vmatpush.msrb.mxu1 %v2075_v3  ;;  %2214 = vmatpush.msrb.mxu0 %v2091_v23 }
 0x99e   :  { %2250 = vmatpush.msra.mxu3 %v2127_v32 }
 0x99f   :  { %2215 = vmatpush.msrb.mxu0 %v2090_v61 }
 0x9a1   :  { %2216 = vmatpush.msrb.mxu0 %v2089_v45 }
 0x9a3   :  { %2217 = vmatpush.msrb.mxu0 %v2088_v42 }
 0xa03   :  { %v1964_v59 = vpop.f32.mrf.mxu1  ;;  %v1995_v62 = vpop.f32.mrf.mxu0 }
 0xa04   :  { %v4172_v1 = vmax.f32 %v1964_v59, %v1995_v62  ;;  %v2074_v59 = vld [vmem:[%s4438_s21 + $0x118] sm:$0xff]  ;;  %v2073_v62 = vld [vmem:[%s4438_s21 + $0x110] sm:$0xff] }
 0xa05   :  { %2195 = vmatpush.msrb.mxu1 %v2074_v59 }
 0xa06   :  { %v2004_v24 = vrot.slane %v4172_v1, 2  ;;  %v2008_v35 = vrot.slane %v4172_v1, 4  ;;  %v2012_v49 = vrot.slane %v4172_v1, 6 }
 0xa07   :  { %2196 = vmatpush.msrb.mxu1 %v2073_v62 }
 0xa08   :  { %2005 = vrot.lane.b32.xlu1 %v2004_v24, %s2433_s25  ;;  %2009 = vrot.lane.b32.xlu2 %v2008_v35, %s2434_s5  ;;  %s2436_s5 = smov 48   ;;  %v2107_v24 = vld [vmem:[%s4438_s21 + $0x220] sm:$0xff]  ;;  %v2126_v35 = vld [vmem:[%s4438_s21 + $0x2b8] sm:$0xff] }
 0xa09   :  { %2197 = vmatpush.msrb.mxu1 %v2072_v26  ;;  %2234 = vmatpush.msra.mxu2 %v2107_v24 }
 0xa0a   :  { %2251 = vmatpush.msra.mxu3 %v2126_v35 }
 0xa0b   :  { %v1967_v43 = vpop.f32.mrf.mxu1  ;;  %v1998_v60 = vpop.f32.mrf.mxu0  ;;  %2198 = vmatpush.msrb.mxu1 %v2071_v0  ;;  %2235 = vmatpush.msra.mxu2 %v2106_v38 }
 0xa0c   :  { %v2002_v5 = vmax.f32 %v1967_v43, %v1998_v60  ;;  %2252 = vmatpush.msra.mxu3 %v2125_v21  ;;  %v2087_v43 = vld [vmem:[%s4438_s21 + $0x180] sm:$0xff] }
 0xa0d   :  { %2236 = vmatpush.msra.mxu2 %v2105_v47  ;;  %v2103_v60 = vld [vmem:[%s4438_s21 + $0x200] sm:$0xff]  ;;  %2218 = vmatpush.msrb.mxu0 %v2087_v43 }
 0xa0e   :  { %2017 = vrot.lane.b32.xlu0 %v2002_v5, %s2435_s13  ;;  %v2020_v12 = vrot.slane %v2002_v5, 2  ;;  %v2024_v13 = vrot.slane %v2002_v5, 4  ;;  %2253 = vmatpush.msra.mxu3 %v2124_v36  ;;  %v2121_v5 = vld [vmem:[%s4438_s21 + $0x290] sm:$0xff] }
 0xa0f   :  { %2237 = vmatpush.msra.mxu2 %v2104_v48  ;;  %2277 = vmatpush.msra.mxu1 %v2136_v52 }
 0xa10   :  { %2021 = vrot.lane.b32.xlu1 %v2020_v12, %s2436_s5  ;;  %2013 = vrot.lane.b32.xlu2 %v2012_v49, %s2437_s26  ;;  %v2119_v12 = vld [vmem:[%s4438_s21 + $0x280] sm:$0xff] }
 0xa11   :  { %2254 = vmatpush.msra.mxu3 %v2123_v53  ;;  %2238 = vmatpush.msra.mxu2 %v2103_v60  ;;  %v2135_v49 = vld [vmem:[%s4438_s21 + $0x300] sm:$0xff] }
 0xa12   :  { %2278 = vmatpush.msra.mxu1 %v2135_v49 }
 0xa13   :  { %2255 = vmatpush.msra.mxu3 %v2122_v51 }
 0xa15   :  { %2256 = vmatpush.msra.mxu3 %v2121_v5 }
 0xa16   :  { %2025 = vrot.lane.b32.xlu0 %v2024_v13, %s2438_s10 }
 0xa17   :  { %2257 = vmatpush.msra.mxu3 %v2120_v37 }
 0xa19   :  { %2258 = vmatpush.msra.mxu3 %v2119_v12 }
 0xa62   :  { %v2010_v44 = vpop.permute.xlu2 %2009 }
 0xa6a   :  { %v2014_v15 = vpop.permute.xlu2 %2013 }
 0xa6b   :  { %v2032_v58 = vsel %vm2031_vm4, %v2010_v44, %v2014_v15 }
 0xa6c   :  { %2199 = vmatmul.f32.vlgmr.msrb.gmra.mxu1 %v2032_v58 }
 0xa7a   :  { %v2006_v6 = vpop.permute.xlu1 %2005 }
 0xa7b   :  { %v2029_v50 = vsel %vm2028_vm14, %v4172_v1, %v2006_v6  ;;  %v2030_v55 = vsel %vm402_vm11, %v2006_v6, %v2010_v44  ;;  %v2392_v1 = vld [vmem:[%s4439_s22] ss:$0 sm:$0xff] }
 0xa7c   :  { %2159 = vmatmul.f32.vlgmr.msrb.gmra.mxu2 %v2029_v50  ;;  %2179 = vmatmul.f32.vlgmr.msrb.gmra.mxu3 %v2030_v55 }
 0xa80   :  { %v2018_v56 = vpop.permute.xlu0 %2017 }
 0xa81   :  { %v2034_v57 = vsel %vm2033_vm15, %v2014_v15, %v2018_v56 }
 0xa82   :  { %v2022_v8 = vpop.permute.xlu1 %2021  ;;  %2219 = vmatmul.f32.vlgmr.msrb.gmra.mxu0 %v2034_v57 }
 0xa83   :  { %v2036_v4 = vsel %vm2035_vm0, %v2018_v56, %v2022_v8 }
 0xa84   :  { %2239 = vmatmul.f32.vlgmr.msra.gmra.mxu2 %v2036_v4 }
 0xa88   :  { %v2026_v10 = vpop.permute.xlu0 %2025 }
 0xa89   :  { %v2038_v63 = vsel %vm2037_vm1, %v2022_v8, %v2026_v10  ;;  %2378 = vmatmul.msk.f32.vlgmr.msra.gmra.mxu1 %vm1532_vm5, %v2026_v10 }
 0xa8a   :  { %2259 = vmatmul.f32.vlgmr.msra.gmra.mxu3 %v2038_v63 }
 0xae9   :  { %v2200_v28 = vpop.f32.mrf.mxu1 }
 0xaff   :  { %v2160_v13 = vpop.f32.mrf.mxu2  ;;  %v2180_v2 = vpop.f32.mrf.mxu3 }
 0xb00   :  { %v2161_v18 = vadd.f32 %v2392_v1, %v2160_v13  ;;  %v2220_v9 = vpop.f32.mrf.mxu0 }
 0xb02   :  { %v2181_v25 = vadd.f32 %v2180_v2, %v2161_v18 }
 0xb04   :  { %v2201_v7 = vadd.f32 %v2200_v28, %v2181_v25 }
 0xb06   :  { %v2221_v30 = vadd.f32 %v2220_v9, %v2201_v7  ;;  %v2280_v46 = vpop.f32.mrf.mxu1 }
 0xb07   :  { %v2240_v34 = vpop.f32.mrf.mxu2 }
 0xb08   :  { %v2241_v11 = vadd.f32 %v2240_v34, %v2221_v30 }
 0xb0d   :  { %v2260_v14 = vpop.f32.mrf.mxu3 }
 0xb0e   :  { %v2261_v40 = vadd.f32 %v2260_v14, %v2241_v11 }
 0xb10   :  { %v2281_v16 = vadd.f32 %v2280_v46, %v2261_v40 }
 0xb12   :  { %2283 = vst [vmem:[#allocation2] sm:$0x3] %v2281_v16 }
 0xb13   :  { %2294 = dma.vmem_to_hbm [thread:$0]  %s2290_s20, 32, %s2292_s28, [#allocation3]  }
 0xb14   :  { %2425 = dma.done.wait [#allocation3], 32  }
 0xb15   :  { %2426 = vsyncadd [#allocation3], 4294967264 }
 0xb16   :  { %2299 = vsyncpa [#allocation3], 1 }

</bundles_post_ra>
